<compile_context>
chip_gen: v7x
topology: tpu7x:2x2x1
jax: 0.10.0
libtpu: 0.0.40
codegen_flags: <defaults>
</compile_context>

<pallas_src>
import functools
import math

import jax
import jax.numpy as jnp
from jax.experimental import pallas as pl
from jax.experimental.pallas import tpu as pltpu


ACT_DTYPE = jnp.bfloat16   # inter-kernel activation dtype
LN_EPS = 1e-5


# ----------------------------- small helpers --------------------------------


def _round_up(x, m):
    return (x + m - 1) // m * m


def _vmem_capacity_bytes():
    try:
        return int(pltpu.get_tpu_info().vmem_capacity_bytes)
    except Exception:
        return 128 << 20


def _max_row_tile():
    # 512-row tiles on 128-MiB-VMEM parts (v5e/v6e); 256 on 64-MiB v7x.
    return 512 if _vmem_capacity_bytes() >= (96 << 20) else 256


def _pick_tm(M, max_tm):
    """Row tile: divisor of M, multiple of 8 (or full M); prefer >=2 steps."""
    if M <= max_tm:
        half = M // 2
        if half >= 8 and M % 2 == 0 and half % 8 == 0:
            return half            # 2 grid steps -> both v7x TensorCores busy
        return M                   # single full-extent block
    top = max_tm - max_tm % 8
    for tm in range(top, 7, -8):
        if M % tm == 0:
            return tm
    return 0                       # no clean divisor -> caller pads (rare)


def _mish(x):
    # mish(x) = x * tanh(softplus(x)) = x * (z^2 - 1) / (z^2 + 1), z = 1+e^x.
    # 1 exp + 1 approx reciprocal (both on the EUP slot); clamp keeps z^2 finite.
    z = 1.0 + jnp.exp(jnp.minimum(x, 20.0))
    z2 = z * z
    return x * (z2 - 1.0) * pl.reciprocal(z2 + 1.0, approx=True)


def _layer_norm(y, g, b, eps):
    mu = jnp.mean(y, axis=-1, keepdims=True)
    yc = y - mu
    var = jnp.mean(yc * yc, axis=-1, keepdims=True)
    return yc * jax.lax.rsqrt(var + eps) * g + b


# ----------------------------- Pallas kernels --------------------------------


def _fused_linear_kernel(*refs, activation, has_residual, has_ln, eps):
    """out = [LN]( [residual +] [mish]( x @ w + b ) )  for one row tile."""
    idx = 0
    x_ref = refs[idx]; idx += 1
    w_ref = refs[idx]; idx += 1
    b_ref = refs[idx]; idx += 1
    res_ref = None
    if has_residual:
        res_ref = refs[idx]; idx += 1
    g_ref = beta_ref = None
    if has_ln:
        g_ref = refs[idx]; beta_ref = refs[idx + 1]; idx += 2
    o_ref = refs[idx]

    x = x_ref[...].astype(w_ref.dtype)
    y = jnp.dot(x, w_ref[...], preferred_element_type=jnp.float32) + b_ref[...]
    if activation == "mish":
        y = _mish(y)
    if has_residual:
        y = y + res_ref[...].astype(jnp.float32)
    if has_ln:
        y = _layer_norm(y, g_ref[...], beta_ref[...], eps)
    o_ref[...] = y.astype(o_ref.dtype)


def _ffn_kernel(x_ref, w1_ref, b1_ref, w2_ref, b2_ref, g_ref, beta_ref, o_ref,
                *, eps):
    """y = LN(x + mish(x@w1+b1)@w2 + b2); H-wide intermediate never leaves VMEM."""
    x = x_ref[...]
    h = jnp.dot(x.astype(w1_ref.dtype), w1_ref[...],
                preferred_element_type=jnp.float32) + b1_ref[...]
    h = _mish(h)
    y = jnp.dot(h.astype(w2_ref.dtype), w2_ref[...],
                preferred_element_type=jnp.float32) + b2_ref[...]
    y = y + x.astype(jnp.float32)
    y = _layer_norm(y, g_ref[...], beta_ref[...], eps)
    o_ref[...] = y.astype(o_ref.dtype)


def _attn_heads_outproj(q, k, v, wo, nheads, scale):
    """sum_h softmax(q_h k_h^T * scale) v_h @ Wo[h] -> f32 [S, D].

    Per-head accumulation through row blocks of Wo: no concat, no per-head
    output writes, only one live [S, D] f32 accumulator.
    """
    S = q.shape[0]
    D = wo.shape[1]
    Dh = q.shape[1] // nheads
    acc = jnp.zeros((S, D), jnp.float32)
    for h in range(nheads):                      # static unroll over heads
        sl = slice(h * Dh, (h + 1) * Dh)
        # contract last dims directly: no k.T relayout before the MXU
        s = jax.lax.dot_general(
            q[:, sl], k[:, sl], (((1,), (1,)), ((), ())),
            preferred_element_type=jnp.float32) * scale
        s = s - jnp.max(s, axis=-1, keepdims=True)
        p = jnp.exp(s)
        p = p * pl.reciprocal(jnp.sum(p, axis=-1, keepdims=True), approx=True)
        ah = jnp.dot(p.astype(v.dtype), v[:, sl],
                     preferred_element_type=jnp.float32)
        acc = acc + jnp.dot(ah.astype(wo.dtype), wo[sl, :],
                            preferred_element_type=jnp.float32)
    return acc


def _self_attn_block_kernel(x_ref, wqkv_ref, bqkv_ref, wo_ref, bo_ref,
                            g_ref, beta_ref, o_ref, *, nheads, scale, eps):
    """One batch: LN(x + out_proj(attention(qkv(x)))); no mask (src_mask==0)."""
    x = x_ref[0]                                  # bf16 [S, D]
    D = x.shape[-1]
    qkv = jnp.dot(x.astype(wqkv_ref.dtype), wqkv_ref[...],
                  preferred_element_type=jnp.float32) + bqkv_ref[...]
    qkv = qkv.astype(jnp.bfloat16)
    acc = _attn_heads_outproj(qkv[:, :D], qkv[:, D:2 * D], qkv[:, 2 * D:],
                              wo_ref[...], nheads, scale)
    y = acc + bo_ref[...] + x.astype(jnp.float32)
    y = _layer_norm(y, g_ref[...], beta_ref[...], eps)
    o_ref[0] = y.astype(o_ref.dtype)


def _cross_attn_block_kernel(x_ref, mem_ref, wq_ref, bq_ref, wkv_ref, bkv_ref,
                             wo_ref, bo_ref, g_ref, beta_ref, o_ref,
                             *, nheads, scale, eps):
    """One batch: LN(x + out_proj(attention(q(x), kv(mem)))); no memory mask."""
    x = x_ref[0]                                  # bf16 [Sq, D]
    mem = mem_ref[0]                              # bf16 [Sk, D]
    D = x.shape[-1]
    q = (jnp.dot(x.astype(wq_ref.dtype), wq_ref[...],
                 preferred_element_type=jnp.float32)
         + bq_ref[...]).astype(jnp.bfloat16)
    kv = (jnp.dot(mem.astype(wkv_ref.dtype), wkv_ref[...],
                  preferred_element_type=jnp.float32)
          + bkv_ref[...]).astype(jnp.bfloat16)
    acc = _attn_heads_outproj(q, kv[:, :D], kv[:, D:], wo_ref[...],
                              nheads, scale)
    y = acc + bo_ref[...] + x.astype(jnp.float32)
    y = _layer_norm(y, g_ref[...], beta_ref[...], eps)
    o_ref[0] = y.astype(o_ref.dtype)


# ----------------------------- kernel wrappers --------------------------------

_PAR = pltpu.CompilerParams(dimension_semantics=("parallel",))


def fused_linear(x, w, b, *, activation=None, residual=None, ln=None,
                 eps=LN_EPS, out_dtype=ACT_DTYPE):
    """y = [LN]([residual +] [mish](x @ w + b)); row-tiled pallas_call.

    b / LN params must already be (1, N) f32 (done once at prep time).
    """
    *lead, K = x.shape
    M = math.prod(lead)
    N = w.shape[1]

    x2 = x.reshape(M, K)
    res2 = residual.reshape(M, N) if residual is not None else None

    max_tm = _max_row_tile()
    tm = _pick_tm(M, max_tm)
    M_pad = M
    if tm == 0:
        # Fallback only when M has no clean divisor (never at these shapes).
        tm = min(256, max_tm)
        M_pad = _round_up(M, tm)
        x2 = jnp.pad(x2, ((0, M_pad - M), (0, 0)))
        if res2 is not None:
            res2 = jnp.pad(res2, ((0, M_pad - M), (0, 0)))

    operands = [x2, w, b]
    in_specs = [
        pl.BlockSpec((tm, K), lambda i: (i, 0)),
        pl.BlockSpec((K, N), lambda i: (0, 0)),      # resident weight
        pl.BlockSpec((1, N), lambda i: (0, 0)),
    ]
    if res2 is not None:
        operands.append(res2)
        in_specs.append(pl.BlockSpec((tm, N), lambda i: (i, 0)))
    if ln is not None:
        g, beta = ln
        operands += [g, beta]
        in_specs += [pl.BlockSpec((1, N), lambda i: (0, 0)),
                     pl.BlockSpec((1, N), lambda i: (0, 0))]

    out = pl.pallas_call(
        functools.partial(_fused_linear_kernel, activation=activation,
                          has_residual=residual is not None,
                          has_ln=ln is not None, eps=eps),
        grid=(M_pad // tm,),
        in_specs=in_specs,
        out_specs=pl.BlockSpec((tm, N), lambda i: (i, 0)),
        out_shape=jax.ShapeDtypeStruct((M_pad, N), out_dtype),
        compiler_params=_PAR,
    )(*operands)

    if M_pad != M:
        out = out[:M]
    return out.reshape(*lead, N)


def ffn_block(x, w1, b1, w2, b2, ln_g, ln_b, *, eps=LN_EPS):
    """LN(x + mish(x@w1+b1)@w2 + b2) in one pallas_call, row-tiled."""
    *lead, D = x.shape
    M = math.prod(lead)
    H = w1.shape[1]
    x2 = x.reshape(M, D)

    max_tm = _max_row_tile()
    tm = _pick_tm(M, max_tm)
    M_pad = M
    if tm == 0:
        tm = min(256, max_tm)
        M_pad = _round_up(M, tm)
        x2 = jnp.pad(x2, ((0, M_pad - M), (0, 0)))

    out = pl.pallas_call(
        functools.partial(_ffn_kernel, eps=eps),
        grid=(M_pad // tm,),
        in_specs=[
            pl.BlockSpec((tm, D), lambda i: (i, 0)),
            pl.BlockSpec((D, H), lambda i: (0, 0)),
            pl.BlockSpec((1, H), lambda i: (0, 0)),
            pl.BlockSpec((H, D), lambda i: (0, 0)),
            pl.BlockSpec((1, D), lambda i: (0, 0)),
            pl.BlockSpec((1, D), lambda i: (0, 0)),
            pl.BlockSpec((1, D), lambda i: (0, 0)),
        ],
        out_specs=pl.BlockSpec((tm, D), lambda i: (i, 0)),
        out_shape=jax.ShapeDtypeStruct((M_pad, D), ACT_DTYPE),
        compiler_params=_PAR,
    )(x2, w1, b1, w2, b2, ln_g, ln_b)

    if M_pad != M:
        out = out[:M]
    return out.reshape(*lead, D)


def self_attention_block(x, p, nheads, *, eps=LN_EPS):
    B, S, D = x.shape
    scale = 1.0 / math.sqrt(D // nheads)
    return pl.pallas_call(
        functools.partial(_self_attn_block_kernel, nheads=nheads, scale=scale,
                          eps=eps),
        grid=(B,),
        in_specs=[
            pl.BlockSpec((1, S, D), lambda b: (b, 0, 0)),
            pl.BlockSpec((D, 3 * D), lambda b: (0, 0)),
            pl.BlockSpec((1, 3 * D), lambda b: (0, 0)),
            pl.BlockSpec((D, D), lambda b: (0, 0)),
            pl.BlockSpec((1, D), lambda b: (0, 0)),
            pl.BlockSpec((1, D), lambda b: (0, 0)),
            pl.BlockSpec((1, D), lambda b: (0, 0)),
        ],
        out_specs=pl.BlockSpec((1, S, D), lambda b: (b, 0, 0)),
        out_shape=jax.ShapeDtypeStruct((B, S, D), ACT_DTYPE),
        compiler_params=_PAR,
    )(x, p["w_qkv"], p["b_qkv"], p["wo"], p["bo"], p["ln1_g"], p["ln1_b"])


def cross_attention_block(x, mem, p, nheads, *, eps=LN_EPS):
    B, Sq, D = x.shape
    Sk = mem.shape[1]
    scale = 1.0 / math.sqrt(D // nheads)
    return pl.pallas_call(
        functools.partial(_cross_attn_block_kernel, nheads=nheads, scale=scale,
                          eps=eps),
        grid=(B,),
        in_specs=[
            pl.BlockSpec((1, Sq, D), lambda b: (b, 0, 0)),
            pl.BlockSpec((1, Sk, D), lambda b: (b, 0, 0)),
            pl.BlockSpec((D, D), lambda b: (0, 0)),
            pl.BlockSpec((1, D), lambda b: (0, 0)),
            pl.BlockSpec((D, 2 * D), lambda b: (0, 0)),
            pl.BlockSpec((1, 2 * D), lambda b: (0, 0)),
            pl.BlockSpec((D, D), lambda b: (0, 0)),
            pl.BlockSpec((1, D), lambda b: (0, 0)),
            pl.BlockSpec((1, D), lambda b: (0, 0)),
            pl.BlockSpec((1, D), lambda b: (0, 0)),
        ],
        out_specs=pl.BlockSpec((1, Sq, D), lambda b: (b, 0, 0)),
        out_shape=jax.ShapeDtypeStruct((B, Sq, D), ACT_DTYPE),
        compiler_params=_PAR,
    )(x, mem, p["wq"], p["bq"], p["w_kv"], p["b_kv"],
      p["wo"], p["bo"], p["ln2_g"], p["ln2_b"])


# --------------------------- transformer layers -----------------------------


def encoder_layer(x, p, nheads):
    # post-norm: x = LN1(x + SA(x)); x = LN2(x + FF(x)). src_mask == 0 -> none.
    x = self_attention_block(x, p, nheads)
    x = ffn_block(x, p["w1"], p["b1"], p["w2"], p["b2"],
                  p["ln2_g"], p["ln2_b"])
    return x


def decoder_layer(x, mem, p, nheads):
    # Diagonal-only tgt_mask => SA(x) == out_proj(v_proj(x)); wv@wo composed at
    # prep time so the block is ONE fused linear + residual + LN kernel.
    x = fused_linear(x, p["w_sa"], p["b_sa"], residual=x,
                     ln=(p["ln1_g"], p["ln1_b"]))
    x = cross_attention_block(x, mem, p, nheads)
    x = ffn_block(x, p["w1"], p["b1"], p["w2"], p["b2"],
                  p["ln3_g"], p["ln3_b"])
    return x


# ------------------------------ TabPFN forward ------------------------------


def tab_pfn_forward(params, x_train, y_train, x_test, *, nheads, nb_class):
    # TODO(synk): DataAndLabelEncoder / DataEncoder definitions are not in the
    # given source; modeled as (x ++ Embedding(y)) -> Linear and x -> Linear,
    # each followed by the nn.Mish + nn.LayerNorm of the Sequential wrappers
    # (Mish + LN fused into the linear's epilogue here).
    y_emb = jnp.take(params["enc_lbl"]["y_emb"], y_train, axis=0)  # (B, S, F)
    tr = jnp.concatenate([x_train, y_emb], axis=-1).astype(ACT_DTYPE)
    mem = fused_linear(tr, params["enc_lbl"]["w"], params["enc_lbl"]["b"],
                       activation="mish",
                       ln=(params["enc_lbl"]["ln_g"], params["enc_lbl"]["ln_b"]))
    out = fused_linear(x_test.astype(ACT_DTYPE),
                       params["enc_dat"]["w"], params["enc_dat"]["b"],
                       activation="mish",
                       ln=(params["enc_dat"]["ln_g"], params["enc_dat"]["ln_b"]))

    for lp in params["enc_layers"]:
        mem = encoder_layer(mem, lp, nheads)
    for lp in params["dec_layers"]:
        out = decoder_layer(out, mem, lp, nheads)

    logits = fused_linear(out, params["to_class"]["w"], params["to_class"]["b"],
                          out_dtype=jnp.float32)
    return logits[..., :nb_class]        # drop the 128-lane padding, once


# --------------------------- parameter preparation ---------------------------


def prepare_params(raw, *, weight_dtype=jnp.bfloat16):
    """One-time fusion + layout + dtype cast (run once, outside jit).

    * QKV / KV projection weights concatenated into single matmuls.
    * Decoder self-attn (diag-only mask) composed into one weight wv@wo.
    * Matmul weights cast to bf16 once; biases / LN params stored as (1,N) f32.
    * to_class output dim padded to a multiple of 128 lanes (unmasked stores).
    """
    def cvt(w):
        return w.astype(weight_dtype)

    def row(v):
        return v.reshape(1, -1).astype(jnp.float32)

    enc_layers = []
    for lp in raw["enc_layers"]:
        sa = lp["sa"]
        enc_layers.append({
            "w_qkv": cvt(jnp.concatenate([sa["wq"], sa["wk"], sa["wv"]], axis=1)),
            "b_qkv": row(jnp.concatenate([sa["bq"], sa["bk"], sa["bv"]])),
            "wo": cvt(sa["wo"]), "bo": row(sa["bo"]),
            "w1": cvt(lp["w1"]), "b1": row(lp["b1"]),
            "w2": cvt(lp["w2"]), "b2": row(lp["b2"]),
            "ln1_g": row(lp["ln1_g"]), "ln1_b": row(lp["ln1_b"]),
            "ln2_g": row(lp["ln2_g"]), "ln2_b": row(lp["ln2_b"]),
        })

    dec_layers = []
    for lp in raw["dec_layers"]:
        sa, ca = lp["sa"], lp["ca"]
        w_sa = sa["wv"] @ sa["wo"]                   # exact algebra, f32
        b_sa = sa["bv"] @ sa["wo"] + sa["bo"]
        dec_layers.append({
            "w_sa": cvt(w_sa), "b_sa": row(b_sa),
            "wq": cvt(ca["wq"]), "bq": row(ca["bq"]),
            "w_kv": cvt(jnp.concatenate([ca["wk"], ca["wv"]], axis=1)),
            "b_kv": row(jnp.concatenate([ca["bk"], ca["bv"]])),
            "wo": cvt(ca["wo"]), "bo": row(ca["bo"]),
            "w1": cvt(lp["w1"]), "b1": row(lp["b1"]),
            "w2": cvt(lp["w2"]), "b2": row(lp["b2"]),
            "ln1_g": row(lp["ln1_g"]), "ln1_b": row(lp["ln1_b"]),
            "ln2_g": row(lp["ln2_g"]), "ln2_b": row(lp["ln2_b"]),
            "ln3_g": row(lp["ln3_g"]), "ln3_b": row(lp["ln3_b"]),
        })

    C = raw["to_class"]["w"].shape[1]
    C_pad = _round_up(max(C, 128), 128)
    w_cls = jnp.pad(raw["to_class"]["w"], ((0, 0), (0, C_pad - C)))
    b_cls = jnp.pad(raw["to_class"]["b"], ((0, C_pad - C),))

    return {
        "enc_lbl": {
            "y_emb": raw["enc_lbl"]["y_emb"],
            "w": cvt(raw["enc_lbl"]["w"]), "b": row(raw["enc_lbl"]["b"]),
            "ln_g": row(raw["enc_lbl"]["ln_g"]), "ln_b": row(raw["enc_lbl"]["ln_b"]),
        },
        "enc_dat": {
            "w": cvt(raw["enc_dat"]["w"]), "b": row(raw["enc_dat"]["b"]),
            "ln_g": row(raw["enc_dat"]["ln_g"]), "ln_b": row(raw["enc_dat"]["ln_b"]),
        },
        "enc_layers": enc_layers,
        "dec_layers": dec_layers,
        "to_class": {"w": cvt(w_cls), "b": row(b_cls)},
    }


# --------------------------- deterministic params ---------------------------


def init_params(key, max_features, max_nb_class, ppd_dim, ppd_hidden_dim,
                num_layers):
    keys = iter(jax.random.split(key, 512))

    def w_init(shape, scale=0.05):
        return scale * jax.random.normal(next(keys), shape, jnp.float32)

    def zeros(shape):
        return jnp.zeros(shape, jnp.float32)

    def ones(shape):
        return jnp.ones(shape, jnp.float32)

    def mha_params(d):
        return {
            "wq": w_init((d, d)), "bq": zeros((d,)),
            "wk": w_init((d, d)), "bk": zeros((d,)),
            "wv": w_init((d, d)), "bv": zeros((d,)),
            "wo": w_init((d, d)), "bo": zeros((d,)),
        }

    def enc_layer_params(d, h):
        return {
            "sa": mha_params(d),
            "w1": w_init((d, h)), "b1": zeros((h,)),
            "w2": w_init((h, d)), "b2": zeros((d,)),
            "ln1_g": ones((d,)), "ln1_b": zeros((d,)),
            "ln2_g": ones((d,)), "ln2_b": zeros((d,)),
        }

    def dec_layer_params(d, h):
        return {
            "sa": mha_params(d),
            "ca": mha_params(d),
            "w1": w_init((d, h)), "b1": zeros((h,)),
            "w2": w_init((h, d)), "b2": zeros((d,)),
            "ln1_g": ones((d,)), "ln1_b": zeros((d,)),
            "ln2_g": ones((d,)), "ln2_b": zeros((d,)),
            "ln3_g": ones((d,)), "ln3_b": zeros((d,)),
        }

    F, C, D, H = max_features, max_nb_class, ppd_dim, ppd_hidden_dim
    return {
        "enc_lbl": {
            "y_emb": w_init((C, F), scale=0.5),
            "w": w_init((2 * F, D)), "b": zeros((D,)),
            "ln_g": ones((D,)), "ln_b": zeros((D,)),
        },
        "enc_dat": {
            "w": w_init((F, D)), "b": zeros((D,)),
            "ln_g": ones((D,)), "ln_b": zeros((D,)),
        },
        "enc_layers": [enc_layer_params(D, H) for _ in range(num_layers)],
        "dec_layers": [dec_layer_params(D, H) for _ in range(num_layers)],
        "to_class": {"w": w_init((D, C)), "b": zeros((C,))},
    }


# ----------------------------------- main -----------------------------------


if __name__ == "__main__":
    max_features = 8
    max_nb_class = 4
    ppd_dim = 32
    ppd_hidden_dim = 64
    nheads = 4
    num_layers = 2

    B, S_tr, S_te = 2, 8, 8

    key = jax.random.PRNGKey(0)
    k_x, k_y, k_t, k_p = jax.random.split(key, 4)
    x_train = jax.random.normal(k_x, (B, S_tr, max_features), jnp.float32)
    y_train = jax.random.randint(k_y, (B, S_tr), 0, max_nb_class, dtype=jnp.int32)
    x_test = jax.random.normal(k_t, (B, S_te, max_features), jnp.float32)

    raw_params = init_params(k_p, max_features, max_nb_class, ppd_dim,
                             ppd_hidden_dim, num_layers)
    params = prepare_params(raw_params)   # one-time fusion + bf16 weight cast

    fwd = jax.jit(functools.partial(tab_pfn_forward, nheads=nheads,
                                    nb_class=max_nb_class))
    out = fwd(params, x_train, y_train, x_test)
    jax.block_until_ready(out)

    assert out.shape == (B, S_te, max_nb_class), out.shape
    assert bool(jnp.all(jnp.isfinite(out)))
    print("KERNEL_OK")
</pallas_src>

<mosaic_0001>
module attributes {stable_mosaic.version = 11 : i64} {
  func.func @_fused_linear_kernel(%arg0: i32, %arg1: memref<8x16xbf16, #tpu.memory_space<vmem>>, %arg2: memref<16x32xbf16, #tpu.memory_space<vmem>>, %arg3: memref<1x32xf32, #tpu.memory_space<vmem>>, %arg4: memref<1x32xf32, #tpu.memory_space<vmem>>, %arg5: memref<1x32xf32, #tpu.memory_space<vmem>>, %arg6: memref<8x32xbf16, #tpu.memory_space<vmem>>) attributes {dimension_semantics = [#tpu.dimension_semantics<parallel>], iteration_bounds = array<i64: 2>, scalar_prefetch = 0 : i64, scratch_operands = 0 : i64, tpu.core_type = #tpu.core_type<tc>, window_params = [{transform_indices = @transform_0, window_bounds = array<i64: 8, 16>}, {pipeline_mode = #tpu.pipeline_mode<synchronous>, transform_indices = @transform_1, window_bounds = array<i64: 16, 32>}, {pipeline_mode = #tpu.pipeline_mode<synchronous>, transform_indices = @transform_2, window_bounds = array<i64: 1, 32>}, {pipeline_mode = #tpu.pipeline_mode<synchronous>, transform_indices = @transform_3, window_bounds = array<i64: 1, 32>}, {pipeline_mode = #tpu.pipeline_mode<synchronous>, transform_indices = @transform_4, window_bounds = array<i64: 1, 32>}, {transform_indices = @transform_5, window_bounds = array<i64: 8, 32>}]} {
    %c0 = arith.constant 0 : index
    %c0_0 = arith.constant 0 : index
    %0 = vector.load %arg1[%c0, %c0_0] : memref<8x16xbf16, #tpu.memory_space<vmem>>, vector<8x16xbf16>
    %c0_1 = arith.constant 0 : index
    %c0_2 = arith.constant 0 : index
    %1 = vector.load %arg2[%c0_1, %c0_2] : memref<16x32xbf16, #tpu.memory_space<vmem>>, vector<16x32xbf16>
    %cst = arith.constant dense<0.000000e+00> : vector<8x32xf32>
    %2 = tpu.matmul %0, %1, %cst {dimension_numbers = #tpu.dot_dimension_numbers<[1], [0], [0], [1], [0, 0, 1, 1], [], []>} : vector<8x16xbf16>, vector<16x32xbf16>, vector<8x32xf32> -> vector<8x32xf32>
    %c0_3 = arith.constant 0 : index
    %c0_4 = arith.constant 0 : index
    %3 = vector.load %arg3[%c0_3, %c0_4] : memref<1x32xf32, #tpu.memory_space<vmem>>, vector<1x32xf32>
    %4 = vector.broadcast %3 : vector<1x32xf32> to vector<8x32xf32>
    %5 = arith.addf %2, %4 : vector<8x32xf32>
    %cst_5 = arith.constant 2.000000e+01 : f32
    %6 = vector.broadcast %cst_5 : f32 to vector<8x32xf32>
    %7 = arith.minimumf %5, %6 : vector<8x32xf32>
    %8 = math.exp %7 : vector<8x32xf32>
    %cst_6 = arith.constant 1.000000e+00 : f32
    %9 = vector.broadcast %cst_6 : f32 to vector<8x32xf32>
    %10 = arith.addf %9, %8 : vector<8x32xf32>
    %11 = arith.mulf %10, %10 : vector<8x32xf32>
    %cst_7 = arith.constant 1.000000e+00 : f32
    %12 = vector.broadcast %cst_7 : f32 to vector<8x32xf32>
    %13 = arith.subf %11, %12 : vector<8x32xf32>
    %14 = arith.mulf %5, %13 : vector<8x32xf32>
    %cst_8 = arith.constant 1.000000e+00 : f32
    %15 = vector.broadcast %cst_8 : f32 to vector<8x32xf32>
    %16 = arith.addf %11, %15 : vector<8x32xf32>
    %17 = tpu.reciprocal %16 {approx = true} : vector<8x32xf32> -> vector<8x32xf32>
    %18 = arith.mulf %14, %17 : vector<8x32xf32>
    %c0_9 = arith.constant 0 : index
    %c0_10 = arith.constant 0 : index
    %19 = vector.load %arg4[%c0_9, %c0_10] : memref<1x32xf32, #tpu.memory_space<vmem>>, vector<1x32xf32>
    %c0_11 = arith.constant 0 : index
    %c0_12 = arith.constant 0 : index
    %20 = vector.load %arg5[%c0_11, %c0_12] : memref<1x32xf32, #tpu.memory_space<vmem>>, vector<1x32xf32>
    %cst_13 = arith.constant dense<0.000000e+00> : vector<8xf32>
    %21 = vector.multi_reduction <add>, %18, %cst_13 [1] : vector<8x32xf32> to vector<8xf32>
    %22 = vector.shape_cast %21 : vector<8xf32> to vector<8x1xf32>
    %cst_14 = arith.constant 3.200000e+01 : f32
    %23 = vector.broadcast %cst_14 : f32 to vector<8x1xf32>
    %24 = arith.divf %22, %23 : vector<8x1xf32>
    %25 = vector.broadcast %24 : vector<8x1xf32> to vector<8x32xf32>
    %26 = arith.subf %18, %25 : vector<8x32xf32>
    %27 = arith.mulf %26, %26 : vector<8x32xf32>
    %cst_15 = arith.constant dense<0.000000e+00> : vector<8xf32>
    %28 = vector.multi_reduction <add>, %27, %cst_15 [1] : vector<8x32xf32> to vector<8xf32>
    %29 = vector.shape_cast %28 : vector<8xf32> to vector<8x1xf32>
    %cst_16 = arith.constant 3.200000e+01 : f32
    %30 = vector.broadcast %cst_16 : f32 to vector<8x1xf32>
    %31 = arith.divf %29, %30 : vector<8x1xf32>
    %cst_17 = arith.constant 9.99999974E-6 : f32
    %32 = vector.broadcast %cst_17 : f32 to vector<8x1xf32>
    %33 = arith.addf %31, %32 : vector<8x1xf32>
    %34 = math.rsqrt %33 : vector<8x1xf32>
    %35 = vector.broadcast %34 : vector<8x1xf32> to vector<8x32xf32>
    %36 = arith.mulf %26, %35 : vector<8x32xf32>
    %37 = vector.broadcast %19 : vector<1x32xf32> to vector<8x32xf32>
    %38 = arith.mulf %36, %37 : vector<8x32xf32>
    %39 = vector.broadcast %20 : vector<1x32xf32> to vector<8x32xf32>
    %40 = arith.addf %38, %39 : vector<8x32xf32>
    %41 = arith.truncf %40 : vector<8x32xf32> to vector<8x32xbf16>
    %c0_18 = arith.constant 0 : index
    %c0_19 = arith.constant 0 : index
    %42 = vector.load %arg6[%c0_18, %c0_19] : memref<8x32xbf16, #tpu.memory_space<vmem>>, vector<8x32xbf16>
    tpu.vector_store %arg6[%c0_18, %c0_19], %41 {strides = array<i32>} : memref<8x32xbf16, #tpu.memory_space<vmem>>, vector<8x32xbf16>,
    return
  }
  func.func @transform_0(%arg0: i32) -> (i32, i32) {
    %c0_i32 = arith.constant 0 : i32
    %c0_i32_0 = arith.constant 0 : i32
    return %arg0, %c0_i32 : i32, i32
  }
  func.func @transform_1(%arg0: i32) -> (i32, i32) {
    %c0_i32 = arith.constant 0 : i32
    %c0_i32_0 = arith.constant 0 : i32
    %c0_i32_1 = arith.constant 0 : i32
    return %c0_i32, %c0_i32_0 : i32, i32
  }
  func.func @transform_2(%arg0: i32) -> (i32, i32) {
    %c0_i32 = arith.constant 0 : i32
    %c0_i32_0 = arith.constant 0 : i32
    %c0_i32_1 = arith.constant 0 : i32
    return %c0_i32, %c0_i32_0 : i32, i32
  }
  func.func @transform_3(%arg0: i32) -> (i32, i32) {
    %c0_i32 = arith.constant 0 : i32
    %c0_i32_0 = arith.constant 0 : i32
    %c0_i32_1 = arith.constant 0 : i32
    return %c0_i32, %c0_i32_0 : i32, i32
  }
  func.func @transform_4(%arg0: i32) -> (i32, i32) {
    %c0_i32 = arith.constant 0 : i32
    %c0_i32_0 = arith.constant 0 : i32
    %c0_i32_1 = arith.constant 0 : i32
    return %c0_i32, %c0_i32_0 : i32, i32
  }
  func.func @transform_5(%arg0: i32) -> (i32, i32) {
    %c0_i32 = arith.constant 0 : i32
    %c0_i32_0 = arith.constant 0 : i32
    return %arg0, %c0_i32 : i32, i32
  }
}

module attributes {stable_mosaic.version = 11 : i64} {
  func.func @_ffn_kernel(%arg0: i32, %arg1: memref<8x32xbf16, #tpu.memory_space<vmem>>, %arg2: memref<32x64xbf16, #tpu.memory_space<vmem>>, %arg3: memref<1x64xf32, #tpu.memory_space<vmem>>, %arg4: memref<64x32xbf16, #tpu.memory_space<vmem>>, %arg5: memref<1x32xf32, #tpu.memory_space<vmem>>, %arg6: memref<1x32xf32, #tpu.memory_space<vmem>>, %arg7: memref<1x32xf32, #tpu.memory_space<vmem>>, %arg8: memref<8x32xbf16, #tpu.memory_space<vmem>>) attributes {dimension_semantics = [#tpu.dimension_semantics<parallel>], iteration_bounds = array<i64: 2>, scalar_prefetch = 0 : i64, scratch_operands = 0 : i64, tpu.core_type = #tpu.core_type<tc>, window_params = [{transform_indices = @transform_0, window_bounds = array<i64: 8, 32>}, {pipeline_mode = #tpu.pipeline_mode<synchronous>, transform_indices = @transform_1, window_bounds = array<i64: 32, 64>}, {pipeline_mode = #tpu.pipeline_mode<synchronous>, transform_indices = @transform_2, window_bounds = array<i64: 1, 64>}, {pipeline_mode = #tpu.pipeline_mode<synchronous>, transform_indices = @transform_3, window_bounds = array<i64: 64, 32>}, {pipeline_mode = #tpu.pipeline_mode<synchronous>, transform_indices = @transform_4, window_bounds = array<i64: 1, 32>}, {pipeline_mode = #tpu.pipeline_mode<synchronous>, transform_indices = @transform_5, window_bounds = array<i64: 1, 32>}, {pipeline_mode = #tpu.pipeline_mode<synchronous>, transform_indices = @transform_6, window_bounds = array<i64: 1, 32>}, {transform_indices = @transform_7, window_bounds = array<i64: 8, 32>}]} {
    %c0 = arith.constant 0 : index
    %c0_0 = arith.constant 0 : index
    %0 = vector.load %arg1[%c0, %c0_0] : memref<8x32xbf16, #tpu.memory_space<vmem>>, vector<8x32xbf16>
    %c0_1 = arith.constant 0 : index
    %c0_2 = arith.constant 0 : index
    %1 = vector.load %arg2[%c0_1, %c0_2] : memref<32x64xbf16, #tpu.memory_space<vmem>>, vector<32x64xbf16>
    %cst = arith.constant dense<0.000000e+00> : vector<8x64xf32>
    %2 = tpu.matmul %0, %1, %cst {dimension_numbers = #tpu.dot_dimension_numbers<[1], [0], [0], [1], [0, 0, 1, 1], [], []>} : vector<8x32xbf16>, vector<32x64xbf16>, vector<8x64xf32> -> vector<8x64xf32>
    %c0_3 = arith.constant 0 : index
    %c0_4 = arith.constant 0 : index
    %3 = vector.load %arg3[%c0_3, %c0_4] : memref<1x64xf32, #tpu.memory_space<vmem>>, vector<1x64xf32>
    %4 = vector.broadcast %3 : vector<1x64xf32> to vector<8x64xf32>
    %5 = arith.addf %2, %4 : vector<8x64xf32>
    %cst_5 = arith.constant 2.000000e+01 : f32
    %6 = vector.broadcast %cst_5 : f32 to vector<8x64xf32>
    %7 = arith.minimumf %5, %6 : vector<8x64xf32>
    %8 = math.exp %7 : vector<8x64xf32>
    %cst_6 = arith.constant 1.000000e+00 : f32
    %9 = vector.broadcast %cst_6 : f32 to vector<8x64xf32>
    %10 = arith.addf %9, %8 : vector<8x64xf32>
    %11 = arith.mulf %10, %10 : vector<8x64xf32>
    %cst_7 = arith.constant 1.000000e+00 : f32
    %12 = vector.broadcast %cst_7 : f32 to vector<8x64xf32>
    %13 = arith.subf %11, %12 : vector<8x64xf32>
    %14 = arith.mulf %5, %13 : vector<8x64xf32>
    %cst_8 = arith.constant 1.000000e+00 : f32
    %15 = vector.broadcast %cst_8 : f32 to vector<8x64xf32>
    %16 = arith.addf %11, %15 : vector<8x64xf32>
    %17 = tpu.reciprocal %16 {approx = true} : vector<8x64xf32> -> vector<8x64xf32>
    %18 = arith.mulf %14, %17 : vector<8x64xf32>
    %19 = arith.truncf %18 : vector<8x64xf32> to vector<8x64xbf16>
    %c0_9 = arith.constant 0 : index
    %c0_10 = arith.constant 0 : index
    %20 = vector.load %arg4[%c0_9, %c0_10] : memref<64x32xbf16, #tpu.memory_space<vmem>>, vector<64x32xbf16>
    %cst_11 = arith.constant dense<0.000000e+00> : vector<8x32xf32>
    %21 = tpu.matmul %19, %20, %cst_11 {dimension_numbers = #tpu.dot_dimension_numbers<[1], [0], [0], [1], [0, 0, 1, 1], [], []>} : vector<8x64xbf16>, vector<64x32xbf16>, vector<8x32xf32> -> vector<8x32xf32>
    %c0_12 = arith.constant 0 : index
    %c0_13 = arith.constant 0 : index
    %22 = vector.load %arg5[%c0_12, %c0_13] : memref<1x32xf32, #tpu.memory_space<vmem>>, vector<1x32xf32>
    %23 = vector.broadcast %22 : vector<1x32xf32> to vector<8x32xf32>
    %24 = arith.addf %21, %23 : vector<8x32xf32>
    %25 = arith.extf %0 : vector<8x32xbf16> to vector<8x32xf32>
    %26 = arith.addf %24, %25 : vector<8x32xf32>
    %c0_14 = arith.constant 0 : index
    %c0_15 = arith.constant 0 : index
    %27 = vector.load %arg6[%c0_14, %c0_15] : memref<1x32xf32, #tpu.memory_space<vmem>>, vector<1x32xf32>
    %c0_16 = arith.constant 0 : index
    %c0_17 = arith.constant 0 : index
    %28 = vector.load %arg7[%c0_16, %c0_17] : memref<1x32xf32, #tpu.memory_space<vmem>>, vector<1x32xf32>
    %cst_18 = arith.constant dense<0.000000e+00> : vector<8xf32>
    %29 = vector.multi_reduction <add>, %26, %cst_18 [1] : vector<8x32xf32> to vector<8xf32>
    %30 = vector.shape_cast %29 : vector<8xf32> to vector<8x1xf32>
    %cst_19 = arith.constant 3.200000e+01 : f32
    %31 = vector.broadcast %cst_19 : f32 to vector<8x1xf32>
    %32 = arith.divf %30, %31 : vector<8x1xf32>
    %33 = vector.broadcast %32 : vector<8x1xf32> to vector<8x32xf32>
    %34 = arith.subf %26, %33 : vector<8x32xf32>
    %35 = arith.mulf %34, %34 : vector<8x32xf32>
    %cst_20 = arith.constant dense<0.000000e+00> : vector<8xf32>
    %36 = vector.multi_reduction <add>, %35, %cst_20 [1] : vector<8x32xf32> to vector<8xf32>
    %37 = vector.shape_cast %36 : vector<8xf32> to vector<8x1xf32>
    %cst_21 = arith.constant 3.200000e+01 : f32
    %38 = vector.broadcast %cst_21 : f32 to vector<8x1xf32>
    %39 = arith.divf %37, %38 : vector<8x1xf32>
    %cst_22 = arith.constant 9.99999974E-6 : f32
    %40 = vector.broadcast %cst_22 : f32 to vector<8x1xf32>
    %41 = arith.addf %39, %40 : vector<8x1xf32>
    %42 = math.rsqrt %41 : vector<8x1xf32>
    %43 = vector.broadcast %42 : vector<8x1xf32> to vector<8x32xf32>
    %44 = arith.mulf %34, %43 : vector<8x32xf32>
    %45 = vector.broadcast %27 : vector<1x32xf32> to vector<8x32xf32>
    %46 = arith.mulf %44, %45 : vector<8x32xf32>
    %47 = vector.broadcast %28 : vector<1x32xf32> to vector<8x32xf32>
    %48 = arith.addf %46, %47 : vector<8x32xf32>
    %49 = arith.truncf %48 : vector<8x32xf32> to vector<8x32xbf16>
    %c0_23 = arith.constant 0 : index
    %c0_24 = arith.constant 0 : index
    %50 = vector.load %arg8[%c0_23, %c0_24] : memref<8x32xbf16, #tpu.memory_space<vmem>>, vector<8x32xbf16>
    tpu.vector_store %arg8[%c0_23, %c0_24], %49 {strides = array<i32>} : memref<8x32xbf16, #tpu.memory_space<vmem>>, vector<8x32xbf16>,
    return
  }
  func.func @transform_0(%arg0: i32) -> (i32, i32) {
    %c0_i32 = arith.constant 0 : i32
    %c0_i32_0 = arith.constant 0 : i32
    return %arg0, %c0_i32 : i32, i32
  }
  func.func @transform_1(%arg0: i32) -> (i32, i32) {
    %c0_i32 = arith.constant 0 : i32
    %c0_i32_0 = arith.constant 0 : i32
    %c0_i32_1 = arith.constant 0 : i32
    return %c0_i32, %c0_i32_0 : i32, i32
  }
  func.func @transform_2(%arg0: i32) -> (i32, i32) {
    %c0_i32 = arith.constant 0 : i32
    %c0_i32_0 = arith.constant 0 : i32
    %c0_i32_1 = arith.constant 0 : i32
    return %c0_i32, %c0_i32_0 : i32, i32
  }
  func.func @transform_3(%arg0: i32) -> (i32, i32) {
    %c0_i32 = arith.constant 0 : i32
    %c0_i32_0 = arith.constant 0 : i32
    %c0_i32_1 = arith.constant 0 : i32
    return %c0_i32, %c0_i32_0 : i32, i32
  }
  func.func @transform_4(%arg0: i32) -> (i32, i32) {
    %c0_i32 = arith.constant 0 : i32
    %c0_i32_0 = arith.constant 0 : i32
    %c0_i32_1 = arith.constant 0 : i32
    return %c0_i32, %c0_i32_0 : i32, i32
  }
  func.func @transform_5(%arg0: i32) -> (i32, i32) {
    %c0_i32 = arith.constant 0 : i32
    %c0_i32_0 = arith.constant 0 : i32
    %c0_i32_1 = arith.constant 0 : i32
    return %c0_i32, %c0_i32_0 : i32, i32
  }
  func.func @transform_6(%arg0: i32) -> (i32, i32) {
    %c0_i32 = arith.constant 0 : i32
    %c0_i32_0 = arith.constant 0 : i32
    %c0_i32_1 = arith.constant 0 : i32
    return %c0_i32, %c0_i32_0 : i32, i32
  }
  func.func @transform_7(%arg0: i32) -> (i32, i32) {
    %c0_i32 = arith.constant 0 : i32
    %c0_i32_0 = arith.constant 0 : i32
    return %arg0, %c0_i32 : i32, i32
  }
}

module attributes {stable_mosaic.version = 11 : i64} {
  func.func @_fused_linear_kernel(%arg0: i32, %arg1: memref<8x8xbf16, #tpu.memory_space<vmem>>, %arg2: memref<8x32xbf16, #tpu.memory_space<vmem>>, %arg3: memref<1x32xf32, #tpu.memory_space<vmem>>, %arg4: memref<1x32xf32, #tpu.memory_space<vmem>>, %arg5: memref<1x32xf32, #tpu.memory_space<vmem>>, %arg6: memref<8x32xbf16, #tpu.memory_space<vmem>>) attributes {dimension_semantics = [#tpu.dimension_semantics<parallel>], iteration_bounds = array<i64: 2>, scalar_prefetch = 0 : i64, scratch_operands = 0 : i64, tpu.core_type = #tpu.core_type<tc>, window_params = [{transform_indices = @transform_0, window_bounds = array<i64: 8, 8>}, {pipeline_mode = #tpu.pipeline_mode<synchronous>, transform_indices = @transform_1, window_bounds = array<i64: 8, 32>}, {pipeline_mode = #tpu.pipeline_mode<synchronous>, transform_indices = @transform_2, window_bounds = array<i64: 1, 32>}, {pipeline_mode = #tpu.pipeline_mode<synchronous>, transform_indices = @transform_3, window_bounds = array<i64: 1, 32>}, {pipeline_mode = #tpu.pipeline_mode<synchronous>, transform_indices = @transform_4, window_bounds = array<i64: 1, 32>}, {transform_indices = @transform_5, window_bounds = array<i64: 8, 32>}]} {
    %c0 = arith.constant 0 : index
    %c0_0 = arith.constant 0 : index
    %0 = vector.load %arg1[%c0, %c0_0] : memref<8x8xbf16, #tpu.memory_space<vmem>>, vector<8x8xbf16>
    %c0_1 = arith.constant 0 : index
    %c0_2 = arith.constant 0 : index
    %1 = vector.load %arg2[%c0_1, %c0_2] : memref<8x32xbf16, #tpu.memory_space<vmem>>, vector<8x32xbf16>
    %cst = arith.constant dense<0.000000e+00> : vector<8x32xf32>
    %2 = tpu.matmul %0, %1, %cst {dimension_numbers = #tpu.dot_dimension_numbers<[1], [0], [0], [1], [0, 0, 1, 1], [], []>} : vector<8x8xbf16>, vector<8x32xbf16>, vector<8x32xf32> -> vector<8x32xf32>
    %c0_3 = arith.constant 0 : index
    %c0_4 = arith.constant 0 : index
    %3 = vector.load %arg3[%c0_3, %c0_4] : memref<1x32xf32, #tpu.memory_space<vmem>>, vector<1x32xf32>
    %4 = vector.broadcast %3 : vector<1x32xf32> to vector<8x32xf32>
    %5 = arith.addf %2, %4 : vector<8x32xf32>
    %cst_5 = arith.constant 2.000000e+01 : f32
    %6 = vector.broadcast %cst_5 : f32 to vector<8x32xf32>
    %7 = arith.minimumf %5, %6 : vector<8x32xf32>
    %8 = math.exp %7 : vector<8x32xf32>
    %cst_6 = arith.constant 1.000000e+00 : f32
    %9 = vector.broadcast %cst_6 : f32 to vector<8x32xf32>
    %10 = arith.addf %9, %8 : vector<8x32xf32>
    %11 = arith.mulf %10, %10 : vector<8x32xf32>
    %cst_7 = arith.constant 1.000000e+00 : f32
    %12 = vector.broadcast %cst_7 : f32 to vector<8x32xf32>
    %13 = arith.subf %11, %12 : vector<8x32xf32>
    %14 = arith.mulf %5, %13 : vector<8x32xf32>
    %cst_8 = arith.constant 1.000000e+00 : f32
    %15 = vector.broadcast %cst_8 : f32 to vector<8x32xf32>
    %16 = arith.addf %11, %15 : vector<8x32xf32>
    %17 = tpu.reciprocal %16 {approx = true} : vector<8x32xf32> -> vector<8x32xf32>
    %18 = arith.mulf %14, %17 : vector<8x32xf32>
    %c0_9 = arith.constant 0 : index
    %c0_10 = arith.constant 0 : index
    %19 = vector.load %arg4[%c0_9, %c0_10] : memref<1x32xf32, #tpu.memory_space<vmem>>, vector<1x32xf32>
    %c0_11 = arith.constant 0 : index
    %c0_12 = arith.constant 0 : index
    %20 = vector.load %arg5[%c0_11, %c0_12] : memref<1x32xf32, #tpu.memory_space<vmem>>, vector<1x32xf32>
    %cst_13 = arith.constant dense<0.000000e+00> : vector<8xf32>
    %21 = vector.multi_reduction <add>, %18, %cst_13 [1] : vector<8x32xf32> to vector<8xf32>
    %22 = vector.shape_cast %21 : vector<8xf32> to vector<8x1xf32>
    %cst_14 = arith.constant 3.200000e+01 : f32
    %23 = vector.broadcast %cst_14 : f32 to vector<8x1xf32>
    %24 = arith.divf %22, %23 : vector<8x1xf32>
    %25 = vector.broadcast %24 : vector<8x1xf32> to vector<8x32xf32>
    %26 = arith.subf %18, %25 : vector<8x32xf32>
    %27 = arith.mulf %26, %26 : vector<8x32xf32>
    %cst_15 = arith.constant dense<0.000000e+00> : vector<8xf32>
    %28 = vector.multi_reduction <add>, %27, %cst_15 [1] : vector<8x32xf32> to vector<8xf32>
    %29 = vector.shape_cast %28 : vector<8xf32> to vector<8x1xf32>
    %cst_16 = arith.constant 3.200000e+01 : f32
    %30 = vector.broadcast %cst_16 : f32 to vector<8x1xf32>
    %31 = arith.divf %29, %30 : vector<8x1xf32>
    %cst_17 = arith.constant 9.99999974E-6 : f32
    %32 = vector.broadcast %cst_17 : f32 to vector<8x1xf32>
    %33 = arith.addf %31, %32 : vector<8x1xf32>
    %34 = math.rsqrt %33 : vector<8x1xf32>
    %35 = vector.broadcast %34 : vector<8x1xf32> to vector<8x32xf32>
    %36 = arith.mulf %26, %35 : vector<8x32xf32>
    %37 = vector.broadcast %19 : vector<1x32xf32> to vector<8x32xf32>
    %38 = arith.mulf %36, %37 : vector<8x32xf32>
    %39 = vector.broadcast %20 : vector<1x32xf32> to vector<8x32xf32>
    %40 = arith.addf %38, %39 : vector<8x32xf32>
    %41 = arith.truncf %40 : vector<8x32xf32> to vector<8x32xbf16>
    %c0_18 = arith.constant 0 : index
    %c0_19 = arith.constant 0 : index
    %42 = vector.load %arg6[%c0_18, %c0_19] : memref<8x32xbf16, #tpu.memory_space<vmem>>, vector<8x32xbf16>
    tpu.vector_store %arg6[%c0_18, %c0_19], %41 {strides = array<i32>} : memref<8x32xbf16, #tpu.memory_space<vmem>>, vector<8x32xbf16>,
    return
  }
  func.func @transform_0(%arg0: i32) -> (i32, i32) {
    %c0_i32 = arith.constant 0 : i32
    %c0_i32_0 = arith.constant 0 : i32
    return %arg0, %c0_i32 : i32, i32
  }
  func.func @transform_1(%arg0: i32) -> (i32, i32) {
    %c0_i32 = arith.constant 0 : i32
    %c0_i32_0 = arith.constant 0 : i32
    %c0_i32_1 = arith.constant 0 : i32
    return %c0_i32, %c0_i32_0 : i32, i32
  }
  func.func @transform_2(%arg0: i32) -> (i32, i32) {
    %c0_i32 = arith.constant 0 : i32
    %c0_i32_0 = arith.constant 0 : i32
    %c0_i32_1 = arith.constant 0 : i32
    return %c0_i32, %c0_i32_0 : i32, i32
  }
  func.func @transform_3(%arg0: i32) -> (i32, i32) {
    %c0_i32 = arith.constant 0 : i32
    %c0_i32_0 = arith.constant 0 : i32
    %c0_i32_1 = arith.constant 0 : i32
    return %c0_i32, %c0_i32_0 : i32, i32
  }
  func.func @transform_4(%arg0: i32) -> (i32, i32) {
    %c0_i32 = arith.constant 0 : i32
    %c0_i32_0 = arith.constant 0 : i32
    %c0_i32_1 = arith.constant 0 : i32
    return %c0_i32, %c0_i32_0 : i32, i32
  }
  func.func @transform_5(%arg0: i32) -> (i32, i32) {
    %c0_i32 = arith.constant 0 : i32
    %c0_i32_0 = arith.constant 0 : i32
    return %arg0, %c0_i32 : i32, i32
  }
}

module attributes {stable_mosaic.version = 11 : i64} {
  func.func @_self_attn_block_kernel(%arg0: i32, %arg1: memref<1x8x32xbf16, #tpu.memory_space<vmem>>, %arg2: memref<32x96xbf16, #tpu.memory_space<vmem>>, %arg3: memref<1x96xf32, #tpu.memory_space<vmem>>, %arg4: memref<32x32xbf16, #tpu.memory_space<vmem>>, %arg5: memref<1x32xf32, #tpu.memory_space<vmem>>, %arg6: memref<1x32xf32, #tpu.memory_space<vmem>>, %arg7: memref<1x32xf32, #tpu.memory_space<vmem>>, %arg8: memref<1x8x32xbf16, #tpu.memory_space<vmem>>) attributes {dimension_semantics = [#tpu.dimension_semantics<parallel>], iteration_bounds = array<i64: 2>, scalar_prefetch = 0 : i64, scratch_operands = 0 : i64, tpu.core_type = #tpu.core_type<tc>, window_params = [{transform_indices = @transform_0, window_bounds = array<i64: 1, 8, 32>}, {pipeline_mode = #tpu.pipeline_mode<synchronous>, transform_indices = @transform_1, window_bounds = array<i64: 32, 96>}, {pipeline_mode = #tpu.pipeline_mode<synchronous>, transform_indices = @transform_2, window_bounds = array<i64: 1, 96>}, {pipeline_mode = #tpu.pipeline_mode<synchronous>, transform_indices = @transform_3, window_bounds = array<i64: 32, 32>}, {pipeline_mode = #tpu.pipeline_mode<synchronous>, transform_indices = @transform_4, window_bounds = array<i64: 1, 32>}, {pipeline_mode = #tpu.pipeline_mode<synchronous>, transform_indices = @transform_5, window_bounds = array<i64: 1, 32>}, {pipeline_mode = #tpu.pipeline_mode<synchronous>, transform_indices = @transform_6, window_bounds = array<i64: 1, 32>}, {transform_indices = @transform_7, window_bounds = array<i64: 1, 8, 32>}]} {
    %c0 = arith.constant 0 : index
    %c0_0 = arith.constant 0 : index
    %c0_1 = arith.constant 0 : index
    %0 = vector.load %arg1[%c0, %c0_0, %c0_1] : memref<1x8x32xbf16, #tpu.memory_space<vmem>>, vector<1x8x32xbf16>
    %1 = vector.shape_cast %0 : vector<1x8x32xbf16> to vector<8x32xbf16>
    %c0_2 = arith.constant 0 : index
    %c0_3 = arith.constant 0 : index
    %2 = vector.load %arg2[%c0_2, %c0_3] : memref<32x96xbf16, #tpu.memory_space<vmem>>, vector<32x96xbf16>
    %cst = arith.constant dense<0.000000e+00> : vector<8x96xf32>
    %3 = tpu.matmul %1, %2, %cst {dimension_numbers = #tpu.dot_dimension_numbers<[1], [0], [0], [1], [0, 0, 1, 1], [], []>} : vector<8x32xbf16>, vector<32x96xbf16>, vector<8x96xf32> -> vector<8x96xf32>
    %c0_4 = arith.constant 0 : index
    %c0_5 = arith.constant 0 : index
    %4 = vector.load %arg3[%c0_4, %c0_5] : memref<1x96xf32, #tpu.memory_space<vmem>>, vector<1x96xf32>
    %5 = vector.broadcast %4 : vector<1x96xf32> to vector<8x96xf32>
    %6 = arith.addf %3, %5 : vector<8x96xf32>
    %7 = arith.truncf %6 : vector<8x96xf32> to vector<8x96xbf16>
    %8 = vector.extract_strided_slice %7 {offsets = [0, 0], sizes = [8, 32], strides = [1, 1]} : vector<8x96xbf16> to vector<8x32xbf16>
    %9 = vector.extract_strided_slice %7 {offsets = [0, 32], sizes = [8, 32], strides = [1, 1]} : vector<8x96xbf16> to vector<8x32xbf16>
    %10 = vector.extract_strided_slice %7 {offsets = [0, 64], sizes = [8, 32], strides = [1, 1]} : vector<8x96xbf16> to vector<8x32xbf16>
    %c0_6 = arith.constant 0 : index
    %c0_7 = arith.constant 0 : index
    %11 = vector.load %arg4[%c0_6, %c0_7] : memref<32x32xbf16, #tpu.memory_space<vmem>>, vector<32x32xbf16>
    %cst_8 = arith.constant 0.000000e+00 : f32
    %12 = vector.broadcast %cst_8 : f32 to vector<8x32xf32>
    %13 = vector.extract_strided_slice %8 {offsets = [0, 0], sizes = [8, 8], strides = [1, 1]} : vector<8x32xbf16> to vector<8x8xbf16>
    %14 = vector.extract_strided_slice %9 {offsets = [0, 0], sizes = [8, 8], strides = [1, 1]} : vector<8x32xbf16> to vector<8x8xbf16>
    %cst_9 = arith.constant dense<0.000000e+00> : vector<8x8xf32>
    %15 = tpu.matmul %13, %14, %cst_9 {dimension_numbers = #tpu.dot_dimension_numbers<[1], [1], [0], [0], [0, 0, 1, 0], [], []>} : vector<8x8xbf16>, vector<8x8xbf16>, vector<8x8xf32> -> vector<8x8xf32>
    %cst_10 = arith.constant 0.353553385 : f32
    %16 = vector.broadcast %cst_10 : f32 to vector<8x8xf32>
    %17 = arith.mulf %15, %16 : vector<8x8xf32>
    %cst_11 = arith.constant dense<0xFF800000> : vector<8xf32>
    %18 = vector.multi_reduction <maximumf>, %17, %cst_11 [1] : vector<8x8xf32> to vector<8xf32>
    %19 = vector.shape_cast %18 : vector<8xf32> to vector<8x1xf32>
    %20 = vector.broadcast %19 : vector<8x1xf32> to vector<8x8xf32>
    %21 = arith.subf %17, %20 : vector<8x8xf32>
    %22 = math.exp %21 : vector<8x8xf32>
    %cst_12 = arith.constant dense<0.000000e+00> : vector<8xf32>
    %23 = vector.multi_reduction <add>, %22, %cst_12 [1] : vector<8x8xf32> to vector<8xf32>
    %24 = vector.shape_cast %23 : vector<8xf32> to vector<8x1xf32>
    %25 = tpu.reciprocal %24 {approx = true} : vector<8x1xf32> -> vector<8x1xf32>
    %26 = vector.broadcast %25 : vector<8x1xf32> to vector<8x8xf32>
    %27 = arith.mulf %22, %26 : vector<8x8xf32>
    %28 = arith.truncf %27 : vector<8x8xf32> to vector<8x8xbf16>
    %29 = vector.extract_strided_slice %10 {offsets = [0, 0], sizes = [8, 8], strides = [1, 1]} : vector<8x32xbf16> to vector<8x8xbf16>
    %cst_13 = arith.constant dense<0.000000e+00> : vector<8x8xf32>
    %30 = tpu.matmul %28, %29, %cst_13 {dimension_numbers = #tpu.dot_dimension_numbers<[1], [0], [0], [1], [0, 0, 1, 1], [], []>} : vector<8x8xbf16>, vector<8x8xbf16>, vector<8x8xf32> -> vector<8x8xf32>
    %31 = arith.truncf %30 : vector<8x8xf32> to vector<8x8xbf16>
    %32 = vector.extract_strided_slice %11 {offsets = [0, 0], sizes = [8, 32], strides = [1, 1]} : vector<32x32xbf16> to vector<8x32xbf16>
    %cst_14 = arith.constant dense<0.000000e+00> : vector<8x32xf32>
    %33 = tpu.matmul %31, %32, %cst_14 {dimension_numbers = #tpu.dot_dimension_numbers<[1], [0], [0], [1], [0, 0, 1, 1], [], []>} : vector<8x8xbf16>, vector<8x32xbf16>, vector<8x32xf32> -> vector<8x32xf32>
    %34 = arith.addf %12, %33 : vector<8x32xf32>
    %35 = vector.extract_strided_slice %8 {offsets = [0, 8], sizes = [8, 8], strides = [1, 1]} : vector<8x32xbf16> to vector<8x8xbf16>
    %36 = vector.extract_strided_slice %9 {offsets = [0, 8], sizes = [8, 8], strides = [1, 1]} : vector<8x32xbf16> to vector<8x8xbf16>
    %cst_15 = arith.constant dense<0.000000e+00> : vector<8x8xf32>
    %37 = tpu.matmul %35, %36, %cst_15 {dimension_numbers = #tpu.dot_dimension_numbers<[1], [1], [0], [0], [0, 0, 1, 0], [], []>} : vector<8x8xbf16>, vector<8x8xbf16>, vector<8x8xf32> -> vector<8x8xf32>
    %cst_16 = arith.constant 0.353553385 : f32
    %38 = vector.broadcast %cst_16 : f32 to vector<8x8xf32>
    %39 = arith.mulf %37, %38 : vector<8x8xf32>
    %cst_17 = arith.constant dense<0xFF800000> : vector<8xf32>
    %40 = vector.multi_reduction <maximumf>, %39, %cst_17 [1] : vector<8x8xf32> to vector<8xf32>
    %41 = vector.shape_cast %40 : vector<8xf32> to vector<8x1xf32>
    %42 = vector.broadcast %41 : vector<8x1xf32> to vector<8x8xf32>
    %43 = arith.subf %39, %42 : vector<8x8xf32>
    %44 = math.exp %43 : vector<8x8xf32>
    %cst_18 = arith.constant dense<0.000000e+00> : vector<8xf32>
    %45 = vector.multi_reduction <add>, %44, %cst_18 [1] : vector<8x8xf32> to vector<8xf32>
    %46 = vector.shape_cast %45 : vector<8xf32> to vector<8x1xf32>
    %47 = tpu.reciprocal %46 {approx = true} : vector<8x1xf32> -> vector<8x1xf32>
    %48 = vector.broadcast %47 : vector<8x1xf32> to vector<8x8xf32>
    %49 = arith.mulf %44, %48 : vector<8x8xf32>
    %50 = arith.truncf %49 : vector<8x8xf32> to vector<8x8xbf16>
    %51 = vector.extract_strided_slice %10 {offsets = [0, 8], sizes = [8, 8], strides = [1, 1]} : vector<8x32xbf16> to vector<8x8xbf16>
    %cst_19 = arith.constant dense<0.000000e+00> : vector<8x8xf32>
    %52 = tpu.matmul %50, %51, %cst_19 {dimension_numbers = #tpu.dot_dimension_numbers<[1], [0], [0], [1], [0, 0, 1, 1], [], []>} : vector<8x8xbf16>, vector<8x8xbf16>, vector<8x8xf32> -> vector<8x8xf32>
    %53 = arith.truncf %52 : vector<8x8xf32> to vector<8x8xbf16>
    %54 = vector.extract_strided_slice %11 {offsets = [8, 0], sizes = [8, 32], strides = [1, 1]} : vector<32x32xbf16> to vector<8x32xbf16>
    %cst_20 = arith.constant dense<0.000000e+00> : vector<8x32xf32>
    %55 = tpu.matmul %53, %54, %cst_20 {dimension_numbers = #tpu.dot_dimension_numbers<[1], [0], [0], [1], [0, 0, 1, 1], [], []>} : vector<8x8xbf16>, vector<8x32xbf16>, vector<8x32xf32> -> vector<8x32xf32>
    %56 = arith.addf %34, %55 : vector<8x32xf32>
    %57 = vector.extract_strided_slice %8 {offsets = [0, 16], sizes = [8, 8], strides = [1, 1]} : vector<8x32xbf16> to vector<8x8xbf16>
    %58 = vector.extract_strided_slice %9 {offsets = [0, 16], sizes = [8, 8], strides = [1, 1]} : vector<8x32xbf16> to vector<8x8xbf16>
    %cst_21 = arith.constant dense<0.000000e+00> : vector<8x8xf32>
    %59 = tpu.matmul %57, %58, %cst_21 {dimension_numbers = #tpu.dot_dimension_numbers<[1], [1], [0], [0], [0, 0, 1, 0], [], []>} : vector<8x8xbf16>, vector<8x8xbf16>, vector<8x8xf32> -> vector<8x8xf32>
    %cst_22 = arith.constant 0.353553385 : f32
    %60 = vector.broadcast %cst_22 : f32 to vector<8x8xf32>
    %61 = arith.mulf %59, %60 : vector<8x8xf32>
    %cst_23 = arith.constant dense<0xFF800000> : vector<8xf32>
    %62 = vector.multi_reduction <maximumf>, %61, %cst_23 [1] : vector<8x8xf32> to vector<8xf32>
    %63 = vector.shape_cast %62 : vector<8xf32> to vector<8x1xf32>
    %64 = vector.broadcast %63 : vector<8x1xf32> to vector<8x8xf32>
    %65 = arith.subf %61, %64 : vector<8x8xf32>
    %66 = math.exp %65 : vector<8x8xf32>
    %cst_24 = arith.constant dense<0.000000e+00> : vector<8xf32>
    %67 = vector.multi_reduction <add>, %66, %cst_24 [1] : vector<8x8xf32> to vector<8xf32>
    %68 = vector.shape_cast %67 : vector<8xf32> to vector<8x1xf32>
    %69 = tpu.reciprocal %68 {approx = true} : vector<8x1xf32> -> vector<8x1xf32>
    %70 = vector.broadcast %69 : vector<8x1xf32> to vector<8x8xf32>
    %71 = arith.mulf %66, %70 : vector<8x8xf32>
    %72 = arith.truncf %71 : vector<8x8xf32> to vector<8x8xbf16>
    %73 = vector.extract_strided_slice %10 {offsets = [0, 16], sizes = [8, 8], strides = [1, 1]} : vector<8x32xbf16> to vector<8x8xbf16>
    %cst_25 = arith.constant dense<0.000000e+00> : vector<8x8xf32>
    %74 = tpu.matmul %72, %73, %cst_25 {dimension_numbers = #tpu.dot_dimension_numbers<[1], [0], [0], [1], [0, 0, 1, 1], [], []>} : vector<8x8xbf16>, vector<8x8xbf16>, vector<8x8xf32> -> vector<8x8xf32>
    %75 = arith.truncf %74 : vector<8x8xf32> to vector<8x8xbf16>
    %76 = vector.extract_strided_slice %11 {offsets = [16, 0], sizes = [8, 32], strides = [1, 1]} : vector<32x32xbf16> to vector<8x32xbf16>
    %cst_26 = arith.constant dense<0.000000e+00> : vector<8x32xf32>
    %77 = tpu.matmul %75, %76, %cst_26 {dimension_numbers = #tpu.dot_dimension_numbers<[1], [0], [0], [1], [0, 0, 1, 1], [], []>} : vector<8x8xbf16>, vector<8x32xbf16>, vector<8x32xf32> -> vector<8x32xf32>
    %78 = arith.addf %56, %77 : vector<8x32xf32>
    %79 = vector.extract_strided_slice %8 {offsets = [0, 24], sizes = [8, 8], strides = [1, 1]} : vector<8x32xbf16> to vector<8x8xbf16>
    %80 = vector.extract_strided_slice %9 {offsets = [0, 24], sizes = [8, 8], strides = [1, 1]} : vector<8x32xbf16> to vector<8x8xbf16>
    %cst_27 = arith.constant dense<0.000000e+00> : vector<8x8xf32>
    %81 = tpu.matmul %79, %80, %cst_27 {dimension_numbers = #tpu.dot_dimension_numbers<[1], [1], [0], [0], [0, 0, 1, 0], [], []>} : vector<8x8xbf16>, vector<8x8xbf16>, vector<8x8xf32> -> vector<8x8xf32>
    %cst_28 = arith.constant 0.353553385 : f32
    %82 = vector.broadcast %cst_28 : f32 to vector<8x8xf32>
    %83 = arith.mulf %81, %82 : vector<8x8xf32>
    %cst_29 = arith.constant dense<0xFF800000> : vector<8xf32>
    %84 = vector.multi_reduction <maximumf>, %83, %cst_29 [1] : vector<8x8xf32> to vector<8xf32>
    %85 = vector.shape_cast %84 : vector<8xf32> to vector<8x1xf32>
    %86 = vector.broadcast %85 : vector<8x1xf32> to vector<8x8xf32>
    %87 = arith.subf %83, %86 : vector<8x8xf32>
    %88 = math.exp %87 : vector<8x8xf32>
    %cst_30 = arith.constant dense<0.000000e+00> : vector<8xf32>
    %89 = vector.multi_reduction <add>, %88, %cst_30 [1] : vector<8x8xf32> to vector<8xf32>
    %90 = vector.shape_cast %89 : vector<8xf32> to vector<8x1xf32>
    %91 = tpu.reciprocal %90 {approx = true} : vector<8x1xf32> -> vector<8x1xf32>
    %92 = vector.broadcast %91 : vector<8x1xf32> to vector<8x8xf32>
    %93 = arith.mulf %88, %92 : vector<8x8xf32>
    %94 = arith.truncf %93 : vector<8x8xf32> to vector<8x8xbf16>
    %95 = vector.extract_strided_slice %10 {offsets = [0, 24], sizes = [8, 8], strides = [1, 1]} : vector<8x32xbf16> to vector<8x8xbf16>
    %cst_31 = arith.constant dense<0.000000e+00> : vector<8x8xf32>
    %96 = tpu.matmul %94, %95, %cst_31 {dimension_numbers = #tpu.dot_dimension_numbers<[1], [0], [0], [1], [0, 0, 1, 1], [], []>} : vector<8x8xbf16>, vector<8x8xbf16>, vector<8x8xf32> -> vector<8x8xf32>
    %97 = arith.truncf %96 : vector<8x8xf32> to vector<8x8xbf16>
    %98 = vector.extract_strided_slice %11 {offsets = [24, 0], sizes = [8, 32], strides = [1, 1]} : vector<32x32xbf16> to vector<8x32xbf16>
    %cst_32 = arith.constant dense<0.000000e+00> : vector<8x32xf32>
    %99 = tpu.matmul %97, %98, %cst_32 {dimension_numbers = #tpu.dot_dimension_numbers<[1], [0], [0], [1], [0, 0, 1, 1], [], []>} : vector<8x8xbf16>, vector<8x32xbf16>, vector<8x32xf32> -> vector<8x32xf32>
    %100 = arith.addf %78, %99 : vector<8x32xf32>
    %c0_33 = arith.constant 0 : index
    %c0_34 = arith.constant 0 : index
    %101 = vector.load %arg5[%c0_33, %c0_34] : memref<1x32xf32, #tpu.memory_space<vmem>>, vector<1x32xf32>
    %102 = vector.broadcast %101 : vector<1x32xf32> to vector<8x32xf32>
    %103 = arith.addf %100, %102 : vector<8x32xf32>
    %104 = arith.extf %1 : vector<8x32xbf16> to vector<8x32xf32>
    %105 = arith.addf %103, %104 : vector<8x32xf32>
    %c0_35 = arith.constant 0 : index
    %c0_36 = arith.constant 0 : index
    %106 = vector.load %arg6[%c0_35, %c0_36] : memref<1x32xf32, #tpu.memory_space<vmem>>, vector<1x32xf32>
    %c0_37 = arith.constant 0 : index
    %c0_38 = arith.constant 0 : index
    %107 = vector.load %arg7[%c0_37, %c0_38] : memref<1x32xf32, #tpu.memory_space<vmem>>, vector<1x32xf32>
    %cst_39 = arith.constant dense<0.000000e+00> : vector<8xf32>
    %108 = vector.multi_reduction <add>, %105, %cst_39 [1] : vector<8x32xf32> to vector<8xf32>
    %109 = vector.shape_cast %108 : vector<8xf32> to vector<8x1xf32>
    %cst_40 = arith.constant 3.200000e+01 : f32
    %110 = vector.broadcast %cst_40 : f32 to vector<8x1xf32>
    %111 = arith.divf %109, %110 : vector<8x1xf32>
    %112 = vector.broadcast %111 : vector<8x1xf32> to vector<8x32xf32>
    %113 = arith.subf %105, %112 : vector<8x32xf32>
    %114 = arith.mulf %113, %113 : vector<8x32xf32>
    %cst_41 = arith.constant dense<0.000000e+00> : vector<8xf32>
    %115 = vector.multi_reduction <add>, %114, %cst_41 [1] : vector<8x32xf32> to vector<8xf32>
    %116 = vector.shape_cast %115 : vector<8xf32> to vector<8x1xf32>
    %cst_42 = arith.constant 3.200000e+01 : f32
    %117 = vector.broadcast %cst_42 : f32 to vector<8x1xf32>
    %118 = arith.divf %116, %117 : vector<8x1xf32>
    %cst_43 = arith.constant 9.99999974E-6 : f32
    %119 = vector.broadcast %cst_43 : f32 to vector<8x1xf32>
    %120 = arith.addf %118, %119 : vector<8x1xf32>
    %121 = math.rsqrt %120 : vector<8x1xf32>
    %122 = vector.broadcast %121 : vector<8x1xf32> to vector<8x32xf32>
    %123 = arith.mulf %113, %122 : vector<8x32xf32>
    %124 = vector.broadcast %106 : vector<1x32xf32> to vector<8x32xf32>
    %125 = arith.mulf %123, %124 : vector<8x32xf32>
    %126 = vector.broadcast %107 : vector<1x32xf32> to vector<8x32xf32>
    %127 = arith.addf %125, %126 : vector<8x32xf32>
    %128 = arith.truncf %127 : vector<8x32xf32> to vector<8x32xbf16>
    %c0_44 = arith.constant 0 : index
    %c0_45 = arith.constant 0 : index
    %c0_46 = arith.constant 0 : index
    %129 = vector.load %arg8[%c0_44, %c0_45, %c0_46] : memref<1x8x32xbf16, #tpu.memory_space<vmem>>, vector<1x8x32xbf16>
    %130 = vector.shape_cast %129 : vector<1x8x32xbf16> to vector<8x32xbf16>
    %131 = vector.shape_cast %128 : vector<8x32xbf16> to vector<1x8x32xbf16>
    tpu.vector_store %arg8[%c0_44, %c0_45, %c0_46], %131 {strides = array<i32>} : memref<1x8x32xbf16, #tpu.memory_space<vmem>>, vector<1x8x32xbf16>,
    return
  }
  func.func @transform_0(%arg0: i32) -> (i32, i32, i32) {
    %c0_i32 = arith.constant 0 : i32
    %c0_i32_0 = arith.constant 0 : i32
    %c0_i32_1 = arith.constant 0 : i32
    return %arg0, %c0_i32, %c0_i32_0 : i32, i32, i32
  }
  func.func @transform_1(%arg0: i32) -> (i32, i32) {
    %c0_i32 = arith.constant 0 : i32
    %c0_i32_0 = arith.constant 0 : i32
    %c0_i32_1 = arith.constant 0 : i32
    return %c0_i32, %c0_i32_0 : i32, i32
  }
  func.func @transform_2(%arg0: i32) -> (i32, i32) {
    %c0_i32 = arith.constant 0 : i32
    %c0_i32_0 = arith.constant 0 : i32
    %c0_i32_1 = arith.constant 0 : i32
    return %c0_i32, %c0_i32_0 : i32, i32
  }
  func.func @transform_3(%arg0: i32) -> (i32, i32) {
    %c0_i32 = arith.constant 0 : i32
    %c0_i32_0 = arith.constant 0 : i32
    %c0_i32_1 = arith.constant 0 : i32
    return %c0_i32, %c0_i32_0 : i32, i32
  }
  func.func @transform_4(%arg0: i32) -> (i32, i32) {
    %c0_i32 = arith.constant 0 : i32
    %c0_i32_0 = arith.constant 0 : i32
    %c0_i32_1 = arith.constant 0 : i32
    return %c0_i32, %c0_i32_0 : i32, i32
  }
  func.func @transform_5(%arg0: i32) -> (i32, i32) {
    %c0_i32 = arith.constant 0 : i32
    %c0_i32_0 = arith.constant 0 : i32
    %c0_i32_1 = arith.constant 0 : i32
    return %c0_i32, %c0_i32_0 : i32, i32
  }
  func.func @transform_6(%arg0: i32) -> (i32, i32) {
    %c0_i32 = arith.constant 0 : i32
    %c0_i32_0 = arith.constant 0 : i32
    %c0_i32_1 = arith.constant 0 : i32
    return %c0_i32, %c0_i32_0 : i32, i32
  }
  func.func @transform_7(%arg0: i32) -> (i32, i32, i32) {
    %c0_i32 = arith.constant 0 : i32
    %c0_i32_0 = arith.constant 0 : i32
    %c0_i32_1 = arith.constant 0 : i32
    return %arg0, %c0_i32, %c0_i32_0 : i32, i32, i32
  }
}

module attributes {stable_mosaic.version = 11 : i64} {
  func.func @_fused_linear_kernel(%arg0: i32, %arg1: memref<8x32xbf16, #tpu.memory_space<vmem>>, %arg2: memref<32x32xbf16, #tpu.memory_space<vmem>>, %arg3: memref<1x32xf32, #tpu.memory_space<vmem>>, %arg4: memref<8x32xbf16, #tpu.memory_space<vmem>>, %arg5: memref<1x32xf32, #tpu.memory_space<vmem>>, %arg6: memref<1x32xf32, #tpu.memory_space<vmem>>, %arg7: memref<8x32xbf16, #tpu.memory_space<vmem>>) attributes {dimension_semantics = [#tpu.dimension_semantics<parallel>], iteration_bounds = array<i64: 2>, scalar_prefetch = 0 : i64, scratch_operands = 0 : i64, tpu.core_type = #tpu.core_type<tc>, window_params = [{transform_indices = @transform_0, window_bounds = array<i64: 8, 32>}, {pipeline_mode = #tpu.pipeline_mode<synchronous>, transform_indices = @transform_1, window_bounds = array<i64: 32, 32>}, {pipeline_mode = #tpu.pipeline_mode<synchronous>, transform_indices = @transform_2, window_bounds = array<i64: 1, 32>}, {transform_indices = @transform_3, window_bounds = array<i64: 8, 32>}, {pipeline_mode = #tpu.pipeline_mode<synchronous>, transform_indices = @transform_4, window_bounds = array<i64: 1, 32>}, {pipeline_mode = #tpu.pipeline_mode<synchronous>, transform_indices = @transform_5, window_bounds = array<i64: 1, 32>}, {transform_indices = @transform_6, window_bounds = array<i64: 8, 32>}]} {
    %c0 = arith.constant 0 : index
    %c0_0 = arith.constant 0 : index
    %0 = vector.load %arg1[%c0, %c0_0] : memref<8x32xbf16, #tpu.memory_space<vmem>>, vector<8x32xbf16>
    %c0_1 = arith.constant 0 : index
    %c0_2 = arith.constant 0 : index
    %1 = vector.load %arg2[%c0_1, %c0_2] : memref<32x32xbf16, #tpu.memory_space<vmem>>, vector<32x32xbf16>
    %cst = arith.constant dense<0.000000e+00> : vector<8x32xf32>
    %2 = tpu.matmul %0, %1, %cst {dimension_numbers = #tpu.dot_dimension_numbers<[1], [0], [0], [1], [0, 0, 1, 1], [], []>} : vector<8x32xbf16>, vector<32x32xbf16>, vector<8x32xf32> -> vector<8x32xf32>
    %c0_3 = arith.constant 0 : index
    %c0_4 = arith.constant 0 : index
    %3 = vector.load %arg3[%c0_3, %c0_4] : memref<1x32xf32, #tpu.memory_space<vmem>>, vector<1x32xf32>
    %4 = vector.broadcast %3 : vector<1x32xf32> to vector<8x32xf32>
    %5 = arith.addf %2, %4 : vector<8x32xf32>
    %c0_5 = arith.constant 0 : index
    %c0_6 = arith.constant 0 : index
    %6 = vector.load %arg4[%c0_5, %c0_6] : memref<8x32xbf16, #tpu.memory_space<vmem>>, vector<8x32xbf16>
    %7 = arith.extf %6 : vector<8x32xbf16> to vector<8x32xf32>
    %8 = arith.addf %5, %7 : vector<8x32xf32>
    %c0_7 = arith.constant 0 : index
    %c0_8 = arith.constant 0 : index
    %9 = vector.load %arg5[%c0_7, %c0_8] : memref<1x32xf32, #tpu.memory_space<vmem>>, vector<1x32xf32>
    %c0_9 = arith.constant 0 : index
    %c0_10 = arith.constant 0 : index
    %10 = vector.load %arg6[%c0_9, %c0_10] : memref<1x32xf32, #tpu.memory_space<vmem>>, vector<1x32xf32>
    %cst_11 = arith.constant dense<0.000000e+00> : vector<8xf32>
    %11 = vector.multi_reduction <add>, %8, %cst_11 [1] : vector<8x32xf32> to vector<8xf32>
    %12 = vector.shape_cast %11 : vector<8xf32> to vector<8x1xf32>
    %cst_12 = arith.constant 3.200000e+01 : f32
    %13 = vector.broadcast %cst_12 : f32 to vector<8x1xf32>
    %14 = arith.divf %12, %13 : vector<8x1xf32>
    %15 = vector.broadcast %14 : vector<8x1xf32> to vector<8x32xf32>
    %16 = arith.subf %8, %15 : vector<8x32xf32>
    %17 = arith.mulf %16, %16 : vector<8x32xf32>
    %cst_13 = arith.constant dense<0.000000e+00> : vector<8xf32>
    %18 = vector.multi_reduction <add>, %17, %cst_13 [1] : vector<8x32xf32> to vector<8xf32>
    %19 = vector.shape_cast %18 : vector<8xf32> to vector<8x1xf32>
    %cst_14 = arith.constant 3.200000e+01 : f32
    %20 = vector.broadcast %cst_14 : f32 to vector<8x1xf32>
    %21 = arith.divf %19, %20 : vector<8x1xf32>
    %cst_15 = arith.constant 9.99999974E-6 : f32
    %22 = vector.broadcast %cst_15 : f32 to vector<8x1xf32>
    %23 = arith.addf %21, %22 : vector<8x1xf32>
    %24 = math.rsqrt %23 : vector<8x1xf32>
    %25 = vector.broadcast %24 : vector<8x1xf32> to vector<8x32xf32>
    %26 = arith.mulf %16, %25 : vector<8x32xf32>
    %27 = vector.broadcast %9 : vector<1x32xf32> to vector<8x32xf32>
    %28 = arith.mulf %26, %27 : vector<8x32xf32>
    %29 = vector.broadcast %10 : vector<1x32xf32> to vector<8x32xf32>
    %30 = arith.addf %28, %29 : vector<8x32xf32>
    %31 = arith.truncf %30 : vector<8x32xf32> to vector<8x32xbf16>
    %c0_16 = arith.constant 0 : index
    %c0_17 = arith.constant 0 : index
    %32 = vector.load %arg7[%c0_16, %c0_17] : memref<8x32xbf16, #tpu.memory_space<vmem>>, vector<8x32xbf16>
    tpu.vector_store %arg7[%c0_16, %c0_17], %31 {strides = array<i32>} : memref<8x32xbf16, #tpu.memory_space<vmem>>, vector<8x32xbf16>,
    return
  }
  func.func @transform_0(%arg0: i32) -> (i32, i32) {
    %c0_i32 = arith.constant 0 : i32
    %c0_i32_0 = arith.constant 0 : i32
    return %arg0, %c0_i32 : i32, i32
  }
  func.func @transform_1(%arg0: i32) -> (i32, i32) {
    %c0_i32 = arith.constant 0 : i32
    %c0_i32_0 = arith.constant 0 : i32
    %c0_i32_1 = arith.constant 0 : i32
    return %c0_i32, %c0_i32_0 : i32, i32
  }
  func.func @transform_2(%arg0: i32) -> (i32, i32) {
    %c0_i32 = arith.constant 0 : i32
    %c0_i32_0 = arith.constant 0 : i32
    %c0_i32_1 = arith.constant 0 : i32
    return %c0_i32, %c0_i32_0 : i32, i32
  }
  func.func @transform_3(%arg0: i32) -> (i32, i32) {
    %c0_i32 = arith.constant 0 : i32
    %c0_i32_0 = arith.constant 0 : i32
    return %arg0, %c0_i32 : i32, i32
  }
  func.func @transform_4(%arg0: i32) -> (i32, i32) {
    %c0_i32 = arith.constant 0 : i32
    %c0_i32_0 = arith.constant 0 : i32
    %c0_i32_1 = arith.constant 0 : i32
    return %c0_i32, %c0_i32_0 : i32, i32
  }
  func.func @transform_5(%arg0: i32) -> (i32, i32) {
    %c0_i32 = arith.constant 0 : i32
    %c0_i32_0 = arith.constant 0 : i32
    %c0_i32_1 = arith.constant 0 : i32
    return %c0_i32, %c0_i32_0 : i32, i32
  }
  func.func @transform_6(%arg0: i32) -> (i32, i32) {
    %c0_i32 = arith.constant 0 : i32
    %c0_i32_0 = arith.constant 0 : i32
    return %arg0, %c0_i32 : i32, i32
  }
}

module attributes {stable_mosaic.version = 11 : i64} {
  func.func @_fused_linear_kernel(%arg0: i32, %arg1: memref<8x32xbf16, #tpu.memory_space<vmem>>, %arg2: memref<32x128xbf16, #tpu.memory_space<vmem>>, %arg3: memref<1x128xf32, #tpu.memory_space<vmem>>, %arg4: memref<8x128xf32, #tpu.memory_space<vmem>>) attributes {dimension_semantics = [#tpu.dimension_semantics<parallel>], iteration_bounds = array<i64: 2>, scalar_prefetch = 0 : i64, scratch_operands = 0 : i64, tpu.core_type = #tpu.core_type<tc>, window_params = [{transform_indices = @transform_0, window_bounds = array<i64: 8, 32>}, {pipeline_mode = #tpu.pipeline_mode<synchronous>, transform_indices = @transform_1, window_bounds = array<i64: 32, 128>}, {pipeline_mode = #tpu.pipeline_mode<synchronous>, transform_indices = @transform_2, window_bounds = array<i64: 1, 128>}, {transform_indices = @transform_3, window_bounds = array<i64: 8, 128>}]} {
    %c0 = arith.constant 0 : index
    %c0_0 = arith.constant 0 : index
    %0 = vector.load %arg1[%c0, %c0_0] : memref<8x32xbf16, #tpu.memory_space<vmem>>, vector<8x32xbf16>
    %c0_1 = arith.constant 0 : index
    %c0_2 = arith.constant 0 : index
    %1 = vector.load %arg2[%c0_1, %c0_2] : memref<32x128xbf16, #tpu.memory_space<vmem>>, vector<32x128xbf16>
    %cst = arith.constant dense<0.000000e+00> : vector<8x128xf32>
    %2 = tpu.matmul %0, %1, %cst {dimension_numbers = #tpu.dot_dimension_numbers<[1], [0], [0], [1], [0, 0, 1, 1], [], []>} : vector<8x32xbf16>, vector<32x128xbf16>, vector<8x128xf32> -> vector<8x128xf32>
    %c0_3 = arith.constant 0 : index
    %c0_4 = arith.constant 0 : index
    %3 = vector.load %arg3[%c0_3, %c0_4] : memref<1x128xf32, #tpu.memory_space<vmem>>, vector<1x128xf32>
    %4 = vector.broadcast %3 : vector<1x128xf32> to vector<8x128xf32>
    %5 = arith.addf %2, %4 : vector<8x128xf32>
    %c0_5 = arith.constant 0 : index
    %c0_6 = arith.constant 0 : index
    %6 = vector.load %arg4[%c0_5, %c0_6] : memref<8x128xf32, #tpu.memory_space<vmem>>, vector<8x128xf32>
    tpu.vector_store %arg4[%c0_5, %c0_6], %5 {strides = array<i32>} : memref<8x128xf32, #tpu.memory_space<vmem>>, vector<8x128xf32>,
    return
  }
  func.func @transform_0(%arg0: i32) -> (i32, i32) {
    %c0_i32 = arith.constant 0 : i32
    %c0_i32_0 = arith.constant 0 : i32
    return %arg0, %c0_i32 : i32, i32
  }
  func.func @transform_1(%arg0: i32) -> (i32, i32) {
    %c0_i32 = arith.constant 0 : i32
    %c0_i32_0 = arith.constant 0 : i32
    %c0_i32_1 = arith.constant 0 : i32
    return %c0_i32, %c0_i32_0 : i32, i32
  }
  func.func @transform_2(%arg0: i32) -> (i32, i32) {
    %c0_i32 = arith.constant 0 : i32
    %c0_i32_0 = arith.constant 0 : i32
    %c0_i32_1 = arith.constant 0 : i32
    return %c0_i32, %c0_i32_0 : i32, i32
  }
  func.func @transform_3(%arg0: i32) -> (i32, i32) {
    %c0_i32 = arith.constant 0 : i32
    %c0_i32_0 = arith.constant 0 : i32
    return %arg0, %c0_i32 : i32, i32
  }
}

module attributes {stable_mosaic.version = 11 : i64} {
  func.func @_cross_attn_block_kernel(%arg0: i32, %arg1: memref<1x8x32xbf16, #tpu.memory_space<vmem>>, %arg2: memref<1x8x32xbf16, #tpu.memory_space<vmem>>, %arg3: memref<32x32xbf16, #tpu.memory_space<vmem>>, %arg4: memref<1x32xf32, #tpu.memory_space<vmem>>, %arg5: memref<32x64xbf16, #tpu.memory_space<vmem>>, %arg6: memref<1x64xf32, #tpu.memory_space<vmem>>, %arg7: memref<32x32xbf16, #tpu.memory_space<vmem>>, %arg8: memref<1x32xf32, #tpu.memory_space<vmem>>, %arg9: memref<1x32xf32, #tpu.memory_space<vmem>>, %arg10: memref<1x32xf32, #tpu.memory_space<vmem>>, %arg11: memref<1x8x32xbf16, #tpu.memory_space<vmem>>) attributes {dimension_semantics = [#tpu.dimension_semantics<parallel>], iteration_bounds = array<i64: 2>, scalar_prefetch = 0 : i64, scratch_operands = 0 : i64, tpu.core_type = #tpu.core_type<tc>, window_params = [{transform_indices = @transform_0, window_bounds = array<i64: 1, 8, 32>}, {transform_indices = @transform_1, window_bounds = array<i64: 1, 8, 32>}, {pipeline_mode = #tpu.pipeline_mode<synchronous>, transform_indices = @transform_2, window_bounds = array<i64: 32, 32>}, {pipeline_mode = #tpu.pipeline_mode<synchronous>, transform_indices = @transform_3, window_bounds = array<i64: 1, 32>}, {pipeline_mode = #tpu.pipeline_mode<synchronous>, transform_indices = @transform_4, window_bounds = array<i64: 32, 64>}, {pipeline_mode = #tpu.pipeline_mode<synchronous>, transform_indices = @transform_5, window_bounds = array<i64: 1, 64>}, {pipeline_mode = #tpu.pipeline_mode<synchronous>, transform_indices = @transform_6, window_bounds = array<i64: 32, 32>}, {pipeline_mode = #tpu.pipeline_mode<synchronous>, transform_indices = @transform_7, window_bounds = array<i64: 1, 32>}, {pipeline_mode = #tpu.pipeline_mode<synchronous>, transform_indices = @transform_8, window_bounds = array<i64: 1, 32>}, {pipeline_mode = #tpu.pipeline_mode<synchronous>, transform_indices = @transform_9, window_bounds = array<i64: 1, 32>}, {transform_indices = @transform_10, window_bounds = array<i64: 1, 8, 32>}]} {
    %c0 = arith.constant 0 : index
    %c0_0 = arith.constant 0 : index
    %c0_1 = arith.constant 0 : index
    %0 = vector.load %arg1[%c0, %c0_0, %c0_1] : memref<1x8x32xbf16, #tpu.memory_space<vmem>>, vector<1x8x32xbf16>
    %1 = vector.shape_cast %0 : vector<1x8x32xbf16> to vector<8x32xbf16>
    %c0_2 = arith.constant 0 : index
    %c0_3 = arith.constant 0 : index
    %c0_4 = arith.constant 0 : index
    %2 = vector.load %arg2[%c0_2, %c0_3, %c0_4] : memref<1x8x32xbf16, #tpu.memory_space<vmem>>, vector<1x8x32xbf16>
    %3 = vector.shape_cast %2 : vector<1x8x32xbf16> to vector<8x32xbf16>
    %c0_5 = arith.constant 0 : index
    %c0_6 = arith.constant 0 : index
    %4 = vector.load %arg3[%c0_5, %c0_6] : memref<32x32xbf16, #tpu.memory_space<vmem>>, vector<32x32xbf16>
    %cst = arith.constant dense<0.000000e+00> : vector<8x32xf32>
    %5 = tpu.matmul %1, %4, %cst {dimension_numbers = #tpu.dot_dimension_numbers<[1], [0], [0], [1], [0, 0, 1, 1], [], []>} : vector<8x32xbf16>, vector<32x32xbf16>, vector<8x32xf32> -> vector<8x32xf32>
    %c0_7 = arith.constant 0 : index
    %c0_8 = arith.constant 0 : index
    %6 = vector.load %arg4[%c0_7, %c0_8] : memref<1x32xf32, #tpu.memory_space<vmem>>, vector<1x32xf32>
    %7 = vector.broadcast %6 : vector<1x32xf32> to vector<8x32xf32>
    %8 = arith.addf %5, %7 : vector<8x32xf32>
    %9 = arith.truncf %8 : vector<8x32xf32> to vector<8x32xbf16>
    %c0_9 = arith.constant 0 : index
    %c0_10 = arith.constant 0 : index
    %10 = vector.load %arg5[%c0_9, %c0_10] : memref<32x64xbf16, #tpu.memory_space<vmem>>, vector<32x64xbf16>
    %cst_11 = arith.constant dense<0.000000e+00> : vector<8x64xf32>
    %11 = tpu.matmul %3, %10, %cst_11 {dimension_numbers = #tpu.dot_dimension_numbers<[1], [0], [0], [1], [0, 0, 1, 1], [], []>} : vector<8x32xbf16>, vector<32x64xbf16>, vector<8x64xf32> -> vector<8x64xf32>
    %c0_12 = arith.constant 0 : index
    %c0_13 = arith.constant 0 : index
    %12 = vector.load %arg6[%c0_12, %c0_13] : memref<1x64xf32, #tpu.memory_space<vmem>>, vector<1x64xf32>
    %13 = vector.broadcast %12 : vector<1x64xf32> to vector<8x64xf32>
    %14 = arith.addf %11, %13 : vector<8x64xf32>
    %15 = arith.truncf %14 : vector<8x64xf32> to vector<8x64xbf16>
    %16 = vector.extract_strided_slice %15 {offsets = [0, 0], sizes = [8, 32], strides = [1, 1]} : vector<8x64xbf16> to vector<8x32xbf16>
    %17 = vector.extract_strided_slice %15 {offsets = [0, 32], sizes = [8, 32], strides = [1, 1]} : vector<8x64xbf16> to vector<8x32xbf16>
    %c0_14 = arith.constant 0 : index
    %c0_15 = arith.constant 0 : index
    %18 = vector.load %arg7[%c0_14, %c0_15] : memref<32x32xbf16, #tpu.memory_space<vmem>>, vector<32x32xbf16>
    %cst_16 = arith.constant 0.000000e+00 : f32
    %19 = vector.broadcast %cst_16 : f32 to vector<8x32xf32>
    %20 = vector.extract_strided_slice %9 {offsets = [0, 0], sizes = [8, 8], strides = [1, 1]} : vector<8x32xbf16> to vector<8x8xbf16>
    %21 = vector.extract_strided_slice %16 {offsets = [0, 0], sizes = [8, 8], strides = [1, 1]} : vector<8x32xbf16> to vector<8x8xbf16>
    %cst_17 = arith.constant dense<0.000000e+00> : vector<8x8xf32>
    %22 = tpu.matmul %20, %21, %cst_17 {dimension_numbers = #tpu.dot_dimension_numbers<[1], [1], [0], [0], [0, 0, 1, 0], [], []>} : vector<8x8xbf16>, vector<8x8xbf16>, vector<8x8xf32> -> vector<8x8xf32>
    %cst_18 = arith.constant 0.353553385 : f32
    %23 = vector.broadcast %cst_18 : f32 to vector<8x8xf32>
    %24 = arith.mulf %22, %23 : vector<8x8xf32>
    %cst_19 = arith.constant dense<0xFF800000> : vector<8xf32>
    %25 = vector.multi_reduction <maximumf>, %24, %cst_19 [1] : vector<8x8xf32> to vector<8xf32>
    %26 = vector.shape_cast %25 : vector<8xf32> to vector<8x1xf32>
    %27 = vector.broadcast %26 : vector<8x1xf32> to vector<8x8xf32>
    %28 = arith.subf %24, %27 : vector<8x8xf32>
    %29 = math.exp %28 : vector<8x8xf32>
    %cst_20 = arith.constant dense<0.000000e+00> : vector<8xf32>
    %30 = vector.multi_reduction <add>, %29, %cst_20 [1] : vector<8x8xf32> to vector<8xf32>
    %31 = vector.shape_cast %30 : vector<8xf32> to vector<8x1xf32>
    %32 = tpu.reciprocal %31 {approx = true} : vector<8x1xf32> -> vector<8x1xf32>
    %33 = vector.broadcast %32 : vector<8x1xf32> to vector<8x8xf32>
    %34 = arith.mulf %29, %33 : vector<8x8xf32>
    %35 = arith.truncf %34 : vector<8x8xf32> to vector<8x8xbf16>
    %36 = vector.extract_strided_slice %17 {offsets = [0, 0], sizes = [8, 8], strides = [1, 1]} : vector<8x32xbf16> to vector<8x8xbf16>
    %cst_21 = arith.constant dense<0.000000e+00> : vector<8x8xf32>
    %37 = tpu.matmul %35, %36, %cst_21 {dimension_numbers = #tpu.dot_dimension_numbers<[1], [0], [0], [1], [0, 0, 1, 1], [], []>} : vector<8x8xbf16>, vector<8x8xbf16>, vector<8x8xf32> -> vector<8x8xf32>
    %38 = arith.truncf %37 : vector<8x8xf32> to vector<8x8xbf16>
    %39 = vector.extract_strided_slice %18 {offsets = [0, 0], sizes = [8, 32], strides = [1, 1]} : vector<32x32xbf16> to vector<8x32xbf16>
    %cst_22 = arith.constant dense<0.000000e+00> : vector<8x32xf32>
    %40 = tpu.matmul %38, %39, %cst_22 {dimension_numbers = #tpu.dot_dimension_numbers<[1], [0], [0], [1], [0, 0, 1, 1], [], []>} : vector<8x8xbf16>, vector<8x32xbf16>, vector<8x32xf32> -> vector<8x32xf32>
    %41 = arith.addf %19, %40 : vector<8x32xf32>
    %42 = vector.extract_strided_slice %9 {offsets = [0, 8], sizes = [8, 8], strides = [1, 1]} : vector<8x32xbf16> to vector<8x8xbf16>
    %43 = vector.extract_strided_slice %16 {offsets = [0, 8], sizes = [8, 8], strides = [1, 1]} : vector<8x32xbf16> to vector<8x8xbf16>
    %cst_23 = arith.constant dense<0.000000e+00> : vector<8x8xf32>
    %44 = tpu.matmul %42, %43, %cst_23 {dimension_numbers = #tpu.dot_dimension_numbers<[1], [1], [0], [0], [0, 0, 1, 0], [], []>} : vector<8x8xbf16>, vector<8x8xbf16>, vector<8x8xf32> -> vector<8x8xf32>
    %cst_24 = arith.constant 0.353553385 : f32
    %45 = vector.broadcast %cst_24 : f32 to vector<8x8xf32>
    %46 = arith.mulf %44, %45 : vector<8x8xf32>
    %cst_25 = arith.constant dense<0xFF800000> : vector<8xf32>
    %47 = vector.multi_reduction <maximumf>, %46, %cst_25 [1] : vector<8x8xf32> to vector<8xf32>
    %48 = vector.shape_cast %47 : vector<8xf32> to vector<8x1xf32>
    %49 = vector.broadcast %48 : vector<8x1xf32> to vector<8x8xf32>
    %50 = arith.subf %46, %49 : vector<8x8xf32>
    %51 = math.exp %50 : vector<8x8xf32>
    %cst_26 = arith.constant dense<0.000000e+00> : vector<8xf32>
    %52 = vector.multi_reduction <add>, %51, %cst_26 [1] : vector<8x8xf32> to vector<8xf32>
    %53 = vector.shape_cast %52 : vector<8xf32> to vector<8x1xf32>
    %54 = tpu.reciprocal %53 {approx = true} : vector<8x1xf32> -> vector<8x1xf32>
    %55 = vector.broadcast %54 : vector<8x1xf32> to vector<8x8xf32>
    %56 = arith.mulf %51, %55 : vector<8x8xf32>
    %57 = arith.truncf %56 : vector<8x8xf32> to vector<8x8xbf16>
    %58 = vector.extract_strided_slice %17 {offsets = [0, 8], sizes = [8, 8], strides = [1, 1]} : vector<8x32xbf16> to vector<8x8xbf16>
    %cst_27 = arith.constant dense<0.000000e+00> : vector<8x8xf32>
    %59 = tpu.matmul %57, %58, %cst_27 {dimension_numbers = #tpu.dot_dimension_numbers<[1], [0], [0], [1], [0, 0, 1, 1], [], []>} : vector<8x8xbf16>, vector<8x8xbf16>, vector<8x8xf32> -> vector<8x8xf32>
    %60 = arith.truncf %59 : vector<8x8xf32> to vector<8x8xbf16>
    %61 = vector.extract_strided_slice %18 {offsets = [8, 0], sizes = [8, 32], strides = [1, 1]} : vector<32x32xbf16> to vector<8x32xbf16>
    %cst_28 = arith.constant dense<0.000000e+00> : vector<8x32xf32>
    %62 = tpu.matmul %60, %61, %cst_28 {dimension_numbers = #tpu.dot_dimension_numbers<[1], [0], [0], [1], [0, 0, 1, 1], [], []>} : vector<8x8xbf16>, vector<8x32xbf16>, vector<8x32xf32> -> vector<8x32xf32>
    %63 = arith.addf %41, %62 : vector<8x32xf32>
    %64 = vector.extract_strided_slice %9 {offsets = [0, 16], sizes = [8, 8], strides = [1, 1]} : vector<8x32xbf16> to vector<8x8xbf16>
    %65 = vector.extract_strided_slice %16 {offsets = [0, 16], sizes = [8, 8], strides = [1, 1]} : vector<8x32xbf16> to vector<8x8xbf16>
    %cst_29 = arith.constant dense<0.000000e+00> : vector<8x8xf32>
    %66 = tpu.matmul %64, %65, %cst_29 {dimension_numbers = #tpu.dot_dimension_numbers<[1], [1], [0], [0], [0, 0, 1, 0], [], []>} : vector<8x8xbf16>, vector<8x8xbf16>, vector<8x8xf32> -> vector<8x8xf32>
    %cst_30 = arith.constant 0.353553385 : f32
    %67 = vector.broadcast %cst_30 : f32 to vector<8x8xf32>
    %68 = arith.mulf %66, %67 : vector<8x8xf32>
    %cst_31 = arith.constant dense<0xFF800000> : vector<8xf32>
    %69 = vector.multi_reduction <maximumf>, %68, %cst_31 [1] : vector<8x8xf32> to vector<8xf32>
    %70 = vector.shape_cast %69 : vector<8xf32> to vector<8x1xf32>
    %71 = vector.broadcast %70 : vector<8x1xf32> to vector<8x8xf32>
    %72 = arith.subf %68, %71 : vector<8x8xf32>
    %73 = math.exp %72 : vector<8x8xf32>
    %cst_32 = arith.constant dense<0.000000e+00> : vector<8xf32>
    %74 = vector.multi_reduction <add>, %73, %cst_32 [1] : vector<8x8xf32> to vector<8xf32>
    %75 = vector.shape_cast %74 : vector<8xf32> to vector<8x1xf32>
    %76 = tpu.reciprocal %75 {approx = true} : vector<8x1xf32> -> vector<8x1xf32>
    %77 = vector.broadcast %76 : vector<8x1xf32> to vector<8x8xf32>
    %78 = arith.mulf %73, %77 : vector<8x8xf32>
    %79 = arith.truncf %78 : vector<8x8xf32> to vector<8x8xbf16>
    %80 = vector.extract_strided_slice %17 {offsets = [0, 16], sizes = [8, 8], strides = [1, 1]} : vector<8x32xbf16> to vector<8x8xbf16>
    %cst_33 = arith.constant dense<0.000000e+00> : vector<8x8xf32>
    %81 = tpu.matmul %79, %80, %cst_33 {dimension_numbers = #tpu.dot_dimension_numbers<[1], [0], [0], [1], [0, 0, 1, 1], [], []>} : vector<8x8xbf16>, vector<8x8xbf16>, vector<8x8xf32> -> vector<8x8xf32>
    %82 = arith.truncf %81 : vector<8x8xf32> to vector<8x8xbf16>
    %83 = vector.extract_strided_slice %18 {offsets = [16, 0], sizes = [8, 32], strides = [1, 1]} : vector<32x32xbf16> to vector<8x32xbf16>
    %cst_34 = arith.constant dense<0.000000e+00> : vector<8x32xf32>
    %84 = tpu.matmul %82, %83, %cst_34 {dimension_numbers = #tpu.dot_dimension_numbers<[1], [0], [0], [1], [0, 0, 1, 1], [], []>} : vector<8x8xbf16>, vector<8x32xbf16>, vector<8x32xf32> -> vector<8x32xf32>
    %85 = arith.addf %63, %84 : vector<8x32xf32>
    %86 = vector.extract_strided_slice %9 {offsets = [0, 24], sizes = [8, 8], strides = [1, 1]} : vector<8x32xbf16> to vector<8x8xbf16>
    %87 = vector.extract_strided_slice %16 {offsets = [0, 24], sizes = [8, 8], strides = [1, 1]} : vector<8x32xbf16> to vector<8x8xbf16>
    %cst_35 = arith.constant dense<0.000000e+00> : vector<8x8xf32>
    %88 = tpu.matmul %86, %87, %cst_35 {dimension_numbers = #tpu.dot_dimension_numbers<[1], [1], [0], [0], [0, 0, 1, 0], [], []>} : vector<8x8xbf16>, vector<8x8xbf16>, vector<8x8xf32> -> vector<8x8xf32>
    %cst_36 = arith.constant 0.353553385 : f32
    %89 = vector.broadcast %cst_36 : f32 to vector<8x8xf32>
    %90 = arith.mulf %88, %89 : vector<8x8xf32>
    %cst_37 = arith.constant dense<0xFF800000> : vector<8xf32>
    %91 = vector.multi_reduction <maximumf>, %90, %cst_37 [1] : vector<8x8xf32> to vector<8xf32>
    %92 = vector.shape_cast %91 : vector<8xf32> to vector<8x1xf32>
    %93 = vector.broadcast %92 : vector<8x1xf32> to vector<8x8xf32>
    %94 = arith.subf %90, %93 : vector<8x8xf32>
    %95 = math.exp %94 : vector<8x8xf32>
    %cst_38 = arith.constant dense<0.000000e+00> : vector<8xf32>
    %96 = vector.multi_reduction <add>, %95, %cst_38 [1] : vector<8x8xf32> to vector<8xf32>
    %97 = vector.shape_cast %96 : vector<8xf32> to vector<8x1xf32>
    %98 = tpu.reciprocal %97 {approx = true} : vector<8x1xf32> -> vector<8x1xf32>
    %99 = vector.broadcast %98 : vector<8x1xf32> to vector<8x8xf32>
    %100 = arith.mulf %95, %99 : vector<8x8xf32>
    %101 = arith.truncf %100 : vector<8x8xf32> to vector<8x8xbf16>
    %102 = vector.extract_strided_slice %17 {offsets = [0, 24], sizes = [8, 8], strides = [1, 1]} : vector<8x32xbf16> to vector<8x8xbf16>
    %cst_39 = arith.constant dense<0.000000e+00> : vector<8x8xf32>
    %103 = tpu.matmul %101, %102, %cst_39 {dimension_numbers = #tpu.dot_dimension_numbers<[1], [0], [0], [1], [0, 0, 1, 1], [], []>} : vector<8x8xbf16>, vector<8x8xbf16>, vector<8x8xf32> -> vector<8x8xf32>
    %104 = arith.truncf %103 : vector<8x8xf32> to vector<8x8xbf16>
    %105 = vector.extract_strided_slice %18 {offsets = [24, 0], sizes = [8, 32], strides = [1, 1]} : vector<32x32xbf16> to vector<8x32xbf16>
    %cst_40 = arith.constant dense<0.000000e+00> : vector<8x32xf32>
    %106 = tpu.matmul %104, %105, %cst_40 {dimension_numbers = #tpu.dot_dimension_numbers<[1], [0], [0], [1], [0, 0, 1, 1], [], []>} : vector<8x8xbf16>, vector<8x32xbf16>, vector<8x32xf32> -> vector<8x32xf32>
    %107 = arith.addf %85, %106 : vector<8x32xf32>
    %c0_41 = arith.constant 0 : index
    %c0_42 = arith.constant 0 : index
    %108 = vector.load %arg8[%c0_41, %c0_42] : memref<1x32xf32, #tpu.memory_space<vmem>>, vector<1x32xf32>
    %109 = vector.broadcast %108 : vector<1x32xf32> to vector<8x32xf32>
    %110 = arith.addf %107, %109 : vector<8x32xf32>
    %111 = arith.extf %1 : vector<8x32xbf16> to vector<8x32xf32>
    %112 = arith.addf %110, %111 : vector<8x32xf32>
    %c0_43 = arith.constant 0 : index
    %c0_44 = arith.constant 0 : index
    %113 = vector.load %arg9[%c0_43, %c0_44] : memref<1x32xf32, #tpu.memory_space<vmem>>, vector<1x32xf32>
    %c0_45 = arith.constant 0 : index
    %c0_46 = arith.constant 0 : index
    %114 = vector.load %arg10[%c0_45, %c0_46] : memref<1x32xf32, #tpu.memory_space<vmem>>, vector<1x32xf32>
    %cst_47 = arith.constant dense<0.000000e+00> : vector<8xf32>
    %115 = vector.multi_reduction <add>, %112, %cst_47 [1] : vector<8x32xf32> to vector<8xf32>
    %116 = vector.shape_cast %115 : vector<8xf32> to vector<8x1xf32>
    %cst_48 = arith.constant 3.200000e+01 : f32
    %117 = vector.broadcast %cst_48 : f32 to vector<8x1xf32>
    %118 = arith.divf %116, %117 : vector<8x1xf32>
    %119 = vector.broadcast %118 : vector<8x1xf32> to vector<8x32xf32>
    %120 = arith.subf %112, %119 : vector<8x32xf32>
    %121 = arith.mulf %120, %120 : vector<8x32xf32>
    %cst_49 = arith.constant dense<0.000000e+00> : vector<8xf32>
    %122 = vector.multi_reduction <add>, %121, %cst_49 [1] : vector<8x32xf32> to vector<8xf32>
    %123 = vector.shape_cast %122 : vector<8xf32> to vector<8x1xf32>
    %cst_50 = arith.constant 3.200000e+01 : f32
    %124 = vector.broadcast %cst_50 : f32 to vector<8x1xf32>
    %125 = arith.divf %123, %124 : vector<8x1xf32>
    %cst_51 = arith.constant 9.99999974E-6 : f32
    %126 = vector.broadcast %cst_51 : f32 to vector<8x1xf32>
    %127 = arith.addf %125, %126 : vector<8x1xf32>
    %128 = math.rsqrt %127 : vector<8x1xf32>
    %129 = vector.broadcast %128 : vector<8x1xf32> to vector<8x32xf32>
    %130 = arith.mulf %120, %129 : vector<8x32xf32>
    %131 = vector.broadcast %113 : vector<1x32xf32> to vector<8x32xf32>
    %132 = arith.mulf %130, %131 : vector<8x32xf32>
    %133 = vector.broadcast %114 : vector<1x32xf32> to vector<8x32xf32>
    %134 = arith.addf %132, %133 : vector<8x32xf32>
    %135 = arith.truncf %134 : vector<8x32xf32> to vector<8x32xbf16>
    %c0_52 = arith.constant 0 : index
    %c0_53 = arith.constant 0 : index
    %c0_54 = arith.constant 0 : index
    %136 = vector.load %arg11[%c0_52, %c0_53, %c0_54] : memref<1x8x32xbf16, #tpu.memory_space<vmem>>, vector<1x8x32xbf16>
    %137 = vector.shape_cast %136 : vector<1x8x32xbf16> to vector<8x32xbf16>
    %138 = vector.shape_cast %135 : vector<8x32xbf16> to vector<1x8x32xbf16>
    tpu.vector_store %arg11[%c0_52, %c0_53, %c0_54], %138 {strides = array<i32>} : memref<1x8x32xbf16, #tpu.memory_space<vmem>>, vector<1x8x32xbf16>,
    return
  }
  func.func @transform_0(%arg0: i32) -> (i32, i32, i32) {
    %c0_i32 = arith.constant 0 : i32
    %c0_i32_0 = arith.constant 0 : i32
    %c0_i32_1 = arith.constant 0 : i32
    return %arg0, %c0_i32, %c0_i32_0 : i32, i32, i32
  }
  func.func @transform_1(%arg0: i32) -> (i32, i32, i32) {
    %c0_i32 = arith.constant 0 : i32
    %c0_i32_0 = arith.constant 0 : i32
    %c0_i32_1 = arith.constant 0 : i32
    return %arg0, %c0_i32, %c0_i32_0 : i32, i32, i32
  }
  func.func @transform_2(%arg0: i32) -> (i32, i32) {
    %c0_i32 = arith.constant 0 : i32
    %c0_i32_0 = arith.constant 0 : i32
    %c0_i32_1 = arith.constant 0 : i32
    return %c0_i32, %c0_i32_0 : i32, i32
  }
  func.func @transform_3(%arg0: i32) -> (i32, i32) {
    %c0_i32 = arith.constant 0 : i32
    %c0_i32_0 = arith.constant 0 : i32
    %c0_i32_1 = arith.constant 0 : i32
    return %c0_i32, %c0_i32_0 : i32, i32
  }
  func.func @transform_4(%arg0: i32) -> (i32, i32) {
    %c0_i32 = arith.constant 0 : i32
    %c0_i32_0 = arith.constant 0 : i32
    %c0_i32_1 = arith.constant 0 : i32
    return %c0_i32, %c0_i32_0 : i32, i32
  }
  func.func @transform_5(%arg0: i32) -> (i32, i32) {
    %c0_i32 = arith.constant 0 : i32
    %c0_i32_0 = arith.constant 0 : i32
    %c0_i32_1 = arith.constant 0 : i32
    return %c0_i32, %c0_i32_0 : i32, i32
  }
  func.func @transform_6(%arg0: i32) -> (i32, i32) {
    %c0_i32 = arith.constant 0 : i32
    %c0_i32_0 = arith.constant 0 : i32
    %c0_i32_1 = arith.constant 0 : i32
    return %c0_i32, %c0_i32_0 : i32, i32
  }
  func.func @transform_7(%arg0: i32) -> (i32, i32) {
    %c0_i32 = arith.constant 0 : i32
    %c0_i32_0 = arith.constant 0 : i32
    %c0_i32_1 = arith.constant 0 : i32
    return %c0_i32, %c0_i32_0 : i32, i32
  }
  func.func @transform_8(%arg0: i32) -> (i32, i32) {
    %c0_i32 = arith.constant 0 : i32
    %c0_i32_0 = arith.constant 0 : i32
    %c0_i32_1 = arith.constant 0 : i32
    return %c0_i32, %c0_i32_0 : i32, i32
  }
  func.func @transform_9(%arg0: i32) -> (i32, i32) {
    %c0_i32 = arith.constant 0 : i32
    %c0_i32_0 = arith.constant 0 : i32
    %c0_i32_1 = arith.constant 0 : i32
    return %c0_i32, %c0_i32_0 : i32, i32
  }
  func.func @transform_10(%arg0: i32) -> (i32, i32, i32) {
    %c0_i32 = arith.constant 0 : i32
    %c0_i32_0 = arith.constant 0 : i32
    %c0_i32_1 = arith.constant 0 : i32
    return %arg0, %c0_i32, %c0_i32_0 : i32, i32, i32
  }
}

</mosaic_0001>

<bundles_post_ra>
// kernel: tab_pfn_forward.14
= control target key start
LH: loop header
LB: loop body
LE: loop exit
PB: predicated region body
PF: predicated region fallthrough
CT: control target
= control target key end

     0   :  { %s453_s18 = smov 0   ;;  %s489_s0 = inlined_call_operand.vmem [shape: bf16[16,8], index: 0, kind: input, shape index: {}]   ;;  %s490_s1 = inlined_call_operand.vmem [shape: bf16[8,32], index: 1, kind: input, shape index: {}]   ;;  %s491_s2 = inlined_call_operand.vmem [shape: f32[1,32], index: 2, kind: input, shape index: {}]   ;;  %s492_s3 = inlined_call_operand.vmem [shape: f32[1,32], index: 3, kind: input, shape index: {}]   ;;  %s493_s4 = inlined_call_operand.vmem [shape: f32[1,32], index: 4, kind: input, shape index: {}]   ;;  %s494_s5 = inlined_call_operand.vmem [shape: bf16[16,32], index: 5, kind: output, shape index: {}]  }
   0x1 LB: > { %s375_s19 = sadd.s32 4294967295, %s419_s18   ;;  %p379_p0 = scmp.ge.s32.totalorder %s419_s18, 1  ;;  %s419_s18 = sphi %s453_s18, %s15_s18  }
   0x2   : > { %p186_p1 = scmp.lt.s32.totalorder %s419_s18, 3 }
   0x4   : > { %p187_p2 = pnand %p379_p0, %p186_p1 }
   0x5   : > { %v222_v0 = vld [vmem:[%s490_s1] sm:$0xf] (!%p187_p2)  ;;  %vm234_vm0 = vcmask (!%p187_p2), 1043456   ;;  %p212_p3 = scmp.lt.s32.totalorder (!%p187_p2), %s375_s19, 1  ;;  %v421_v1 = vmov (!%p187_p2), 0.0   ;;  %vm422_vm1 = vmmov (!%p187_p2), 0  }
   0x6   : > { %190 = sbr.rel (%p187_p2) target bundleno = 581 (0x245), region = 40  ;;  %391 = vmatprep.subr.bf16.mxu0 (!%p187_p2), %v421_v1  ;;  %v236_v2 = vsel (!%p187_p2), %vm234_vm0, %v222_v0, 0  ;;  %393 = vmatprep.mubr.msk.bf16.mxu0 (!%p187_p2), %vm422_vm1, %v421_v1  ;;  %vm230_vm2 = vcmask (!%p187_p2), 64512   ;;  %v382_v4 = vld [vmem:[%s491_s2] ss:$0 sm:$0xff] (!%p187_p2)  ;;  %vm290_vm3 = vcmask (!%p187_p2), 261120  }
   0x7   : > { %392 = vmatpush3.bf16.msra.mxu0 (!%p187_p2), %v236_v2  ;;  %v385_v30 = vld [vmem:[%s492_s3] ss:$0 sm:$0xff] (!%p187_p2)  ;;  %vm320_vm4 = vcmask (!%p187_p2), 257024  }
   0x8   : > { %v386_v32 = vld [vmem:[%s493_s4] ss:$0 sm:$0xff] (!%p187_p2) }
   0xd   : > { %s496_s19 = smov (!%p212_p3, %s375_s19), 1 }
   0xe   : > { %s380_s22 = sshll.u32 %s496_s19, 2 }
   0xf   : > { %s215_s25 = scalar_lea.vmem %s489_s0, %s380_s22  ;;  %s219_s9 = scalar_lea.vmem %s494_s5, %s380_s22 }
  0x10   : > { %v221_v3 = vld [vmem:[%s215_s25] sm:$0xf] }
  0x11   : > { %394 = vmatmul.mubr.msk.bf16.vlgmr.msra.gmra.mrb[0].mxu0 %vm230_vm2, %v221_v3 }
  0xe4   : > { %v272_v5 = vpop.f32.mrb[0].mxu0 }
  0xe5   : > { %v273_v6 = vadd.f32 %v382_v4, %v272_v5  ;;  %v395_v7 = vpop.f32.mrb[1].mxu0 }
  0xe6   : > { %v275_v8 = vpop.f32.mrb[2].mxu0 }
  0xe7   : > { %v278_v9 = vmin.f32 %v273_v6, 20.0  ;;  %v396_v10 = vpop.f32.mrb[3].mxu0 }
  0xe9   : > { %v279_v11 = vmul.f32 1.442695, %v278_v9 }
  0xeb   : > { %407 = vpow2.f32 %v279_v11 }
  0xf5   : > { %v408_v12 = vpop.eup %407 }
  0xf6   : > { %v281_v13 = vadd.f32 1.0, %v408_v12 }
  0xf8   : > { %v282_v14 = vmul.f32 %v281_v13, %v281_v13 }
  0xfa   : > { %v285_v15 = vadd.f32 1.0, %v282_v14  ;;  %v384_v16 = vadd.f32 -1.0, %v282_v14 }
  0xfc   : > { %409 = vrcp.f32 %v285_v15  ;;  %v284_v17 = vmul.f32 %v384_v16, %v273_v6 }
 0x106   : > { %v410_v18 = vpop.eup %409 }
 0x107   : > { %v287_v19 = vmul.f32 %v410_v18, %v284_v17 }
 0x109   : > { %v291_v20 = vsel %vm290_vm3, %v287_v19, 0.0 }
 0x10a   : > { %292 = vadd.xlane.f32.xlu0 %v291_v20 }
 0x197   : > { %v293_v21 = vpop.xlane.xlu0 %292 }
 0x198   : > { %v295_v22 = vmul.f32 0.03125, %v293_v21 }
 0x19a   : > { %v296_v23 = vsub.f32 %v287_v19, %v295_v22 }
 0x19c   : > { %v297_v24 = vmul.f32 %v296_v23, %v296_v23 }
 0x19e   : > { %v298_v25 = vsel %vm290_vm3, %v297_v24, 0.0 }
 0x19f   : > { %299 = vadd.xlane.f32.xlu0 %v298_v25 }
 0x22c   : > { %v300_v26 = vpop.xlane.xlu0 %299 }
 0x22d   : > { %v301_v27 = vmul.f32 0.03125, %v300_v26 }
 0x22f   : > { %v302_v28 = vadd.f32 1e-05, %v301_v27 }
 0x231   : > { %411 = vrsqrt.f32 %v302_v28 }
 0x23b   : > { %v412_v29 = vpop.eup %411 }
 0x23c   : > { %v304_v31 = vmul.f32 %v412_v29, %v296_v23 }
 0x23e   : > { %v311_v33 = vmul.f32 %v385_v30, %v304_v31 }
 0x240   : > { %v318_v34 = vadd.f32 %v386_v32, %v311_v33 }
 0x242   : > { %v319_v35 = vpack.c.bf16 %v318_v34, %v318_v34 }
 0x244   : > { %321 = vst.msk [vmem:[%s219_s9] sm:$0xf] %vm320_vm4, %v319_v35 }
 0x245 PF: > { %s15_s18 = sadd.s32 1, %s419_s18  }
 0x246   : > { %p12_p4 = scmp.ge.s32.totalorder %s15_s18, 4  }
 0x248   :  { %14 = sbr.rel (!%p12_p4) target bundleno = 1 (0x1), region = 70 }

// kernel: tab_pfn_forward.16
= control target key start
LH: loop header
LB: loop body
LE: loop exit
PB: predicated region body
PF: predicated region fallthrough
CT: control target
= control target key end

     0   :  { %s647_s24 = smov 0   ;;  %s704_s0 = inlined_call_operand.vmem [shape: bf16[16,32], index: 0, kind: input, shape index: {}]   ;;  %s705_s1 = inlined_call_operand.vmem [shape: bf16[32,64], index: 1, kind: input, shape index: {}]   ;;  %s706_s2 = inlined_call_operand.vmem [shape: f32[1,64], index: 2, kind: input, shape index: {}]   ;;  %s707_s3 = inlined_call_operand.vmem [shape: bf16[64,32], index: 3, kind: input, shape index: {}]   ;;  %s708_s4 = inlined_call_operand.vmem [shape: f32[1,32], index: 4, kind: input, shape index: {}]   ;;  %s709_s5 = inlined_call_operand.vmem [shape: f32[1,32], index: 5, kind: input, shape index: {}]   ;;  %s710_s6 = inlined_call_operand.vmem [shape: f32[1,32], index: 6, kind: input, shape index: {}]   ;;  %s711_s7 = inlined_call_operand.vmem [shape: bf16[16,32], index: 7, kind: output, shape index: {}]  }
   0x1 LB: > { %s525_s25 = sadd.s32 4294967295, %s603_s24   ;;  %p529_p0 = scmp.ge.s32.totalorder %s603_s24, 1  ;;  %s603_s24 = sphi %s647_s24, %s17_s24  }
   0x2   : > { %p236_p1 = scmp.lt.s32.totalorder %s603_s24, 3 }
   0x4   : > { %p237_p2 = pnand %p529_p0, %p236_p1 }
   0x5   : > { %v585_v0 = vld [vmem:[%s705_s1] sm:$0xff] (!%p237_p2)   ;;  %v605_v1 = vmov (!%p237_p2), 0.0   ;;  %v586_v2 = vld [vmem:[%s705_s1 + $0x8] sm:$0xff] (!%p237_p2)   ;;  %vm606_vm0 = vmmov (!%p237_p2), 0   ;;  %p266_p3 = scmp.lt.s32.totalorder (!%p237_p2), %s525_s25, 1  ;;  %vm299_vm1 = vcmask (!%p237_p2), 261120  }
   0x6   : > { %240 = sbr.rel (%p237_p2) target bundleno = 799 (0x31f), region = 48  ;;  %555 = vmatprep.subr.bf16.mxu0 (!%p237_p2), %v605_v1  ;;  %563 = vmatprep.subr.bf16.mxu1 (!%p237_p2), %v605_v1  ;;  %v587_v4 = vld [vmem:[%s707_s3] sm:$0xff] (!%p237_p2)   ;;  %v588_v5 = vld [vmem:[%s707_s3 + $0x8] sm:$0xff] (!%p237_p2)   ;;  %v589_v6 = vld [vmem:[%s707_s3 + $0x10] sm:$0xff] (!%p237_p2)   ;;  %vm393_vm2 = vcmask (!%p237_p2), 523264   ;;  %vm470_vm3 = vcmask (!%p237_p2), 257024  }
   0x7   : > { %556 = vmatpush3.bf16.msra.mxu0 (!%p237_p2), %v585_v0  ;;  %559 = vmatprep.mubr.msk.bf16.mxu0 (!%p237_p2), %vm606_vm0, %v605_v1  ;;  %v590_v7 = vld [vmem:[%s707_s3 + $0x18] sm:$0xff] (!%p237_p2)   ;;  %v532_v8 = vld [vmem:[%s706_s2] ss:$0 sm:$0xff] (!%p237_p2) }
   0x8   : > { %557 = vmatprep.subr.bf16.mxu0 (!%p237_p2), %v605_v1  ;;  %571 = vmatprep.mubr.msk.bf16.mxu1 (!%p237_p2), %vm606_vm0, %v605_v1  ;;  %v537_v25 = vld [vmem:[%s708_s4] ss:$0 sm:$0xff] (!%p237_p2) }
   0x9   : > { %564 = vmatpush3.bf16.msra.mxu1 (!%p237_p2), %v587_v4  ;;  %v543_v43 = vld [vmem:[%s709_s5] ss:$0 sm:$0xff] (!%p237_p2) }
   0xa   : > { %565 = vmatprep.subr.bf16.mxu1 (!%p237_p2), %v605_v1  ;;  %v544_v45 = vld [vmem:[%s710_s6] ss:$0 sm:$0xff] (!%p237_p2) }
   0xb   : > { %558 = vmatpush3.bf16.msra.mxu0 (!%p237_p2), %v586_v2 }
   0xd   : > { %s713_s25 = smov (!%p266_p3, %s525_s25), 1  ;;  %566 = vmatpush3.bf16.msra.mxu1 %v588_v5 }
   0xe   : > { %s530_s30 = sshll.u32 %s713_s25, 2  ;;  %567 = vmatprep.subr.bf16.mxu1 %v605_v1 }
   0xf   : > { %s269_s10 = scalar_lea.vmem %s704_s0, %s530_s30  ;;  %s273_s9 = scalar_lea.vmem %s711_s7, %s530_s30 }
  0x10   : > { %v275_v3 = vld [vmem:[%s269_s10] sm:$0xf] }
  0x11   : > { %560 = vmatmul.mubr.msk.bf16.vlgmr.msra.gmra.mrb[0].mxu0 %vm299_vm1, %v275_v3  ;;  %568 = vmatpush3.bf16.msra.mxu1 %v589_v6  ;;  %v437_v26 = vunpack.c.l.bf16 %v275_v3 }
  0x12   : > { %569 = vmatprep.subr.bf16.mxu1 %v605_v1 }
  0x15   : > { %570 = vmatpush3.bf16.msra.mxu1 %v590_v7 }
  0xe4   : > { %v337_v9 = vpop.f32.mrb[0].mxu0 }
  0xe5   : > { %v338_v10 = vadd.f32 %v532_v8, %v337_v9  ;;  %v561_v11 = vpop.f32.mrb[1].mxu0 }
  0xe6   : > { %v340_v12 = vpop.f32.mrb[2].mxu0 }
  0xe7   : > { %v343_v13 = vmin.f32 %v338_v10, 20.0  ;;  %v562_v14 = vpop.f32.mrb[3].mxu0 }
  0xe9   : > { %v344_v15 = vmul.f32 1.442695, %v343_v13 }
  0xeb   : > { %591 = vpow2.f32 %v344_v15 }
  0xf5   : > { %v592_v16 = vpop.eup %591 }
  0xf6   : > { %v346_v17 = vadd.f32 1.0, %v592_v16 }
  0xf8   : > { %v347_v18 = vmul.f32 %v346_v17, %v346_v17 }
  0xfa   : > { %v350_v19 = vadd.f32 1.0, %v347_v18  ;;  %v536_v20 = vadd.f32 -1.0, %v347_v18 }
  0xfc   : > { %593 = vrcp.f32 %v350_v19  ;;  %v349_v21 = vmul.f32 %v536_v20, %v338_v10 }
 0x106   : > { %v594_v22 = vpop.eup %593 }
 0x107   : > { %v352_v23 = vmul.f32 %v594_v22, %v349_v21 }
 0x109   : > { %v353_v24 = vpack.c.bf16 %v352_v23, %v352_v23 }
 0x10b   : > { %572 = vmatmul.mubr.msk.bf16.vlgmr.msra.gmra.mrb[0].mxu1 %vm393_vm2, %v353_v24 }
 0x1de   : > { %v431_v27 = vpop.f32.mrb[0].mxu1 }
 0x1df   : > { %v432_v28 = vadd.f32 %v537_v25, %v431_v27  ;;  %v573_v29 = vpop.f32.mrb[1].mxu1 }
 0x1e0   : > { %v434_v30 = vpop.f32.mrb[2].mxu1 }
 0x1e1   : > { %v574_v31 = vpop.f32.mrb[3].mxu1  ;;  %v438_v32 = vadd.f32 %v437_v26, %v432_v28 }
 0x1e3   : > { %v441_v33 = vsel %vm299_vm1, %v438_v32, 0.0 }
 0x1e4   : > { %442 = vadd.xlane.f32.xlu0 %v441_v33 }
 0x271   : > { %v443_v34 = vpop.xlane.xlu0 %442 }
 0x272   : > { %v445_v35 = vmul.f32 0.03125, %v443_v34 }
 0x274   : > { %v446_v36 = vsub.f32 %v438_v32, %v445_v35 }
 0x276   : > { %v447_v37 = vmul.f32 %v446_v36, %v446_v36 }
 0x278   : > { %v448_v38 = vsel %vm299_vm1, %v447_v37, 0.0 }
 0x279   : > { %449 = vadd.xlane.f32.xlu0 %v448_v38 }
 0x306   : > { %v450_v39 = vpop.xlane.xlu0 %449 }
 0x307   : > { %v451_v40 = vmul.f32 0.03125, %v450_v39 }
 0x309   : > { %v452_v41 = vadd.f32 1e-05, %v451_v40 }
 0x30b   : > { %595 = vrsqrt.f32 %v452_v41 }
 0x315   : > { %v596_v42 = vpop.eup %595 }
 0x316   : > { %v454_v44 = vmul.f32 %v596_v42, %v446_v36 }
 0x318   : > { %v461_v46 = vmul.f32 %v543_v43, %v454_v44 }
 0x31a   : > { %v468_v47 = vadd.f32 %v544_v45, %v461_v46 }
 0x31c   : > { %v469_v48 = vpack.c.bf16 %v468_v47, %v468_v47 }
 0x31e   : > { %471 = vst.msk [vmem:[%s273_s9] sm:$0xf] %vm470_vm3, %v469_v48 }
 0x31f PF: > { %s17_s24 = sadd.s32 1, %s603_s24  }
 0x320   : > { %p14_p4 = scmp.ge.s32.totalorder %s17_s24, 4  }
 0x322   :  { %16 = sbr.rel (!%p14_p4) target bundleno = 1 (0x1), region = 78 }

// kernel: tab_pfn_forward.13
= control target key start
LH: loop header
LB: loop body
LE: loop exit
PB: predicated region body
PF: predicated region fallthrough
CT: control target
= control target key end

     0   :  { %s458_s18 = smov 0   ;;  %s494_s0 = inlined_call_operand.vmem [shape: bf16[16,16], index: 0, kind: input, shape index: {}]   ;;  %s495_s1 = inlined_call_operand.vmem [shape: bf16[16,32], index: 1, kind: input, shape index: {}]   ;;  %s496_s2 = inlined_call_operand.vmem [shape: f32[1,32], index: 2, kind: input, shape index: {}]   ;;  %s497_s3 = inlined_call_operand.vmem [shape: f32[1,32], index: 3, kind: input, shape index: {}]   ;;  %s498_s4 = inlined_call_operand.vmem [shape: f32[1,32], index: 4, kind: input, shape index: {}]   ;;  %s499_s5 = inlined_call_operand.vmem [shape: bf16[16,32], index: 5, kind: output, shape index: {}]  }
   0x1 LB: > { %s378_s19 = sadd.s32 4294967295, %s424_s18   ;;  %p382_p0 = scmp.ge.s32.totalorder %s424_s18, 1  ;;  %s424_s18 = sphi %s458_s18, %s15_s18  }
   0x2   : > { %p186_p1 = scmp.lt.s32.totalorder %s424_s18, 3 }
   0x4   : > { %p187_p2 = pnand %p382_p0, %p186_p1 }
   0x5   : > { %v411_v0 = vld [vmem:[%s495_s1] sm:$0xff] (!%p187_p2)   ;;  %v426_v1 = vmov (!%p187_p2), 0.0   ;;  %p212_p3 = scmp.lt.s32.totalorder (!%p187_p2), %s378_s19, 1  ;;  %vm427_vm0 = vmmov (!%p187_p2), 0   ;;  %vm237_vm1 = vcmask (!%p187_p2), 130048   ;;  %vm293_vm2 = vcmask (!%p187_p2), 261120  }
   0x6   : > { %190 = sbr.rel (%p187_p2) target bundleno = 581 (0x245), region = 40  ;;  %395 = vmatprep.subr.bf16.mxu0 (!%p187_p2), %v426_v1  ;;  %397 = vmatprep.mubr.msk.bf16.mxu0 (!%p187_p2), %vm427_vm0, %v426_v1  ;;  %v385_v3 = vld [vmem:[%s496_s2] ss:$0 sm:$0xff] (!%p187_p2)  ;;  %vm323_vm3 = vcmask (!%p187_p2), 257024  }
   0x7   : > { %396 = vmatpush3.bf16.msra.mxu0 (!%p187_p2), %v411_v0  ;;  %v389_v29 = vld [vmem:[%s497_s3] ss:$0 sm:$0xff] (!%p187_p2) }
   0x8   : > { %v390_v31 = vld [vmem:[%s498_s4] ss:$0 sm:$0xff] (!%p187_p2) }
   0xd   : > { %s501_s19 = smov (!%p212_p3, %s378_s19), 1 }
   0xe   : > { %s383_s22 = sshll.u32 %s501_s19, 2 }
   0xf   : > { %s215_s25 = scalar_lea.vmem %s494_s0, %s383_s22  ;;  %s219_s9 = scalar_lea.vmem %s499_s5, %s383_s22 }
  0x10   : > { %v221_v2 = vld [vmem:[%s215_s25] sm:$0xf] }
  0x11   : > { %398 = vmatmul.mubr.msk.bf16.vlgmr.msra.gmra.mrb[0].mxu0 %vm237_vm1, %v221_v2 }
  0xe4   : > { %v275_v4 = vpop.f32.mrb[0].mxu0 }
  0xe5   : > { %v276_v5 = vadd.f32 %v385_v3, %v275_v4  ;;  %v399_v6 = vpop.f32.mrb[1].mxu0 }
  0xe6   : > { %v278_v7 = vpop.f32.mrb[2].mxu0 }
  0xe7   : > { %v281_v8 = vmin.f32 %v276_v5, 20.0  ;;  %v400_v9 = vpop.f32.mrb[3].mxu0 }
  0xe9   : > { %v282_v10 = vmul.f32 1.442695, %v281_v8 }
  0xeb   : > { %412 = vpow2.f32 %v282_v10 }
  0xf5   : > { %v413_v11 = vpop.eup %412 }
  0xf6   : > { %v284_v12 = vadd.f32 1.0, %v413_v11 }
  0xf8   : > { %v285_v13 = vmul.f32 %v284_v12, %v284_v12 }
  0xfa   : > { %v288_v14 = vadd.f32 1.0, %v285_v13  ;;  %v388_v15 = vadd.f32 -1.0, %v285_v13 }
  0xfc   : > { %414 = vrcp.f32 %v288_v14  ;;  %v287_v16 = vmul.f32 %v388_v15, %v276_v5 }
 0x106   : > { %v415_v17 = vpop.eup %414 }
 0x107   : > { %v290_v18 = vmul.f32 %v415_v17, %v287_v16 }
 0x109   : > { %v294_v19 = vsel %vm293_vm2, %v290_v18, 0.0 }
 0x10a   : > { %295 = vadd.xlane.f32.xlu0 %v294_v19 }
 0x197   : > { %v296_v20 = vpop.xlane.xlu0 %295 }
 0x198   : > { %v298_v21 = vmul.f32 0.03125, %v296_v20 }
 0x19a   : > { %v299_v22 = vsub.f32 %v290_v18, %v298_v21 }
 0x19c   : > { %v300_v23 = vmul.f32 %v299_v22, %v299_v22 }
 0x19e   : > { %v301_v24 = vsel %vm293_vm2, %v300_v23, 0.0 }
 0x19f   : > { %302 = vadd.xlane.f32.xlu0 %v301_v24 }
 0x22c   : > { %v303_v25 = vpop.xlane.xlu0 %302 }
 0x22d   : > { %v304_v26 = vmul.f32 0.03125, %v303_v25 }
 0x22f   : > { %v305_v27 = vadd.f32 1e-05, %v304_v26 }
 0x231   : > { %416 = vrsqrt.f32 %v305_v27 }
 0x23b   : > { %v417_v28 = vpop.eup %416 }
 0x23c   : > { %v307_v30 = vmul.f32 %v417_v28, %v299_v22 }
 0x23e   : > { %v314_v32 = vmul.f32 %v389_v29, %v307_v30 }
 0x240   : > { %v321_v33 = vadd.f32 %v390_v31, %v314_v32 }
 0x242   : > { %v322_v34 = vpack.c.bf16 %v321_v33, %v321_v33 }
 0x244   : > { %324 = vst.msk [vmem:[%s219_s9] sm:$0xf] %vm323_vm3, %v322_v34 }
 0x245 PF: > { %s15_s18 = sadd.s32 1, %s424_s18  }
 0x246   : > { %p12_p4 = scmp.ge.s32.totalorder %s15_s18, 4  }
 0x248   :  { %14 = sbr.rel (!%p12_p4) target bundleno = 1 (0x1), region = 70 }

// kernel: tab_pfn_forward.15
= control target key start
LH: loop header
LB: loop body
LE: loop exit
PB: predicated region body
PF: predicated region fallthrough
CT: control target
= control target key end

     0   :  { %s1316_s24 = smov 0   ;;  %s1466_s0 = inlined_call_operand.vmem [shape: bf16[2,8,32], index: 0, kind: input, shape index: {}]   ;;  %s1467_s1 = inlined_call_operand.vmem [shape: bf16[32,96], index: 1, kind: input, shape index: {}]   ;;  %s1468_s2 = inlined_call_operand.vmem [shape: f32[1,96], index: 2, kind: input, shape index: {}]   ;;  %s1469_s3 = inlined_call_operand.vmem [shape: bf16[32,32], index: 3, kind: input, shape index: {}]   ;;  %s1470_s4 = inlined_call_operand.vmem [shape: f32[1,32], index: 4, kind: input, shape index: {}]   ;;  %s1471_s5 = inlined_call_operand.vmem [shape: f32[1,32], index: 5, kind: input, shape index: {}]   ;;  %s1472_s6 = inlined_call_operand.vmem [shape: f32[1,32], index: 6, kind: input, shape index: {}]   ;;  %s1473_s7 = inlined_call_operand.vmem [shape: bf16[2,8,32], index: 7, kind: output, shape index: {}]  }
   0x1 LB: > { %s1079_s25 = sadd.s32 4294967295, %s1261_s24   ;;  %p1083_p0 = scmp.ge.s32.totalorder %s1261_s24, 1  ;;  %s1261_s24 = sphi %s1316_s24, %s17_s24  }
   0x2   : > { %p236_p1 = scmp.lt.s32.totalorder %s1261_s24, 3 }
   0x4   : > { %p237_p2 = pnand %p1083_p0, %p236_p1 }
   0x5   : > { %v1235_v0 = vld [vmem:[%s1467_s1] sm:$0xff] (!%p237_p2)   ;;  %v1263_v1 = vmov (!%p237_p2), 0.0   ;;  %v1236_v2 = vld [vmem:[%s1467_s1 + $0x8] sm:$0xff] (!%p237_p2)   ;;  %vm1264_vm0 = vmmov (!%p237_p2), 0   ;;  %p266_p3 = scmp.lt.s32.totalorder (!%p237_p2), %s1079_s25, 1  ;;  %vm299_vm1 = vcmask (!%p237_p2), 261120  }
   0x6   : > { %240 = sbr.rel (%p237_p2) target bundleno = 2932 (0xb74), region = 48  ;;  %1134 = vmatprep.subr.bf16.mxu0 (!%p237_p2), %v1263_v1  ;;  %1142 = vmatprep.subr.bf16.mxu1 (!%p237_p2), %v1263_v1  ;;  %v1086_v4 = vld [vmem:[%s1468_s2] ss:$0 sm:$0xff] (!%p237_p2)  ;;  %s1265_s13 = smov (!%p237_p2), 120   ;;  %vm351_vm2 = vcmask (!%p237_p2), 64512   ;;  %vm416_vm3 = vcmask (!%p237_p2), 1043456  }
   0x7   : > { %1135 = vmatpush3.bf16.msra.mxu0 (!%p237_p2), %v1235_v0  ;;  %1138 = vmatprep.mubr.msk.bf16.mxu0 (!%p237_p2), %vm1264_vm0, %v1263_v1  ;;  %s1266_s14 = smov (!%p237_p2), 96   ;;  %s1267_s15 = smov (!%p237_p2), 88   ;;  %v344_v50 = vld [vmem:[%s1469_s3] sm:$0xf] (!%p237_p2)  ;;  %v345_v52 = vld [vmem:[%s1469_s3 + $0x4] sm:$0xf] (!%p237_p2) }
   0x8   : > { %1136 = vmatprep.subr.bf16.mxu0 (!%p237_p2), %v1263_v1  ;;  %1144 = vmatprep.mubr.msk.bf16.mxu1 (!%p237_p2), %vm1264_vm0, %v1263_v1  ;;  %s1268_s16 = smov (!%p237_p2), 64   ;;  %s1269_s17 = smov (!%p237_p2), 56   ;;  %v623_v51 = vsel (!%p237_p2), %vm416_vm3, %v344_v50, 0  ;;  %v577_v53 = vsel (!%p237_p2), %vm416_vm3, %v345_v52, 0  ;;  %vm1024_vm4 = vcmask (!%p237_p2), 257024  }
   0x9   : > { %s1270_s18 = smov (!%p237_p2), 112   ;;  %s1271_s19 = smov (!%p237_p2), 80  }
   0xa   : > { %s1272_s26 = smov (!%p237_p2), 72   ;;  %s1273_s27 = smov (!%p237_p2), 104  }
   0xb   : > { %1137 = vmatpush3.bf16.msra.mxu0 (!%p237_p2), %v1236_v2  ;;  %s1274_s28 = smov (!%p237_p2), 48   ;;  %s1275_s9 = smov (!%p237_p2), 40  }
   0xc   : > { %1148 = vmatprep.subr.bf16.mxu0 (!%p237_p2), %v1263_v1 }
   0xd   : > { %s1475_s25 = smov (!%p266_p3, %s1079_s25), 1 }
   0xe   : > { %s1084_s30 = sshll.u32 %s1475_s25, 2 }
   0xf   : > { %s269_s10 = scalar_lea.vmem %s1466_s0, %s1084_s30  ;;  %s273_s20 = scalar_lea.vmem %s1473_s7, %s1084_s30 }
  0x10   : > { %v1346_v3 = vld [vmem:[%s269_s10] sm:$0xf] }
  0x11   : > { %1139 = vmatmul.mubr.msk.bf16.vlgmr.msra.gmra.mrb[0].mxu0 %vm299_vm1, %v1346_v3 }
  0x12   : > { %1150 = vmatprep.mubr.msk.bf16.mxu0 %vm1264_vm0, %v1263_v1 }
  0xe4   : > { %v337_v5 = vpop.f32.mrb[0].mxu0 }
  0xe5   : > { %v338_v6 = vadd.f32 %v1086_v4, %v337_v5  ;;  %v1140_v7 = vpop.f32.mrb[1].mxu0 }
  0xe6   : > { %v340_v8 = vpop.f32.mrb[2].mxu0 }
  0xe7   : > { %v1355_v9 = vpack.c.bf16 %v338_v6, %v338_v6  ;;  %v1141_v10 = vpop.f32.mrb[3].mxu0 }
  0xe9   : > { %461 = vrot.lane.b32.xlu1 %v1355_v9, %s1265_s13  ;;  %349 = vrot.lane.b32.xlu0 %v1355_v9, %s1266_s14 }
  0xed   : > { %463 = vrot.lane.b32.xlu0 %v1355_v9, %s1267_s15 }
 0x15b   : > { %v350_v11 = vpop.permute.xlu0 %349  ;;  %v462_v15 = vpop.permute.xlu1 %461 }
 0x15c   : > { %v356_v12 = vsel %vm351_vm2, %v350_v11, 0 }
 0x15d   : > { %1143 = vmatpush3.bf16.xpose.msra.mxu1 %v356_v12 }
 0x15e   : > { %1154 = vmatprep.subr.bf16.mxu1 %v1263_v1 }
 0x15f   : > { %v464_v13 = vpop.permute.xlu0 %463 }
 0x160   : > { %v469_v14 = vsel %vm351_vm2, %v464_v13, 0 }
 0x164   : > { %1145 = vmatmul.mubr.msk.bf16.vlgmr.msra.gmra.mrb[0].mxu1 %vm351_vm2, %v1355_v9 }
 0x165   : > { %1155 = vmatpush3.bf16.xpose.msra.mxu1 %v469_v14  ;;  %1156 = vmatprep.mubr.msk.bf16.mxu1 %vm1264_vm0, %v1263_v1 }
 0x166   : > { %1166 = vmatprep.subr.bf16.mxu1 %v1263_v1 }
 0x16c   : > { %1157 = vmatmul.mubr.msk.bf16.vlgmr.msra.gmra.mrb[4].mxu1 %vm351_vm2, %v462_v15 }
 0x16d   : > { %1168 = vmatprep.mubr.msk.bf16.mxu1 %vm1264_vm0, %v1263_v1  ;;  %1167 = vmatpush3.bf16.msra.mxu1 %v577_v53 }
 0x16e   : > { %1178 = vmatprep.subr.bf16.mxu1 %v1263_v1 }
 0x237   : > { %v392_v16 = vpop.f32.mrb[0].mxu1 }
 0x238   : > { %v398_v17 = vmul.f32 0.35355338, %v392_v16  ;;  %v1146_v18 = vpop.f32.mrb[1].mxu1 }
 0x239   : > { %v395_v19 = vpop.f32.mrb[2].mxu1 }
 0x23a   : > { %v1147_v20 = vpop.f32.mrb[3].mxu1  ;;  %v399_v21 = vsel %vm351_vm2, %v398_v17, -inf }
 0x23b   : > { %400 = vmax.xlane.f32.xlu1 %v399_v21 }
 0x23f   : > { %v505_v22 = vpop.f32.mrb[4].mxu1 }
 0x240   : > { %v511_v23 = vmul.f32 0.35355338, %v505_v22  ;;  %v1158_v24 = vpop.f32.mrb[5].mxu1 }
 0x241   : > { %v508_v25 = vpop.f32.mrb[6].mxu1 }
 0x242   : > { %v1159_v26 = vpop.f32.mrb[7].mxu1  ;;  %v512_v27 = vsel %vm351_vm2, %v511_v23, -inf }
 0x243   : > { %513 = vmax.xlane.f32.xlu0 %v512_v27 }
 0x2c8   : > { %v401_v28 = vpop.xlane.xlu1 %400 }
 0x2c9   : > { %v402_v29 = vsub.f32 %v398_v17, %v401_v28 }
 0x2cb   : > { %v403_v30 = vmul.f32 1.442695, %v402_v29 }
 0x2cd   : > { %1237 = vpow2.f32 %v403_v30 }
 0x2d0   : > { %v514_v31 = vpop.xlane.xlu0 %513 }
 0x2d1   : > { %v515_v32 = vsub.f32 %v511_v23, %v514_v31 }
 0x2d3   : > { %v516_v33 = vmul.f32 1.442695, %v515_v32 }
 0x2d5   : > { %1239 = vpow2.f32 %v516_v33 }
 0x2d7   : > { %v1238_v34 = vpop.eup %1237 }
 0x2d8   : > { %v405_v35 = vsel %vm351_vm2, %v1238_v34, 0.0 }
 0x2d9   : > { %406 = vadd.xlane.f32.xlu0 %v405_v35  ;;  %v346_v35 = vld [vmem:[%s1469_s3 + $0x8] sm:$0xf] }
 0x2df   : > { %v1240_v36 = vpop.eup %1239 }
 0x2e0   : > { %v518_v37 = vsel %vm351_vm2, %v1240_v36, 0.0 }
 0x2e1   : > { %519 = vadd.xlane.f32.xlu1 %v518_v37 }
 0x2ef   : > { %411 = vrot.lane.b32.xlu0 %v1355_v9, %s1268_s16 }
 0x2f2   : > { %524 = vrot.lane.b32.xlu1 %v1355_v9, %s1269_s17 }
 0x2f3   : > { %665 = vrot.lane.b32.xlu0 %v1355_v9, %s1270_s18 }
 0x2f6   : > { %667 = vrot.lane.b32.xlu1 %v1355_v9, %s1271_s19 }
 0x366   : > { %v407_v38 = vpop.xlane.xlu0 %406 }
 0x367   : > { %1241 = vrcp.f32 %v407_v38 }
 0x36a   : > { %v412_v39 = vpop.permute.xlu0 %411 }
 0x36b   : > { %v418_v40 = vsel %vm416_vm3, %v412_v39, 0 }
 0x36c   : > { %1149 = vmatpush3.bf16.msra.mxu0 %v418_v40 }
 0x36d   : > { %1160 = vmatprep.subr.bf16.mxu0 %v1263_v1 }
 0x36e   : > { %v520_v41 = vpop.xlane.xlu1 %519  ;;  %v666_v4 = vpop.permute.xlu0 %665 }
 0x36f   : > { %1243 = vrcp.f32 %v520_v41 }
 0x371   : > { %v1242_v42 = vpop.eup %1241 }
 0x372   : > { %v409_v43 = vmul.f32 %v1242_v42, %v1238_v34  ;;  %v525_v44 = vpop.permute.xlu1 %524 }
 0x373   : > { %v530_v46 = vsel %vm416_vm3, %v525_v44, 0 }
 0x374   : > { %v410_v45 = vpack.c.bf16 %v409_v43, %v409_v43 }
 0x376   : > { %1151 = vmatmul.mubr.msk.bf16.vlgmr.msra.gmra.mrb[4].mxu0 %vm351_vm2, %v410_v45  ;;  %v668_v59 = vpop.permute.xlu1 %667 }
 0x377   : > { %1161 = vmatpush3.bf16.msra.mxu0 %v530_v46  ;;  %1162 = vmatprep.mubr.msk.bf16.mxu0 %vm1264_vm0, %v1263_v1  ;;  %v673_v0 = vsel %vm351_vm2, %v668_v59, 0 }
 0x378   : > { %1172 = vmatprep.subr.bf16.mxu0 %v1263_v1 }
 0x379   : > { %v1244_v47 = vpop.eup %1243 }
 0x37a   : > { %v522_v48 = vmul.f32 %v1244_v47, %v1240_v36  ;;  %v781_v36 = vsel %vm416_vm3, %v346_v35, 0 }
 0x37c   : > { %v523_v49 = vpack.c.bf16 %v522_v48, %v522_v48 }
 0x37e   : > { %1163 = vmatmul.mubr.msk.bf16.vlgmr.msra.gmra.mrb[8].mxu0 %vm351_vm2, %v523_v49 }
 0x37f   : > { %1174 = vmatprep.mubr.msk.bf16.mxu0 %vm1264_vm0, %v1263_v1  ;;  %1173 = vmatpush3.bf16.msra.mxu0 %v623_v51 }
 0x380   : > { %1184 = vmatprep.subr.bf16.mxu0 %v1263_v1 }
 0x449   : > { %v454_v54 = vpop.f32.mrb[4].mxu0 }
 0x44a   : > { %v460_v55 = vpack.c.bf16 %v454_v54, %v454_v54  ;;  %v1152_v56 = vpop.f32.mrb[5].mxu0  ;;  %v347_v54 = vld [vmem:[%s1469_s3 + $0xc] sm:$0xf] }
 0x44b   : > { %v457_v57 = vpop.f32.mrb[6].mxu0 }
 0x44c   : > { %v1153_v58 = vpop.f32.mrb[7].mxu0  ;;  %1175 = vmatmul.mubr.msk.bf16.vlgmr.msra.gmra.mrb[12].mxu0 %vm351_vm2, %v460_v55  ;;  %v940_v55 = vsel %vm416_vm3, %v347_v54, 0 }
 0x44d   : > { %1186 = vmatprep.mubr.msk.bf16.mxu0 %vm1264_vm0, %v1263_v1 }
 0x451   : > { %v566_v60 = vpop.f32.mrb[8].mxu0 }
 0x452   : > { %v572_v61 = vpack.c.bf16 %v566_v60, %v566_v60  ;;  %v1164_v62 = vpop.f32.mrb[9].mxu0 }
 0x453   : > { %v569_v63 = vpop.f32.mrb[10].mxu0 }
 0x454   : > { %v1165_v2 = vpop.f32.mrb[11].mxu0  ;;  %1169 = vmatmul.mubr.msk.bf16.vlgmr.msra.gmra.mrb[8].mxu1 %vm351_vm2, %v572_v61 }
 0x455   : > { %1179 = vmatpush3.bf16.xpose.msra.mxu1 %v673_v0  ;;  %1180 = vmatprep.mubr.msk.bf16.mxu1 %vm1264_vm0, %v1263_v1 }
 0x456   : > { %1190 = vmatprep.subr.bf16.mxu1 %v1263_v1 }
 0x45c   : > { %1181 = vmatmul.mubr.msk.bf16.vlgmr.msra.gmra.mrb[12].mxu1 %vm351_vm2, %v666_v4 }
 0x45d   : > { %1192 = vmatprep.mubr.msk.bf16.mxu1 %vm1264_vm0, %v1263_v1  ;;  %1191 = vmatpush3.bf16.msra.mxu1 %v781_v36 }
 0x45e   : > { %1202 = vmatprep.subr.bf16.mxu1 %v1263_v1 }
 0x51f   : > { %v659_v5 = vpop.f32.mrb[12].mxu0 }
 0x520   : > { %v1176_v6 = vpop.f32.mrb[13].mxu0 }
 0x521   : > { %v662_v7 = vpop.f32.mrb[14].mxu0 }
 0x522   : > { %v1177_v8 = vpop.f32.mrb[15].mxu0 }
 0x523   : > { %v1102_v8 = vld [vmem:[%s1470_s4] ss:$0 sm:$0xff] }
 0x527   : > { %v613_v10 = vpop.f32.mrb[8].mxu1 }
 0x528   : > { %v1410_v11 = vadd.f32 %v659_v5, %v613_v10  ;;  %v1170_v12 = vpop.f32.mrb[9].mxu1 }
 0x529   : > { %v616_v13 = vpop.f32.mrb[10].mxu1  ;;  %v991_v12 = vunpack.c.l.bf16 %v1346_v3 }
 0x52a   : > { %v1171_v14 = vpop.f32.mrb[11].mxu1 }
 0x52f   : > { %v709_v15 = vpop.f32.mrb[12].mxu1 }
 0x530   : > { %v715_v16 = vmul.f32 0.35355338, %v709_v15  ;;  %v1182_v17 = vpop.f32.mrb[13].mxu1 }
 0x531   : > { %v712_v18 = vpop.f32.mrb[14].mxu1 }
 0x532   : > { %v1183_v19 = vpop.f32.mrb[15].mxu1  ;;  %v716_v20 = vsel %vm351_vm2, %v715_v16, -inf }
 0x533   : > { %717 = vmax.xlane.f32.xlu1 %v716_v20 }
 0x544   : > { %826 = vrot.lane.b32.xlu1 %v1355_v9, %s1272_s26 }
 0x548   : > { %824 = vrot.lane.b32.xlu1 %v1355_v9, %s1273_s27 }
 0x5c0   : > { %v718_v21 = vpop.xlane.xlu1 %717 }
 0x5c1   : > { %v719_v22 = vsub.f32 %v715_v16, %v718_v21 }
 0x5c3   : > { %v720_v23 = vmul.f32 1.442695, %v719_v22 }
 0x5c4   : > { %v827_v31 = vpop.permute.xlu1 %826 }
 0x5c5   : > { %1245 = vpow2.f32 %v720_v23  ;;  %v832_v33 = vsel %vm351_vm2, %v827_v31, 0 }
 0x5c8   : > { %v825_v34 = vpop.permute.xlu1 %824 }
 0x5cf   : > { %v1246_v24 = vpop.eup %1245 }
 0x5d0   : > { %v722_v25 = vsel %vm351_vm2, %v1246_v24, 0.0 }
 0x5d1   : > { %723 = vadd.xlane.f32.xlu0 %v722_v25 }
 0x5e7   : > { %728 = vrot.lane.b32.xlu0 %v1355_v9, %s1274_s28 }
 0x65e   : > { %v724_v26 = vpop.xlane.xlu0 %723 }
 0x65f   : > { %1247 = vrcp.f32 %v724_v26  ;;  %v1103_v26 = vld [vmem:[%s1471_s5] ss:$0 sm:$0xff] }
 0x662   : > { %v729_v27 = vpop.permute.xlu0 %728 }
 0x663   : > { %v734_v28 = vsel %vm416_vm3, %v729_v27, 0 }
 0x664   : > { %1185 = vmatpush3.bf16.msra.mxu0 %v734_v28  ;;  %v1104_v28 = vld [vmem:[%s1472_s6] ss:$0 sm:$0xff] }
 0x665   : > { %1196 = vmatprep.subr.bf16.mxu0 %v1263_v1 }
 0x669   : > { %v1248_v29 = vpop.eup %1247 }
 0x66a   : > { %v726_v30 = vmul.f32 %v1248_v29, %v1246_v24 }
 0x66c   : > { %v727_v32 = vpack.c.bf16 %v726_v30, %v726_v30 }
 0x66e   : > { %1187 = vmatmul.mubr.msk.bf16.vlgmr.msra.gmra.mrb[16].mxu0 %vm351_vm2, %v727_v32 }
 0x66f   : > { %1197 = vmatpush3.bf16.xpose.msra.mxu0 %v832_v33  ;;  %1198 = vmatprep.mubr.msk.bf16.mxu0 %vm1264_vm0, %v1263_v1 }
 0x670   : > { %1208 = vmatprep.subr.bf16.mxu0 %v1263_v1 }
 0x676   : > { %1199 = vmatmul.mubr.msk.bf16.vlgmr.msra.gmra.mrb[20].mxu0 %vm351_vm2, %v825_v34 }
 0x677   : > { %1210 = vmatprep.mubr.msk.bf16.mxu0 %vm1264_vm0, %v1263_v1  ;;  %1209 = vmatpush3.bf16.msra.mxu0 %v940_v55 }
 0x741   : > { %v770_v37 = vpop.f32.mrb[16].mxu0 }
 0x742   : > { %v776_v38 = vpack.c.bf16 %v770_v37, %v770_v37  ;;  %v1188_v39 = vpop.f32.mrb[17].mxu0 }
 0x743   : > { %v773_v40 = vpop.f32.mrb[18].mxu0 }
 0x744   : > { %v1189_v41 = vpop.f32.mrb[19].mxu0  ;;  %1193 = vmatmul.mubr.msk.bf16.vlgmr.msra.gmra.mrb[16].mxu1 %vm351_vm2, %v776_v38 }
 0x745   : > { %1204 = vmatprep.mubr.msk.bf16.mxu1 %vm1264_vm0, %v1263_v1 }
 0x749   : > { %v868_v42 = vpop.f32.mrb[20].mxu0 }
 0x74a   : > { %v874_v43 = vmul.f32 0.35355338, %v868_v42  ;;  %v1200_v44 = vpop.f32.mrb[21].mxu0 }
 0x74b   : > { %v871_v45 = vpop.f32.mrb[22].mxu0 }
 0x74c   : > { %v1201_v46 = vpop.f32.mrb[23].mxu0  ;;  %v875_v47 = vsel %vm351_vm2, %v874_v43, -inf }
 0x74d   : > { %876 = vmax.xlane.f32.xlu0 %v875_v47 }
 0x763   : > { %887 = vrot.lane.b32.xlu0 %v1355_v9, %s1275_s9 }
 0x7da   : > { %v877_v48 = vpop.xlane.xlu0 %876 }
 0x7db   : > { %v878_v49 = vsub.f32 %v874_v43, %v877_v48 }
 0x7dd   : > { %v879_v50 = vmul.f32 1.442695, %v878_v49 }
 0x7de   : > { %v888_v51 = vpop.permute.xlu0 %887 }
 0x7df   : > { %1249 = vpow2.f32 %v879_v50  ;;  %v893_v52 = vsel %vm416_vm3, %v888_v51, 0 }
 0x7e0   : > { %1203 = vmatpush3.bf16.msra.mxu1 %v893_v52 }
 0x7e9   : > { %v1250_v1 = vpop.eup %1249 }
 0x7ea   : > { %v881_v53 = vsel %vm351_vm2, %v1250_v1, 0.0 }
 0x7eb   : > { %882 = vadd.xlane.f32.xlu1 %v881_v53 }
 0x817   : > { %v817_v9 = vpop.f32.mrb[16].mxu1 }
 0x818   : > { %v823_v56 = vadd.f32 %v817_v9, %v1410_v11  ;;  %v1194_v57 = vpop.f32.mrb[17].mxu1 }
 0x819   : > { %v820_v58 = vpop.f32.mrb[18].mxu1 }
 0x81a   : > { %v1195_v59 = vpop.f32.mrb[19].mxu1 }
 0x878   : > { %v883_v60 = vpop.xlane.xlu1 %882 }
 0x879   : > { %1251 = vrcp.f32 %v883_v60 }
 0x883   : > { %v1252_v61 = vpop.eup %1251 }
 0x884   : > { %v885_v62 = vmul.f32 %v1252_v61, %v1250_v1 }
 0x886   : > { %v886_v63 = vpack.c.bf16 %v885_v62, %v885_v62 }
 0x888   : > { %1205 = vmatmul.mubr.msk.bf16.vlgmr.msra.gmra.mrb[20].mxu1 %vm351_vm2, %v886_v63 }
 0x95b   : > { %v929_v0 = vpop.f32.mrb[20].mxu1 }
 0x95c   : > { %v935_v2 = vpack.c.bf16 %v929_v0, %v929_v0  ;;  %v1206_v4 = vpop.f32.mrb[21].mxu1 }
 0x95d   : > { %v932_v5 = vpop.f32.mrb[22].mxu1 }
 0x95e   : > { %v1207_v6 = vpop.f32.mrb[23].mxu1  ;;  %1211 = vmatmul.mubr.msk.bf16.vlgmr.msra.gmra.mrb[24].mxu0 %vm351_vm2, %v935_v2 }
 0xa31   : > { %v976_v7 = vpop.f32.mrb[24].mxu0 }
 0xa32   : > { %v982_v10 = vadd.f32 %v976_v7, %v823_v56  ;;  %v1212_v11 = vpop.f32.mrb[25].mxu0 }
 0xa33   : > { %v979_v13 = vpop.f32.mrb[26].mxu0 }
 0xa34   : > { %v990_v14 = vadd.f32 %v1102_v8, %v982_v10  ;;  %v1213_v15 = vpop.f32.mrb[27].mxu0 }
 0xa36   : > { %v992_v16 = vadd.f32 %v991_v12, %v990_v14 }
 0xa38   : > { %v995_v17 = vsel %vm299_vm1, %v992_v16, 0.0 }
 0xa39   : > { %996 = vadd.xlane.f32.xlu1 %v995_v17 }
 0xac6   : > { %v997_v18 = vpop.xlane.xlu1 %996 }
 0xac7   : > { %v999_v19 = vmul.f32 0.03125, %v997_v18 }
 0xac9   : > { %v1000_v20 = vsub.f32 %v992_v16, %v999_v19 }
 0xacb   : > { %v1001_v21 = vmul.f32 %v1000_v20, %v1000_v20 }
 0xacd   : > { %v1002_v22 = vsel %vm299_vm1, %v1001_v21, 0.0 }
 0xace   : > { %1003 = vadd.xlane.f32.xlu1 %v1002_v22 }
 0xb5b   : > { %v1004_v23 = vpop.xlane.xlu1 %1003 }
 0xb5c   : > { %v1005_v24 = vmul.f32 0.03125, %v1004_v23 }
 0xb5e   : > { %v1006_v25 = vadd.f32 1e-05, %v1005_v24 }
 0xb60   : > { %1253 = vrsqrt.f32 %v1006_v25 }
 0xb6a   : > { %v1254_v3 = vpop.eup %1253 }
 0xb6b   : > { %v1008_v27 = vmul.f32 %v1254_v3, %v1000_v20 }
 0xb6d   : > { %v1015_v29 = vmul.f32 %v1103_v26, %v1008_v27 }
 0xb6f   : > { %v1022_v30 = vadd.f32 %v1104_v28, %v1015_v29 }
 0xb71   : > { %v1023_v31 = vpack.c.bf16 %v1022_v30, %v1022_v30 }
 0xb73   : > { %1025 = vst.msk [vmem:[%s273_s20] sm:$0xf] %vm1024_vm4, %v1023_v31 }
 0xb74 PF: > { %s17_s24 = sadd.s32 1, %s1261_s24  }
 0xb75   : > { %p14_p4 = scmp.ge.s32.totalorder %s17_s24, 4  }
 0xb77   :  { %16 = sbr.rel (!%p14_p4) target bundleno = 1 (0x1), region = 78 }

// kernel: tab_pfn_forward.19
= control target key start
LH: loop header
LB: loop body
LE: loop exit
PB: predicated region body
PF: predicated region fallthrough
CT: control target
= control target key end

     0   :  { %s520_s21 = smov 0   ;;  %s563_s0 = inlined_call_operand.vmem [shape: bf16[16,32], index: 0, kind: input, shape index: {}, may-alias: {0,3}]   ;;  %s564_s1 = inlined_call_operand.vmem [shape: bf16[32,32], index: 1, kind: input, shape index: {}]   ;;  %s565_s2 = inlined_call_operand.vmem [shape: f32[1,32], index: 2, kind: input, shape index: {}]   ;;  %s566_s3 = inlined_call_operand.vmem [shape: bf16[16,32], index: 3, kind: input, shape index: {}, may-alias: {0,3}]   ;;  %s567_s4 = inlined_call_operand.vmem [shape: f32[1,32], index: 4, kind: input, shape index: {}]   ;;  %s568_s5 = inlined_call_operand.vmem [shape: f32[1,32], index: 5, kind: input, shape index: {}]   ;;  %s569_s6 = inlined_call_operand.vmem [shape: bf16[16,32], index: 6, kind: output, shape index: {}]  }
   0x1 LB: > { %s434_s22 = sadd.s32 4294967295, %s481_s21   ;;  %p438_p0 = scmp.ge.s32.totalorder %s481_s21, 1  ;;  %s481_s21 = sphi %s520_s21, %s16_s21  }
   0x2   : > { %p220_p1 = scmp.lt.s32.totalorder %s481_s21, 3 }
   0x4   : > { %p221_p2 = pnand %p438_p0, %p220_p1 }
   0x5   : > { %v471_v0 = vld [vmem:[%s564_s1] sm:$0xff] (!%p221_p2)   ;;  %v483_v1 = vmov (!%p221_p2), 0.0   ;;  %v472_v2 = vld [vmem:[%s564_s1 + $0x8] sm:$0xff] (!%p221_p2)   ;;  %vm484_vm0 = vmmov (!%p221_p2), 0   ;;  %p252_p3 = scmp.lt.s32.totalorder (!%p221_p2), %s434_s22, 1  ;;  %vm289_vm1 = vcmask (!%p221_p2), 261120  }
   0x6   : > { %224 = sbr.rel (%p221_p2) target bundleno = 549 (0x225), region = 44  ;;  %453 = vmatprep.subr.bf16.mxu0 (!%p221_p2), %v483_v1  ;;  %457 = vmatprep.mubr.msk.bf16.mxu0 (!%p221_p2), %vm484_vm0, %v483_v1  ;;  %v442_v5 = vld [vmem:[%s565_s2] ss:$0 sm:$0xff] (!%p221_p2)  ;;  %vm367_vm2 = vcmask (!%p221_p2), 257024  }
   0x7   : > { %454 = vmatpush3.bf16.msra.mxu0 (!%p221_p2), %v471_v0  ;;  %v446_v23 = vld [vmem:[%s567_s4] ss:$0 sm:$0xff] (!%p221_p2) }
   0x8   : > { %455 = vmatprep.subr.bf16.mxu0 (!%p221_p2), %v483_v1  ;;  %v447_v25 = vld [vmem:[%s568_s5] ss:$0 sm:$0xff] (!%p221_p2) }
   0xb   : > { %456 = vmatpush3.bf16.msra.mxu0 (!%p221_p2), %v472_v2 }
   0xd   : > { %s571_s22 = smov (!%p252_p3, %s434_s22), 1 }
   0xe   : > { %s534_s27 = sshll.u32 %s571_s22, 2 }
   0xf   : > { %s255_s30 = scalar_lea.vmem %s563_s0, %s534_s27  ;;  %s259_s9 = scalar_lea.vmem %s566_s3, %s534_s27 }
  0x10   : > { %v265_v3 = vld [vmem:[%s255_s30] sm:$0xf]  ;;  %s263_s18 = scalar_lea.vmem %s569_s6, %s534_s27 }
  0x11   : > { %458 = vmatmul.mubr.msk.bf16.vlgmr.msra.gmra.mrb[0].mxu0 %vm289_vm1, %v265_v3  ;;  %v333_v4 = vld [vmem:[%s259_s9] sm:$0xf] }
  0x12   : > { %v334_v6 = vunpack.c.l.bf16 %v333_v4 }
  0xe4   : > { %v327_v7 = vpop.f32.mrb[0].mxu0 }
  0xe5   : > { %v328_v8 = vadd.f32 %v442_v5, %v327_v7  ;;  %v459_v9 = vpop.f32.mrb[1].mxu0 }
  0xe6   : > { %v330_v10 = vpop.f32.mrb[2].mxu0 }
  0xe7   : > { %v460_v11 = vpop.f32.mrb[3].mxu0  ;;  %v335_v12 = vadd.f32 %v334_v6, %v328_v8 }
  0xe9   : > { %v338_v13 = vsel %vm289_vm1, %v335_v12, 0.0 }
  0xea   : > { %339 = vadd.xlane.f32.xlu0 %v338_v13 }
 0x177   : > { %v340_v14 = vpop.xlane.xlu0 %339 }
 0x178   : > { %v342_v15 = vmul.f32 0.03125, %v340_v14 }
 0x17a   : > { %v343_v16 = vsub.f32 %v335_v12, %v342_v15 }
 0x17c   : > { %v344_v17 = vmul.f32 %v343_v16, %v343_v16 }
 0x17e   : > { %v345_v18 = vsel %vm289_vm1, %v344_v17, 0.0 }
 0x17f   : > { %346 = vadd.xlane.f32.xlu0 %v345_v18 }
 0x20c   : > { %v347_v19 = vpop.xlane.xlu0 %346 }
 0x20d   : > { %v348_v20 = vmul.f32 0.03125, %v347_v19 }
 0x20f   : > { %v349_v21 = vadd.f32 1e-05, %v348_v20 }
 0x211   : > { %473 = vrsqrt.f32 %v349_v21 }
 0x21b   : > { %v474_v22 = vpop.eup %473 }
 0x21c   : > { %v351_v24 = vmul.f32 %v474_v22, %v343_v16 }
 0x21e   : > { %v358_v26 = vmul.f32 %v446_v23, %v351_v24 }
 0x220   : > { %v365_v27 = vadd.f32 %v447_v25, %v358_v26 }
 0x222   : > { %v366_v28 = vpack.c.bf16 %v365_v27, %v365_v27 }
 0x224   : > { %368 = vst.msk [vmem:[%s263_s18] sm:$0xf] %vm367_vm2, %v366_v28 }
 0x225 PF: > { %s16_s21 = sadd.s32 1, %s481_s21  }
 0x226   : > { %p13_p4 = scmp.ge.s32.totalorder %s16_s21, 4  }
 0x228   :  { %15 = sbr.rel (!%p13_p4) target bundleno = 1 (0x1), region = 77 }

// kernel: tab_pfn_forward.25
= control target key start
LH: loop header
LB: loop body
LE: loop exit
PB: predicated region body
PF: predicated region fallthrough
CT: control target
= control target key end

     0   :  { %s355_s12 = smov 0   ;;  %s381_s0 = inlined_call_operand.vmem [shape: bf16[16,32], index: 0, kind: input, shape index: {}]   ;;  %s382_s1 = inlined_call_operand.vmem [shape: bf16[32,128], index: 1, kind: input, shape index: {}]   ;;  %s383_s2 = inlined_call_operand.vmem [shape: f32[1,128], index: 2, kind: input, shape index: {}]   ;;  %s384_s3 = inlined_call_operand.vmem [shape: f32[16,128], index: 3, kind: output, shape index: {}]  }
   0x1 LB: > { %s289_s13 = sadd.s32 4294967295, %s331_s12   ;;  %p293_p0 = scmp.ge.s32.totalorder %s331_s12, 1  ;;  %s331_s12 = sphi %s355_s12, %s13_s12  }
   0x2   : > { %p136_p1 = scmp.lt.s32.totalorder %s331_s12, 3 }
   0x4   : > { %p137_p2 = pnand %p293_p0, %p136_p1 }
   0x5   : > { %v323_v0 = vld [vmem:[%s382_s1] sm:$0xff] (!%p137_p2)   ;;  %v333_v1 = vmov (!%p137_p2), 0.0   ;;  %v324_v2 = vld [vmem:[%s382_s1 + $0x8] sm:$0xff] (!%p137_p2)   ;;  %vm334_vm0 = vmmov (!%p137_p2), 0   ;;  %p158_p3 = scmp.lt.s32.totalorder (!%p137_p2), %s289_s13, 1  ;;  %vm191_vm1 = vcmask (!%p137_p2), 261120  }
   0x6   : > { %140 = sbr.rel (%p137_p2) target bundleno = 232 (0xe8), region = 32  ;;  %305 = vmatprep.subr.bf16.mxu0 (!%p137_p2), %v333_v1  ;;  %309 = vmatprep.mubr.msk.bf16.mxu0 (!%p137_p2), %vm334_vm0, %v333_v1  ;;  %v296_v4 = vld [vmem:[%s383_s2] ss:$0 sm:$0xff] (!%p137_p2) }
   0x7   : > { %306 = vmatpush3.bf16.msra.mxu0 (!%p137_p2), %v323_v0 }
   0x8   : > { %307 = vmatprep.subr.bf16.mxu0 (!%p137_p2), %v333_v1 }
   0xb   : > { %308 = vmatpush3.bf16.msra.mxu0 (!%p137_p2), %v324_v2 }
   0xd   : > { %s386_s13 = smov (!%p158_p3, %s289_s13), 1 }
   0xe   : > { %s294_s18 = sshll.u32 %s386_s13, 2  ;;  %s295_s22 = sshll.u32 %s386_s13, 3 }
   0xf   : > { %s161_s21 = scalar_lea.vmem %s381_s0, %s294_s18  ;;  %s165_s27 = scalar_lea.vmem %s384_s3, %s295_s22 }
  0x10   : > { %v167_v3 = vld [vmem:[%s161_s21] sm:$0xf] }
  0x11   : > { %310 = vmatmul.mubr.msk.bf16.vlgmr.msra.gmra.mrb[0].mxu0 %vm191_vm1, %v167_v3 }
  0xe4   : > { %v229_v5 = vpop.f32.mrb[0].mxu0 }
  0xe5   : > { %v230_v6 = vadd.f32 %v296_v4, %v229_v5  ;;  %v311_v7 = vpop.f32.mrb[1].mxu0 }
  0xe6   : > { %v232_v8 = vpop.f32.mrb[2].mxu0 }
  0xe7   : > { %235 = vst [vmem:[%s165_s27] sm:$0xff] %v230_v6  ;;  %v312_v9 = vpop.f32.mrb[3].mxu0 }
  0xe8 PF: > { %s13_s12 = sadd.s32 1, %s331_s12  }
  0xe9   : > { %p10_p4 = scmp.ge.s32.totalorder %s13_s12, 4  }
  0xeb   :  { %12 = sbr.rel (!%p10_p4) target bundleno = 1 (0x1), region = 62 }

// kernel: tab_pfn_forward.20
= control target key start
LH: loop header
LB: loop body
LE: loop exit
PB: predicated region body
PF: predicated region fallthrough
CT: control target
= control target key end

     0   :  { %s1518_s13 = smov 0   ;;  %s1685_s0 = inlined_call_operand.vmem [shape: bf16[2,8,32], index: 0, kind: input, shape index: {}]   ;;  %s1686_s1 = inlined_call_operand.vmem [shape: bf16[2,8,32], index: 1, kind: input, shape index: {}]   ;;  %s1687_s2 = inlined_call_operand.vmem [shape: bf16[32,32], index: 2, kind: input, shape index: {}]   ;;  %s1688_s3 = inlined_call_operand.vmem [shape: f32[1,32], index: 3, kind: input, shape index: {}]   ;;  %s1689_s4 = inlined_call_operand.vmem [shape: bf16[32,64], index: 4, kind: input, shape index: {}]   ;;  %s1690_s5 = inlined_call_operand.vmem [shape: f32[1,64], index: 5, kind: input, shape index: {}]   ;;  %s1691_s6 = inlined_call_operand.vmem [shape: bf16[32,32], index: 6, kind: input, shape index: {}]   ;;  %s1692_s7 = inlined_call_operand.vmem [shape: f32[1,32], index: 7, kind: input, shape index: {}]   ;;  %s1693_s8 = inlined_call_operand.vmem [shape: f32[1,32], index: 8, kind: input, shape index: {}]   ;;  %s1694_s9 = inlined_call_operand.vmem [shape: f32[1,32], index: 9, kind: input, shape index: {}]   ;;  %s1695_s10 = inlined_call_operand.vmem [shape: bf16[2,8,32], index: 10, kind: output, shape index: {}]  }
   0x1 LB: > { %s1256_s14 = sadd.s32 4294967295, %s1452_s13   ;;  %p1260_p0 = scmp.ge.s32.totalorder %s1452_s13, 1  ;;  %s1452_s13 = sphi %s1518_s13, %s20_s13  }
   0x2   : > { %p320_p1 = scmp.lt.s32.totalorder %s1452_s13, 3 }
   0x4   : > { %p321_p2 = pnand %p1260_p0, %p320_p1 }
   0x5   : > { %v1424_v0 = vld [vmem:[%s1689_s4] sm:$0xff] (!%p321_p2)   ;;  %v1454_v1 = vmov (!%p321_p2), 0.0   ;;  %v1425_v2 = vld [vmem:[%s1689_s4 + $0x8] sm:$0xff] (!%p321_p2)   ;;  %vm1455_vm0 = vmmov (!%p321_p2), 0   ;;  %p360_p3 = scmp.lt.s32.totalorder (!%p321_p2), %s1256_s14, 1  ;;  %vm398_vm1 = vcmask (!%p321_p2), 261120  }
   0x6   : > { %324 = sbr.rel (%p321_p2) target bundleno = 2924 (0xb6c), region = 60  ;;  %1327 = vmatprep.subr.bf16.mxu1 (!%p321_p2), %v1454_v1  ;;  %1319 = vmatprep.subr.bf16.mxu0 (!%p321_p2), %v1454_v1  ;;  %v1426_v3 = vld [vmem:[%s1687_s2] sm:$0xff] (!%p321_p2)   ;;  %v1427_v4 = vld [vmem:[%s1687_s2 + $0x8] sm:$0xff] (!%p321_p2)   ;;  %vm514_vm2 = vcmask (!%p321_p2), 64512   ;;  %s1456_s15 = smov (!%p321_p2), 120   ;;  %vm580_vm3 = vcmask (!%p321_p2), 1043456  }
   0x7   : > { %1328 = vmatpush3.bf16.msra.mxu1 (!%p321_p2), %v1424_v0  ;;  %1331 = vmatprep.mubr.msk.bf16.mxu1 (!%p321_p2), %vm1455_vm0, %v1454_v1  ;;  %v1268_v7 = vld [vmem:[%s1690_s5] ss:$0 sm:$0xff] (!%p321_p2)  ;;  %s1457_s16 = smov (!%p321_p2), 96   ;;  %s1458_s17 = smov (!%p321_p2), 88   ;;  %v511_v53 = vld [vmem:[%s1691_s6 + $0x4] sm:$0xf] (!%p321_p2) }
   0x8   : > { %1329 = vmatprep.subr.bf16.mxu1 (!%p321_p2), %v1454_v1  ;;  %1323 = vmatprep.mubr.msk.bf16.mxu0 (!%p321_p2), %vm1455_vm0, %v1454_v1  ;;  %v1264_v9 = vld [vmem:[%s1688_s3] ss:$0 sm:$0xff] (!%p321_p2)  ;;  %s1459_s18 = smov (!%p321_p2), 112   ;;  %v742_v54 = vsel (!%p321_p2), %vm580_vm3, %v511_v53, 0  ;;  %s1460_s24 = smov (!%p321_p2), 80   ;;  %vm1189_vm4 = vcmask (!%p321_p2), 257024  }
   0x9   : > { %1320 = vmatpush3.bf16.msra.mxu0 (!%p321_p2), %v1426_v3  ;;  %v510_v59 = vld [vmem:[%s1691_s6] sm:$0xf] (!%p321_p2)  ;;  %s1461_s25 = smov (!%p321_p2), 104   ;;  %s1462_s28 = smov (!%p321_p2), 72  }
   0xa   : > { %1321 = vmatprep.subr.bf16.mxu0 (!%p321_p2), %v1454_v1  ;;  %v788_v62 = vsel (!%p321_p2), %vm580_vm3, %v510_v59, 0 }
   0xb   : > { %1330 = vmatpush3.bf16.msra.mxu1 (!%p321_p2), %v1425_v2 }
   0xc   : > { %1341 = vmatprep.subr.bf16.mxu1 (!%p321_p2), %v1454_v1 }
   0xd   : > { %s1697_s14 = smov (!%p360_p3, %s1256_s14), 1  ;;  %1322 = vmatpush3.bf16.msra.mxu0 %v1427_v4 }
   0xe   : > { %s1546_s23 = sshll.u32 %s1697_s14, 2  ;;  %1335 = vmatprep.subr.bf16.mxu0 %v1454_v1 }
   0xf   : > { %s367_s26 = scalar_lea.vmem %s1686_s1, %s1546_s23  ;;  %s363_s29 = scalar_lea.vmem %s1685_s0, %s1546_s23 }
  0x10   : > { %v374_v5 = vld [vmem:[%s367_s26] sm:$0xf]  ;;  %s371_s20 = scalar_lea.vmem %s1695_s10, %s1546_s23 }
  0x11   : > { %1332 = vmatmul.mubr.msk.bf16.vlgmr.msra.gmra.mrb[0].mxu1 %vm398_vm1, %v374_v5  ;;  %v1558_v6 = vld [vmem:[%s363_s29] sm:$0xf] }
  0x12   : > { %1343 = vmatprep.mubr.msk.bf16.mxu1 %vm1455_vm0, %v1454_v1  ;;  %1324 = vmatmul.mubr.msk.bf16.vlgmr.msra.gmra.mrb[0].mxu0 %vm398_vm1, %v1558_v6 }
  0x13   : > { %1337 = vmatprep.mubr.msk.bf16.mxu0 %vm1455_vm0, %v1454_v1 }
  0xe4   : > { %v503_v8 = vpop.f32.mrb[0].mxu1 }
  0xe5   : > { %v504_v10 = vadd.f32 %v1268_v7, %v503_v8  ;;  %v1333_v11 = vpop.f32.mrb[1].mxu1  ;;  %v436_v13 = vpop.f32.mrb[0].mxu0 }
  0xe6   : > { %v506_v12 = vpop.f32.mrb[2].mxu1  ;;  %v437_v16 = vadd.f32 %v1264_v9, %v436_v13  ;;  %v1325_v17 = vpop.f32.mrb[1].mxu0 }
  0xe7   : > { %v1573_v14 = vpack.c.bf16 %v504_v10, %v504_v10  ;;  %v1334_v15 = vpop.f32.mrb[3].mxu1  ;;  %v439_v18 = vpop.f32.mrb[2].mxu0 }
  0xe8   : > { %v1576_v19 = vpack.c.bf16 %v437_v16, %v437_v16  ;;  %v1326_v21 = vpop.f32.mrb[3].mxu0 }
  0xe9   : > { %628 = vrot.lane.b32.xlu0 %v1573_v14, %s1456_s15  ;;  %v519_v20 = vsel %vm514_vm2, %v1573_v14, 0 }
  0xea   : > { %1336 = vmatpush3.bf16.xpose.msra.mxu0 %v519_v20 }
  0xeb   : > { %1347 = vmatprep.subr.bf16.mxu0 %v1454_v1 }
  0xed   : > { %626 = vrot.lane.b32.xlu0 %v1576_v19, %s1456_s15 }
  0xf1   : > { %1338 = vmatmul.mubr.msk.bf16.vlgmr.msra.gmra.mrb[4].mxu0 %vm514_vm2, %v1576_v19 }
  0xf2   : > { %1349 = vmatprep.mubr.msk.bf16.mxu0 %vm1455_vm0, %v1454_v1 }
 0x15b   : > { %v629_v22 = vpop.permute.xlu0 %628 }
 0x15c   : > { %v634_v23 = vsel %vm514_vm2, %v629_v22, 0 }
 0x15d   : > { %1348 = vmatpush3.bf16.xpose.msra.mxu0 %v634_v23 }
 0x15e   : > { %1359 = vmatprep.subr.bf16.mxu0 %v1454_v1 }
 0x15f   : > { %v627_v24 = vpop.permute.xlu0 %626 }
 0x164   : > { %1350 = vmatmul.mubr.msk.bf16.vlgmr.msra.gmra.mrb[8].mxu0 %vm514_vm2, %v627_v24 }
 0x165   : > { %1361 = vmatprep.mubr.msk.bf16.mxu0 %vm1455_vm0, %v1454_v1  ;;  %1360 = vmatpush3.bf16.msra.mxu0 %v742_v54 }
 0x166   : > { %1371 = vmatprep.subr.bf16.mxu0 %v1454_v1 }
 0x1c4   : > { %v555_v25 = vpop.f32.mrb[4].mxu0 }
 0x1c5   : > { %v561_v26 = vmul.f32 0.35355338, %v555_v25  ;;  %v1339_v27 = vpop.f32.mrb[5].mxu0 }
 0x1c6   : > { %v558_v28 = vpop.f32.mrb[6].mxu0 }
 0x1c7   : > { %v1340_v29 = vpop.f32.mrb[7].mxu0  ;;  %v562_v30 = vsel %vm514_vm2, %v561_v26, -inf }
 0x1c8   : > { %563 = vmax.xlane.f32.xlu1 %v562_v30 }
 0x237   : > { %v670_v31 = vpop.f32.mrb[8].mxu0 }
 0x238   : > { %v676_v32 = vmul.f32 0.35355338, %v670_v31  ;;  %v1351_v33 = vpop.f32.mrb[9].mxu0 }
 0x239   : > { %v673_v34 = vpop.f32.mrb[10].mxu0 }
 0x23a   : > { %v1352_v35 = vpop.f32.mrb[11].mxu0  ;;  %v677_v36 = vsel %vm514_vm2, %v676_v32, -inf }
 0x23b   : > { %678 = vmax.xlane.f32.xlu1 %v677_v36 }
 0x24c   : > { %575 = vrot.lane.b32.xlu1 %v1573_v14, %s1457_s16 }
 0x255   : > { %v564_v37 = vpop.xlane.xlu1 %563 }
 0x256   : > { %v565_v38 = vsub.f32 %v561_v26, %v564_v37 }
 0x258   : > { %v566_v39 = vmul.f32 1.442695, %v565_v38 }
 0x25a   : > { %1428 = vpow2.f32 %v566_v39 }
 0x264   : > { %v1429_v40 = vpop.eup %1428 }
 0x265   : > { %v568_v41 = vsel %vm514_vm2, %v1429_v40, 0.0 }
 0x266   : > { %569 = vadd.xlane.f32.xlu0 %v568_v41 }
 0x2c8   : > { %v679_v42 = vpop.xlane.xlu1 %678 }
 0x2c9   : > { %v680_v43 = vsub.f32 %v676_v32, %v679_v42 }
 0x2cb   : > { %v681_v44 = vmul.f32 1.442695, %v680_v43 }
 0x2cc   : > { %v576_v45 = vpop.permute.xlu1 %575 }
 0x2cd   : > { %1430 = vpow2.f32 %v681_v44  ;;  %v582_v46 = vsel %vm580_vm3, %v576_v45, 0  ;;  %v512_v44 = vld [vmem:[%s1691_s6 + $0x8] sm:$0xf] }
 0x2ce   : > { %1342 = vmatpush3.bf16.msra.mxu1 %v582_v46  ;;  %v946_v45 = vsel %vm580_vm3, %v512_v44, 0 }
 0x2cf   : > { %1353 = vmatprep.subr.bf16.mxu1 %v1454_v1 }
 0x2d7   : > { %v1431_v47 = vpop.eup %1430 }
 0x2d8   : > { %v683_v48 = vsel %vm514_vm2, %v1431_v47, 0.0 }
 0x2d9   : > { %684 = vadd.xlane.f32.xlu1 %v683_v48 }
 0x2ea   : > { %689 = vrot.lane.b32.xlu1 %v1573_v14, %s1458_s17 }
 0x2ee   : > { %832 = vrot.lane.b32.xlu1 %v1573_v14, %s1459_s18 }
 0x2f2   : > { %830 = vrot.lane.b32.xlu1 %v1576_v19, %s1459_s18 }
 0x2f3   : > { %v570_v49 = vpop.xlane.xlu0 %569 }
 0x2f4   : > { %1432 = vrcp.f32 %v570_v49 }
 0x2fe   : > { %v1433_v50 = vpop.eup %1432 }
 0x2ff   : > { %v572_v51 = vmul.f32 %v1433_v50, %v1429_v40 }
 0x301   : > { %v573_v52 = vpack.c.bf16 %v572_v51, %v572_v51 }
 0x303   : > { %1344 = vmatmul.mubr.msk.bf16.vlgmr.msra.gmra.mrb[4].mxu1 %vm514_vm2, %v573_v52 }
 0x304   : > { %1355 = vmatprep.mubr.msk.bf16.mxu1 %vm1455_vm0, %v1454_v1 }
 0x366   : > { %v685_v55 = vpop.xlane.xlu1 %684 }
 0x367   : > { %1434 = vrcp.f32 %v685_v55 }
 0x36a   : > { %v690_v56 = vpop.permute.xlu1 %689 }
 0x36b   : > { %v695_v57 = vsel %vm580_vm3, %v690_v56, 0 }
 0x36c   : > { %1354 = vmatpush3.bf16.msra.mxu1 %v695_v57 }
 0x36d   : > { %1365 = vmatprep.subr.bf16.mxu1 %v1454_v1 }
 0x36e   : > { %v833_v5 = vpop.permute.xlu1 %832 }
 0x36f   : > { %v838_v11 = vsel %vm514_vm2, %v833_v5, 0 }
 0x371   : > { %v1435_v58 = vpop.eup %1434 }
 0x372   : > { %v687_v60 = vmul.f32 %v1435_v58, %v1431_v47  ;;  %v831_v13 = vpop.permute.xlu1 %830 }
 0x374   : > { %v688_v61 = vpack.c.bf16 %v687_v60, %v687_v60 }
 0x376   : > { %1356 = vmatmul.mubr.msk.bf16.vlgmr.msra.gmra.mrb[8].mxu1 %vm514_vm2, %v688_v61 }
 0x377   : > { %1366 = vmatpush3.bf16.msra.mxu1 %v788_v62  ;;  %1367 = vmatprep.mubr.msk.bf16.mxu1 %vm1455_vm0, %v1454_v1 }
 0x378   : > { %1377 = vmatprep.subr.bf16.mxu1 %v1454_v1 }
 0x3d6   : > { %v618_v63 = vpop.f32.mrb[4].mxu1 }
 0x3d7   : > { %v624_v0 = vpack.c.bf16 %v618_v63, %v618_v63  ;;  %v1345_v2 = vpop.f32.mrb[5].mxu1 }
 0x3d8   : > { %v621_v3 = vpop.f32.mrb[6].mxu1 }
 0x3d9   : > { %v1346_v4 = vpop.f32.mrb[7].mxu1  ;;  %1368 = vmatmul.mubr.msk.bf16.vlgmr.msra.gmra.mrb[12].mxu1 %vm514_vm2, %v624_v0 }
 0x3da   : > { %1379 = vmatprep.mubr.msk.bf16.mxu1 %vm1455_vm0, %v1454_v1 }
 0x449   : > { %v731_v7 = vpop.f32.mrb[8].mxu1 }
 0x44a   : > { %v737_v8 = vpack.c.bf16 %v731_v7, %v731_v7  ;;  %v1357_v9 = vpop.f32.mrb[9].mxu1 }
 0x44b   : > { %v734_v10 = vpop.f32.mrb[10].mxu1 }
 0x44c   : > { %v1358_v12 = vpop.f32.mrb[11].mxu1  ;;  %1362 = vmatmul.mubr.msk.bf16.vlgmr.msra.gmra.mrb[12].mxu0 %vm514_vm2, %v737_v8 }
 0x44d   : > { %1372 = vmatpush3.bf16.xpose.msra.mxu0 %v838_v11  ;;  %1373 = vmatprep.mubr.msk.bf16.mxu0 %vm1455_vm0, %v1454_v1 }
 0x44e   : > { %1383 = vmatprep.subr.bf16.mxu0 %v1454_v1 }
 0x454   : > { %1374 = vmatmul.mubr.msk.bf16.vlgmr.msra.gmra.mrb[16].mxu0 %vm514_vm2, %v831_v13 }
 0x455   : > { %1385 = vmatprep.mubr.msk.bf16.mxu0 %vm1455_vm0, %v1454_v1  ;;  %1384 = vmatpush3.bf16.msra.mxu0 %v946_v45 }
 0x456   : > { %1395 = vmatprep.subr.bf16.mxu0 %v1454_v1 }
 0x4ac   : > { %v824_v15 = vpop.f32.mrb[12].mxu1 }
 0x4ad   : > { %v1369_v16 = vpop.f32.mrb[13].mxu1 }
 0x4ae   : > { %v827_v17 = vpop.f32.mrb[14].mxu1 }
 0x4af   : > { %v1370_v18 = vpop.f32.mrb[15].mxu1 }
 0x4b0   : > { %v1284_v18 = vld [vmem:[%s1692_s7] ss:$0 sm:$0xff] }
 0x51f   : > { %v778_v20 = vpop.f32.mrb[12].mxu0 }
 0x520   : > { %v1630_v21 = vadd.f32 %v824_v15, %v778_v20  ;;  %v1363_v22 = vpop.f32.mrb[13].mxu0 }
 0x521   : > { %v781_v23 = vpop.f32.mrb[14].mxu0  ;;  %v1156_v22 = vunpack.c.l.bf16 %v1558_v6 }
 0x522   : > { %v1364_v24 = vpop.f32.mrb[15].mxu0 }
 0x527   : > { %v874_v25 = vpop.f32.mrb[16].mxu0 }
 0x528   : > { %v880_v26 = vmul.f32 0.35355338, %v874_v25  ;;  %v1375_v27 = vpop.f32.mrb[17].mxu0 }
 0x529   : > { %v877_v28 = vpop.f32.mrb[18].mxu0 }
 0x52a   : > { %v1376_v29 = vpop.f32.mrb[19].mxu0  ;;  %v881_v30 = vsel %vm514_vm2, %v880_v26, -inf }
 0x52b   : > { %882 = vmax.xlane.f32.xlu0 %v881_v30 }
 0x541   : > { %893 = vrot.lane.b32.xlu0 %v1573_v14, %s1460_s24 }
 0x545   : > { %991 = vrot.lane.b32.xlu0 %v1573_v14, %s1461_s25 }
 0x549   : > { %989 = vrot.lane.b32.xlu0 %v1576_v19, %s1461_s25 }
 0x5b8   : > { %v883_v31 = vpop.xlane.xlu0 %882 }
 0x5b9   : > { %v884_v32 = vsub.f32 %v880_v26, %v883_v31 }
 0x5bb   : > { %v885_v33 = vmul.f32 1.442695, %v884_v32 }
 0x5bc   : > { %v894_v34 = vpop.permute.xlu0 %893 }
 0x5bd   : > { %1436 = vpow2.f32 %v885_v33  ;;  %v899_v35 = vsel %vm580_vm3, %v894_v34, 0 }
 0x5be   : > { %1378 = vmatpush3.bf16.msra.mxu1 %v899_v35 }
 0x5bf   : > { %1389 = vmatprep.subr.bf16.mxu1 %v1454_v1 }
 0x5c0   : > { %v992_v41 = vpop.permute.xlu0 %991 }
 0x5c1   : > { %v997_v42 = vsel %vm514_vm2, %v992_v41, 0 }
 0x5c4   : > { %v990_v43 = vpop.permute.xlu0 %989 }
 0x5c7   : > { %v1437_v36 = vpop.eup %1436 }
 0x5c8   : > { %v887_v37 = vsel %vm514_vm2, %v1437_v36, 0.0 }
 0x5c9   : > { %888 = vadd.xlane.f32.xlu1 %v887_v37 }
 0x656   : > { %v889_v38 = vpop.xlane.xlu1 %888 }
 0x657   : > { %1438 = vrcp.f32 %v889_v38  ;;  %v1286_v38 = vld [vmem:[%s1694_s9] ss:$0 sm:$0xff] }
 0x661   : > { %v1439_v39 = vpop.eup %1438 }
 0x662   : > { %v891_v40 = vmul.f32 %v1439_v39, %v1437_v36  ;;  %v1285_v36 = vld [vmem:[%s1693_s8] ss:$0 sm:$0xff] }
 0x664   : > { %v892_v19 = vpack.c.bf16 %v891_v40, %v891_v40 }
 0x666   : > { %1380 = vmatmul.mubr.msk.bf16.vlgmr.msra.gmra.mrb[16].mxu1 %vm514_vm2, %v892_v19 }
 0x667   : > { %1390 = vmatpush3.bf16.xpose.msra.mxu1 %v997_v42  ;;  %1391 = vmatprep.mubr.msk.bf16.mxu1 %vm1455_vm0, %v1454_v1 }
 0x668   : > { %1401 = vmatprep.subr.bf16.mxu1 %v1454_v1 }
 0x66e   : > { %1392 = vmatmul.mubr.msk.bf16.vlgmr.msra.gmra.mrb[20].mxu1 %vm514_vm2, %v990_v43 }
 0x66f   : > { %1403 = vmatprep.mubr.msk.bf16.mxu1 %vm1455_vm0, %v1454_v1 }
 0x739   : > { %v935_v46 = vpop.f32.mrb[16].mxu1 }
 0x73a   : > { %v941_v47 = vpack.c.bf16 %v935_v46, %v935_v46  ;;  %v1381_v48 = vpop.f32.mrb[17].mxu1 }
 0x73b   : > { %v938_v49 = vpop.f32.mrb[18].mxu1 }
 0x73c   : > { %v1382_v50 = vpop.f32.mrb[19].mxu1  ;;  %1386 = vmatmul.mubr.msk.bf16.vlgmr.msra.gmra.mrb[20].mxu0 %vm514_vm2, %v941_v47 }
 0x73d   : > { %1397 = vmatprep.mubr.msk.bf16.mxu0 %vm1455_vm0, %v1454_v1  ;;  %v513_v1 = vld [vmem:[%s1691_s6 + $0xc] sm:$0xf] }
 0x73e   : > { %v1105_v62 = vsel %vm580_vm3, %v513_v1, 0 }
 0x73f   : > { %1402 = vmatpush3.bf16.msra.mxu1 %v1105_v62 }
 0x741   : > { %v1033_v51 = vpop.f32.mrb[20].mxu1 }
 0x742   : > { %v1039_v52 = vmul.f32 0.35355338, %v1033_v51  ;;  %v1393_v53 = vpop.f32.mrb[21].mxu1 }
 0x743   : > { %v1036_v54 = vpop.f32.mrb[22].mxu1 }
 0x744   : > { %v1394_v55 = vpop.f32.mrb[23].mxu1  ;;  %v1040_v56 = vsel %vm514_vm2, %v1039_v52, -inf }
 0x745   : > { %1041 = vmax.xlane.f32.xlu0 %v1040_v56 }
 0x7d2   : > { %v1042_v57 = vpop.xlane.xlu0 %1041 }
 0x7d3   : > { %v1043_v58 = vsub.f32 %v1039_v52, %v1042_v57 }
 0x7d5   : > { %v1044_v59 = vmul.f32 1.442695, %v1043_v58 }
 0x7d7   : > { %1440 = vpow2.f32 %v1044_v59 }
 0x7e1   : > { %v1441_v60 = vpop.eup %1440 }
 0x7e2   : > { %v1046_v61 = vsel %vm514_vm2, %v1441_v60, 0.0 }
 0x7e3   : > { %1047 = vadd.xlane.f32.xlu1 %v1046_v61 }
 0x7f4   : > { %1052 = vrot.lane.b32.xlu1 %v1573_v14, %s1462_s28 }
 0x80f   : > { %v982_v63 = vpop.f32.mrb[20].mxu0 }
 0x810   : > { %v988_v0 = vadd.f32 %v982_v63, %v1630_v21  ;;  %v1387_v2 = vpop.f32.mrb[21].mxu0 }
 0x811   : > { %v985_v3 = vpop.f32.mrb[22].mxu0 }
 0x812   : > { %v1388_v4 = vpop.f32.mrb[23].mxu0 }
 0x870   : > { %v1048_v5 = vpop.xlane.xlu1 %1047 }
 0x871   : > { %1442 = vrcp.f32 %v1048_v5 }
 0x874   : > { %v1053_v7 = vpop.permute.xlu1 %1052 }
 0x875   : > { %v1058_v8 = vsel %vm580_vm3, %v1053_v7, 0 }
 0x876   : > { %1396 = vmatpush3.bf16.msra.mxu0 %v1058_v8 }
 0x87b   : > { %v1443_v14 = vpop.eup %1442 }
 0x87c   : > { %v1050_v9 = vmul.f32 %v1443_v14, %v1441_v60 }
 0x87e   : > { %v1051_v10 = vpack.c.bf16 %v1050_v9, %v1050_v9 }
 0x880   : > { %1398 = vmatmul.mubr.msk.bf16.vlgmr.msra.gmra.mrb[24].mxu0 %vm514_vm2, %v1051_v10 }
 0x953   : > { %v1094_v11 = vpop.f32.mrb[24].mxu0 }
 0x954   : > { %v1100_v12 = vpack.c.bf16 %v1094_v11, %v1094_v11  ;;  %v1399_v13 = vpop.f32.mrb[25].mxu0 }
 0x955   : > { %v1097_v15 = vpop.f32.mrb[26].mxu0 }
 0x956   : > { %v1400_v16 = vpop.f32.mrb[27].mxu0  ;;  %1404 = vmatmul.mubr.msk.bf16.vlgmr.msra.gmra.mrb[24].mxu1 %vm514_vm2, %v1100_v12 }
 0xa29   : > { %v1141_v17 = vpop.f32.mrb[24].mxu1 }
 0xa2a   : > { %v1147_v20 = vadd.f32 %v1141_v17, %v988_v0  ;;  %v1405_v21 = vpop.f32.mrb[25].mxu1 }
 0xa2b   : > { %v1144_v23 = vpop.f32.mrb[26].mxu1 }
 0xa2c   : > { %v1155_v24 = vadd.f32 %v1284_v18, %v1147_v20  ;;  %v1406_v25 = vpop.f32.mrb[27].mxu1 }
 0xa2e   : > { %v1157_v26 = vadd.f32 %v1156_v22, %v1155_v24 }
 0xa30   : > { %v1160_v27 = vsel %vm398_vm1, %v1157_v26, 0.0 }
 0xa31   : > { %1161 = vadd.xlane.f32.xlu1 %v1160_v27 }
 0xabe   : > { %v1162_v28 = vpop.xlane.xlu1 %1161 }
 0xabf   : > { %v1164_v29 = vmul.f32 0.03125, %v1162_v28 }
 0xac1   : > { %v1165_v30 = vsub.f32 %v1157_v26, %v1164_v29 }
 0xac3   : > { %v1166_v31 = vmul.f32 %v1165_v30, %v1165_v30 }
 0xac5   : > { %v1167_v32 = vsel %vm398_vm1, %v1166_v31, 0.0 }
 0xac6   : > { %1168 = vadd.xlane.f32.xlu0 %v1167_v32 }
 0xb53   : > { %v1169_v33 = vpop.xlane.xlu0 %1168 }
 0xb54   : > { %v1170_v34 = vmul.f32 0.03125, %v1169_v33 }
 0xb56   : > { %v1171_v35 = vadd.f32 1e-05, %v1170_v34 }
 0xb58   : > { %1444 = vrsqrt.f32 %v1171_v35 }
 0xb62   : > { %v1445_v6 = vpop.eup %1444 }
 0xb63   : > { %v1173_v37 = vmul.f32 %v1445_v6, %v1165_v30 }
 0xb65   : > { %v1180_v39 = vmul.f32 %v1285_v36, %v1173_v37 }
 0xb67   : > { %v1187_v40 = vadd.f32 %v1286_v38, %v1180_v39 }
 0xb69   : > { %v1188_v41 = vpack.c.bf16 %v1187_v40, %v1187_v40 }
 0xb6b   : > { %1190 = vst.msk [vmem:[%s371_s20] sm:$0xf] %vm1189_vm4, %v1188_v41 }
 0xb6c PF: > { %s20_s13 = sadd.s32 1, %s1452_s13  }
 0xb6d   : > { %p17_p4 = scmp.ge.s32.totalorder %s20_s13, 4  }
 0xb6f   :  { %19 = sbr.rel (!%p17_p4) target bundleno = 1 (0x1), region = 93 }

</bundles_post_ra>
